<compile_context>
chip_gen: v5e
topology: v5e:2x2
jax: 0.10.0
libtpu: 0.0.40
codegen_flags: <defaults>
</compile_context>

<pallas_src>
import jax
import jax.numpy as jnp
from jax.experimental import pallas as pl
from jax.experimental.pallas import tpu as pltpu

LANE = 128


def _round_up(x, m):
    return ((x + m - 1) // m) * m


def tradnet_kernel(x_ref,
                   w1_ref, b1_ref,
                   w2_ref, b2_ref,
                   w3_ref, b3_ref,
                   w4_ref, b4_ref,
                   w5_ref, b5_ref,
                   o_ref):
    # Layers 1..4: Linear (bf16 operands, f32 MXU accumulation) + Tanh (f32),
    # then cast back to bf16 for the next matmul.
    h = x_ref[...]
    for w_ref, b_ref in ((w1_ref, b1_ref), (w2_ref, b2_ref),
                         (w3_ref, b3_ref), (w4_ref, b4_ref)):
        acc = jnp.dot(h, w_ref[...], preferred_element_type=jnp.float32)
        h = jnp.tanh(acc + b_ref[...]).astype(jnp.bfloat16)

    # Final Linear, lane-padded to 128 output columns (column 0 is the real logit).
    logits = jnp.dot(h, w5_ref[...],
                     preferred_element_type=jnp.float32) + b5_ref[...]

    # Softmax over dim=0 (the batch dimension), per column, as nn.Softmax(dim=0).
    m = jnp.max(logits, axis=0, keepdims=True)
    e = jnp.exp(logits - m)
    denom = jnp.sum(e, axis=0, keepdims=True)
    o_ref[...] = (e * pl.reciprocal(denom, approx=True)).astype(o_ref.dtype)


def _full_spec(shape):
    # Full-array block (block_shape == array shape), single grid point.
    return pl.BlockSpec(shape, lambda: tuple(0 for _ in shape))


def tradnet_pallas(x_bf16, padded_params):
    """x_bf16: (batch, pad_padded) bf16; padded_params: [(W_bf16, b_f32), ...]."""
    n = x_bf16.shape[0]
    args = [x_bf16]
    in_specs = [_full_spec(x_bf16.shape)]
    for w, b in padded_params:
        args.extend([w, b])
        in_specs.extend([_full_spec(w.shape), _full_spec(b.shape)])

    out = pl.pallas_call(
        tradnet_kernel,
        grid=(),
        in_specs=in_specs,
        out_specs=_full_spec((n, LANE)),
        out_shape=jax.ShapeDtypeStruct((n, LANE), jnp.float32),
        compiler_params=pltpu.CompilerParams(vmem_limit_bytes=16 << 20),
    )(*args)
    # Only column 0 carries the real (n, 1) softmax output.
    return out[:, :1]


def pad_or_truncate(all_feats, pad):
    """Replicates TradNet's concat-then-pad/truncate logic (generalized to any batch)."""
    n, d = all_feats.shape
    if d >= pad:
        return all_feats[:, :pad]
    # TODO(synk): PyTorch else-branch cats a zeros(1, pad) row-vector (only valid for
    # batch==1); here we zero-pad features to `pad`, which is the intended semantics.
    return jnp.concatenate(
        [all_feats, jnp.zeros((n, pad - d), all_feats.dtype)], axis=1)


def init_params(pad, key):
    """Deterministic f32 init for Linear(pad,1000),(1000,500),(500,250),(250,100),(100,1)."""
    dims = [pad, 1000, 500, 250, 100, 1]
    params = []
    for i in range(len(dims) - 1):
        fan_in, fan_out = dims[i], dims[i + 1]
        key, kw, kb = jax.random.split(key, 3)
        bound = 1.0 / jnp.sqrt(fan_in)
        w = jax.random.uniform(kw, (fan_in, fan_out), jnp.float32, -bound, bound)
        b = jax.random.uniform(kb, (1, fan_out), jnp.float32, -bound, bound)
        params.append((w, b))
    return params


def pad_params_for_kernel(params):
    """Zero-pad every layer's in/out dims to multiples of 128 and cast weights to bf16.

    Extra weight rows/columns and bias entries are zero, so padded channels are
    tanh(0)=0 and multiply zero rows downstream -> column 0 is numerically the
    same model.
    """
    padded = []
    for w, b in params:
        fi, fo = w.shape
        fi_p, fo_p = _round_up(fi, LANE), _round_up(fo, LANE)
        w_p = jnp.zeros((fi_p, fo_p), jnp.bfloat16)
        w_p = w_p.at[:fi, :fo].set(w.astype(jnp.bfloat16))
        b_p = jnp.zeros((1, fo_p), jnp.float32)
        b_p = b_p.at[:, :fo].set(b)
        padded.append((w_p, b_p))
    return padded


def tradnet_forward(syn_input_ids, char_input_ids, img_input_ids, params, pad):
    all_feats = jnp.concatenate(
        (syn_input_ids, char_input_ids, img_input_ids), axis=1)
    x = pad_or_truncate(all_feats.astype(jnp.float32), pad)
    pad_p = _round_up(pad, LANE)
    if pad_p > pad:  # keep the kernel's leading contraction lane-dense too
        x = jnp.concatenate(
            [x, jnp.zeros((x.shape[0], pad_p - pad), x.dtype)], axis=1)
    x_bf16 = x.astype(jnp.bfloat16)
    padded_params = pad_params_for_kernel(params)
    return tradnet_pallas(x_bf16, padded_params)


def tradnet_reference(syn, char, img, params, pad):
    """Pure-JAX reference (same bf16-weight / f32-accum numerics, unpadded dims)."""
    all_feats = jnp.concatenate((syn, char, img), axis=1)
    x = pad_or_truncate(all_feats.astype(jnp.float32), pad).astype(jnp.bfloat16)
    for i, (w, b) in enumerate(params):
        x = jnp.dot(x, w.astype(jnp.bfloat16),
                    preferred_element_type=jnp.float32) + b
        if i < len(params) - 1:
            x = jnp.tanh(x).astype(jnp.bfloat16)
    return jax.nn.softmax(x, axis=0)


if __name__ == "__main__":
    PAD = 256
    BATCH = 2

    key = jax.random.PRNGKey(0)
    k1, k2, k3, kp = jax.random.split(key, 4)

    # Three feature groups that concatenate to >= PAD columns (truncate branch).
    syn_input_ids = jax.random.normal(k1, (BATCH, 100), jnp.float32)
    char_input_ids = jax.random.normal(k2, (BATCH, 100), jnp.float32)
    img_input_ids = jax.random.normal(k3, (BATCH, 100), jnp.float32)

    params = init_params(PAD, kp)

    out = tradnet_forward(syn_input_ids, char_input_ids, img_input_ids, params, PAD)
    out = jax.block_until_ready(out)

    ref = tradnet_reference(syn_input_ids, char_input_ids, img_input_ids, params, PAD)
    ref = jax.block_until_ready(ref)

    assert out.shape == (BATCH, 1)
    assert jnp.allclose(out, ref, atol=1e-3, rtol=1e-3)

    print("KERNEL_OK")
</pallas_src>

<mosaic_0001>
module attributes {stable_mosaic.version = 11 : i64} {
  func.func @tradnet_kernel(%arg0: memref<2x256xbf16, #tpu.memory_space<vmem>>, %arg1: memref<256x1024xbf16, #tpu.memory_space<vmem>>, %arg2: memref<1x1024xf32, #tpu.memory_space<vmem>>, %arg3: memref<1024x512xbf16, #tpu.memory_space<vmem>>, %arg4: memref<1x512xf32, #tpu.memory_space<vmem>>, %arg5: memref<512x256xbf16, #tpu.memory_space<vmem>>, %arg6: memref<1x256xf32, #tpu.memory_space<vmem>>, %arg7: memref<256x128xbf16, #tpu.memory_space<vmem>>, %arg8: memref<1x128xf32, #tpu.memory_space<vmem>>, %arg9: memref<128x128xbf16, #tpu.memory_space<vmem>>, %arg10: memref<1x128xf32, #tpu.memory_space<vmem>>, %arg11: memref<2x128xf32, #tpu.memory_space<vmem>>) attributes {dimension_semantics = [], scalar_prefetch = 0 : i64, scratch_operands = 0 : i64, tpu.core_type = #tpu.core_type<tc>} {
    %c0 = arith.constant 0 : index
    %c0_0 = arith.constant 0 : index
    %0 = vector.load %arg0[%c0, %c0_0] : memref<2x256xbf16, #tpu.memory_space<vmem>>, vector<2x256xbf16>
    %c0_1 = arith.constant 0 : index
    %c0_2 = arith.constant 0 : index
    %1 = vector.load %arg1[%c0_1, %c0_2] : memref<256x1024xbf16, #tpu.memory_space<vmem>>, vector<256x1024xbf16>
    %cst = arith.constant dense<0.000000e+00> : vector<2x1024xf32>
    %2 = tpu.matmul %0, %1, %cst {dimension_numbers = #tpu.dot_dimension_numbers<[1], [0], [0], [1], [0, 0, 1, 1], [], []>} : vector<2x256xbf16>, vector<256x1024xbf16>, vector<2x1024xf32> -> vector<2x1024xf32>
    %c0_3 = arith.constant 0 : index
    %c0_4 = arith.constant 0 : index
    %3 = vector.load %arg2[%c0_3, %c0_4] : memref<1x1024xf32, #tpu.memory_space<vmem>>, vector<1x1024xf32>
    %4 = vector.broadcast %3 : vector<1x1024xf32> to vector<2x1024xf32>
    %5 = arith.addf %2, %4 : vector<2x1024xf32>
    %6 = math.tanh %5 : vector<2x1024xf32>
    %7 = arith.truncf %6 : vector<2x1024xf32> to vector<2x1024xbf16>
    %c0_5 = arith.constant 0 : index
    %c0_6 = arith.constant 0 : index
    %8 = vector.load %arg3[%c0_5, %c0_6] : memref<1024x512xbf16, #tpu.memory_space<vmem>>, vector<1024x512xbf16>
    %cst_7 = arith.constant dense<0.000000e+00> : vector<2x512xf32>
    %9 = tpu.matmul %7, %8, %cst_7 {dimension_numbers = #tpu.dot_dimension_numbers<[1], [0], [0], [1], [0, 0, 1, 1], [], []>} : vector<2x1024xbf16>, vector<1024x512xbf16>, vector<2x512xf32> -> vector<2x512xf32>
    %c0_8 = arith.constant 0 : index
    %c0_9 = arith.constant 0 : index
    %10 = vector.load %arg4[%c0_8, %c0_9] : memref<1x512xf32, #tpu.memory_space<vmem>>, vector<1x512xf32>
    %11 = vector.broadcast %10 : vector<1x512xf32> to vector<2x512xf32>
    %12 = arith.addf %9, %11 : vector<2x512xf32>
    %13 = math.tanh %12 : vector<2x512xf32>
    %14 = arith.truncf %13 : vector<2x512xf32> to vector<2x512xbf16>
    %c0_10 = arith.constant 0 : index
    %c0_11 = arith.constant 0 : index
    %15 = vector.load %arg5[%c0_10, %c0_11] : memref<512x256xbf16, #tpu.memory_space<vmem>>, vector<512x256xbf16>
    %cst_12 = arith.constant dense<0.000000e+00> : vector<2x256xf32>
    %16 = tpu.matmul %14, %15, %cst_12 {dimension_numbers = #tpu.dot_dimension_numbers<[1], [0], [0], [1], [0, 0, 1, 1], [], []>} : vector<2x512xbf16>, vector<512x256xbf16>, vector<2x256xf32> -> vector<2x256xf32>
    %c0_13 = arith.constant 0 : index
    %c0_14 = arith.constant 0 : index
    %17 = vector.load %arg6[%c0_13, %c0_14] : memref<1x256xf32, #tpu.memory_space<vmem>>, vector<1x256xf32>
    %18 = vector.broadcast %17 : vector<1x256xf32> to vector<2x256xf32>
    %19 = arith.addf %16, %18 : vector<2x256xf32>
    %20 = math.tanh %19 : vector<2x256xf32>
    %21 = arith.truncf %20 : vector<2x256xf32> to vector<2x256xbf16>
    %c0_15 = arith.constant 0 : index
    %c0_16 = arith.constant 0 : index
    %22 = vector.load %arg7[%c0_15, %c0_16] : memref<256x128xbf16, #tpu.memory_space<vmem>>, vector<256x128xbf16>
    %cst_17 = arith.constant dense<0.000000e+00> : vector<2x128xf32>
    %23 = tpu.matmul %21, %22, %cst_17 {dimension_numbers = #tpu.dot_dimension_numbers<[1], [0], [0], [1], [0, 0, 1, 1], [], []>} : vector<2x256xbf16>, vector<256x128xbf16>, vector<2x128xf32> -> vector<2x128xf32>
    %c0_18 = arith.constant 0 : index
    %c0_19 = arith.constant 0 : index
    %24 = vector.load %arg8[%c0_18, %c0_19] : memref<1x128xf32, #tpu.memory_space<vmem>>, vector<1x128xf32>
    %25 = vector.broadcast %24 : vector<1x128xf32> to vector<2x128xf32>
    %26 = arith.addf %23, %25 : vector<2x128xf32>
    %27 = math.tanh %26 : vector<2x128xf32>
    %28 = arith.truncf %27 : vector<2x128xf32> to vector<2x128xbf16>
    %c0_20 = arith.constant 0 : index
    %c0_21 = arith.constant 0 : index
    %29 = vector.load %arg9[%c0_20, %c0_21] : memref<128x128xbf16, #tpu.memory_space<vmem>>, vector<128x128xbf16>
    %cst_22 = arith.constant dense<0.000000e+00> : vector<2x128xf32>
    %30 = tpu.matmul %28, %29, %cst_22 {dimension_numbers = #tpu.dot_dimension_numbers<[1], [0], [0], [1], [0, 0, 1, 1], [], []>} : vector<2x128xbf16>, vector<128x128xbf16>, vector<2x128xf32> -> vector<2x128xf32>
    %c0_23 = arith.constant 0 : index
    %c0_24 = arith.constant 0 : index
    %31 = vector.load %arg10[%c0_23, %c0_24] : memref<1x128xf32, #tpu.memory_space<vmem>>, vector<1x128xf32>
    %32 = vector.broadcast %31 : vector<1x128xf32> to vector<2x128xf32>
    %33 = arith.addf %30, %32 : vector<2x128xf32>
    %cst_25 = arith.constant dense<0xFF800000> : vector<128xf32>
    %34 = vector.multi_reduction <maximumf>, %33, %cst_25 [0] : vector<2x128xf32> to vector<128xf32>
    %35 = vector.shape_cast %34 : vector<128xf32> to vector<1x128xf32>
    %36 = vector.broadcast %35 : vector<1x128xf32> to vector<2x128xf32>
    %37 = arith.subf %33, %36 : vector<2x128xf32>
    %38 = math.exp %37 : vector<2x128xf32>
    %cst_26 = arith.constant dense<0.000000e+00> : vector<128xf32>
    %39 = vector.multi_reduction <add>, %38, %cst_26 [0] : vector<2x128xf32> to vector<128xf32>
    %40 = vector.shape_cast %39 : vector<128xf32> to vector<1x128xf32>
    %41 = tpu.reciprocal %40 {approx = true} : vector<1x128xf32> -> vector<1x128xf32>
    %42 = vector.broadcast %41 : vector<1x128xf32> to vector<2x128xf32>
    %43 = arith.mulf %38, %42 : vector<2x128xf32>
    %c0_27 = arith.constant 0 : index
    %c0_28 = arith.constant 0 : index
    %44 = vector.load %arg11[%c0_27, %c0_28] : memref<2x128xf32, #tpu.memory_space<vmem>>, vector<2x128xf32>
    tpu.vector_store %arg11[%c0_27, %c0_28], %43 {strides = array<i32>} : memref<2x128xf32, #tpu.memory_space<vmem>>, vector<2x128xf32>,
    return
  }
}

</mosaic_0001>

<bundles_post_ra>
// kernel: tpu_custom_call.1
= control target key start
LH: loop header
LB: loop body
LE: loop exit
PB: predicated region body
PF: predicated region fallthrough
CT: control target
= control target key end

     0   :  { %16 = vsyncpa [#allocation3], 0  ;;  %s6807_s0 = inlined_call_operand.hbm [shape: bf16[2,256], index: 0, kind: input, shape index: {}]   ;;  %s6808_s1 = inlined_call_operand.hbm [shape: bf16[256,1024], index: 1, kind: input, shape index: {}]   ;;  %s6809_s2 = inlined_call_operand.hbm [shape: f32[1,1024], index: 2, kind: input, shape index: {}]   ;;  %s6810_s3 = inlined_call_operand.hbm [shape: bf16[1024,512], index: 3, kind: input, shape index: {}]   ;;  %s6811_s4 = inlined_call_operand.hbm [shape: f32[1,512], index: 4, kind: input, shape index: {}]   ;;  %s6812_s5 = inlined_call_operand.hbm [shape: bf16[512,256], index: 5, kind: input, shape index: {}]   ;;  %s6813_s6 = inlined_call_operand.vmem [shape: f32[1,256], index: 6, kind: input, shape index: {}]   ;;  %s6814_s7 = inlined_call_operand.hbm [shape: bf16[256,128], index: 7, kind: input, shape index: {}]   ;;  %s6815_s8 = inlined_call_operand.vmem [shape: f32[1,128], index: 8, kind: input, shape index: {}]   ;;  %s6816_s9 = inlined_call_operand.hbm [shape: bf16[128,128], index: 9, kind: input, shape index: {}]   ;;  %s6817_s10 = inlined_call_operand.vmem [shape: f32[1,128], index: 10, kind: input, shape index: {}]   ;;  %s6818_s11 = inlined_call_operand.hbm [shape: f32[2,128], index: 11, kind: output, shape index: {}]  }
   0x1   :  { %17 = vsyncpa [#allocation6], 0 }
   0x2   :  { %18 = vsyncpa [#allocation9], 0 }
   0x3   :  { %19 = vsyncpa [#allocation12], 0 }
   0x4   :  { %20 = vsyncpa [#allocation15], 0  ;;  %s37_s19 = sshll.u32 %s6808_s1, 4  ;;  %s38_s19 = int_to_ptr.hbm [resolvable:$true] %s37_s19 }
   0x5   :  { %21 = vsyncpa [#allocation4], 0  ;;  %s6568_s20 = smov [#allocation5]   ;;  %s61_s24 = sshll.u32 %s6810_s3, 4  ;;  %s62_s24 = int_to_ptr.hbm [resolvable:$true] %s61_s24 }
   0x6   :  { %s39_s21 = sshll.u32 %s6568_s20, 4  ;;  %s6569_s25 = smov 512   ;;  %s40_s21 = int_to_ptr.vmem [resolvable:$true] %s39_s21 }
   0x7   :  { %s6570_s26 = smov 32   ;;  %s6571_s27 = smov [#allocation8]  }
   0x8   :  { %45 = dma.hbm_to_vmem [thread:$0]  %s38_s19, 16384, %s40_s21, [#allocation6], %s6569_s25, %s6569_s25, %s6570_s26  }
   0x9   :  { %s63_s28 = sshll.u32 %s6571_s27, 4  ;;  %s6572_s29 = smov 256   ;;  %s64_s28 = int_to_ptr.vmem [resolvable:$true] %s63_s28 }
   0xa   :  { %s6573_s30 = smov 16   ;;  %s85_s13 = sshll.u32 %s6812_s5, 4  ;;  %s86_s13 = int_to_ptr.hbm [resolvable:$true] %s85_s13 }
   0xb   :  { %69 = dma.hbm_to_vmem [thread:$0]  %s62_s24, 32768, %s64_s28, [#allocation9], %s6572_s29, %s6572_s29, %s6573_s30  }
   0xc   :  { %s6574_s14 = smov [#allocation11]   ;;  %s27_s17 = sshll.u32 %s6807_s0, 4  ;;  %s28_s17 = int_to_ptr.hbm [resolvable:$true] %s27_s17 }
   0xd   :  { %s87_s15 = sshll.u32 %s6574_s14, 4  ;;  %s6575_s18 = smov 128   ;;  %s88_s15 = int_to_ptr.vmem [resolvable:$true] %s87_s15 }
   0xe   :  { %s6576_s19 = smov 8   ;;  %s6577_s20 = smov [#allocation2]  }
   0xf   :  { %93 = dma.hbm_to_vmem [thread:$0]  %s86_s13, 8192, %s88_s15, [#allocation12], %s6575_s18, %s6575_s18, %s6576_s19  }
  0x10   :  { %s29_s21 = sshll.u32 %s6577_s20, 4  ;;  %s51_s24 = sshll.u32 %s6809_s2, 4  ;;  %s30_s21 = int_to_ptr.vmem [resolvable:$true] %s29_s21  ;;  %s52_s24 = int_to_ptr.hbm [resolvable:$true] %s51_s24 }
  0x11   :  { %32 = dma.hbm_to_vmem [thread:$0]  %s28_s17, 32, %s30_s21, [#allocation3]  }
  0x12   :  { %s75_s26 = sshll.u32 %s6811_s4, 4  ;;  %s6578_s27 = smov [#allocation7]   ;;  %s76_s26 = int_to_ptr.hbm [resolvable:$true] %s75_s26 }
  0x13   :  { %s53_s28 = sshll.u32 %s6578_s27, 4  ;;  %s6579_s0 = smov [#allocation10]   ;;  %s54_s28 = int_to_ptr.vmem [resolvable:$true] %s53_s28 }
  0x14   :  { %56 = dma.hbm_to_vmem [thread:$0]  %s52_s24, 128, %s54_s28, [#allocation6]  }
  0x15   :  { %s77_s29 = sshll.u32 %s6579_s0, 4  ;;  %s100_s12 = sshll.u32 %s6814_s7, 4  ;;  %s78_s29 = int_to_ptr.vmem [resolvable:$true] %s77_s29  ;;  %s101_s12 = int_to_ptr.hbm [resolvable:$true] %s100_s12 }
  0x16   :  { %80 = dma.hbm_to_vmem [thread:$0]  %s76_s26, 64, %s78_s29, [#allocation9]  }
  0x17   :  { %s6580_s2 = smov [#allocation13]   ;;  %s115_s4 = sshll.u32 %s6816_s9, 4  ;;  %s116_s4 = int_to_ptr.hbm [resolvable:$true] %s115_s4 }
  0x18   :  { %s102_s13 = sshll.u32 %s6580_s2, 4  ;;  %s6581_s16 = smov 64   ;;  %s103_s13 = int_to_ptr.vmem [resolvable:$true] %s102_s13 }
  0x19   :  { %s6582_s3 = smov 4   ;;  %s6583_s17 = smov [#allocation14]  }
  0x1a   :  { %108 = dma.hbm_to_vmem [thread:$0]  %s101_s12, 2048, %s103_s13, [#allocation12], %s6581_s16, %s6581_s16, %s6582_s3  }
  0x1b   :  { %s117_s18 = sshll.u32 %s6583_s17, 4  ;;  %s118_s18 = int_to_ptr.vmem [resolvable:$true] %s117_s18 }
  0x1c   :  { %123 = dma.hbm_to_vmem [thread:$0]  %s116_s4, 1024, %s118_s18, [#allocation15], %s6581_s16, %s6581_s16, %s6582_s3  }
  0x1d   :  { %6556 = dma.done.wait [#allocation3], 32  }
  0x1e   :  { %6557 = vsyncadd [#allocation3], 4294967264 }
  0x1f   :  { %6558 = dma.done.wait [#allocation6], 16512  }
  0x20   :  { %6559 = vsyncadd [#allocation6], 4294950784 }
  0x21   :  { %6560 = dma.done.wait [#allocation9], 32832  }
  0x22   :  { %6561 = vsyncadd [#allocation9], 4294934464 }
  0x23   :  { %6562 = dma.done.wait [#allocation12], 10240  }
  0x24   :  { %6563 = vsyncadd [#allocation12], 4294957056 }
  0x25   :  { %6564 = dma.done.wait [#allocation15], 1024  }
  0x26   :  { %6565 = vsyncadd [#allocation15], 4294966272  ;;  %v4152_v0 = vld [vmem:[#allocation5 + $0x1c0] sm:$0xf]  ;;  %v5870_v5 = vld [vmem:[#allocation5 + $0x1c4] sm:$0xf] }
  0x27   :  { %v5874_v1 = vld [vmem:[#allocation5 + $0x1dc] sm:$0xf0]  ;;  %v4154_v6 = vld [vmem:[#allocation5 + $0x1e0] sm:$0xf0]  ;;  %vm3884_vm0 = vcmask 1041408   ;;  %s3912_s24 = sshll.u32 %s6818_s11, 4  ;;  %s3913_s24 = int_to_ptr.hbm [resolvable:$true] %s3912_s24 }
  0x28   :  { %v4408_v2 = vld [vmem:[#allocation5 + $0x3c0] sm:$0xf]  ;;  %v4153_v3 = vor.u32 %v5874_v1, %v4152_v0  ;;  %v4157_v8 = vor.u32 %v5870_v5, %v4154_v6  ;;  %v5934_v9 = vld [vmem:[#allocation5 + $0x3c4] sm:$0xf] }
  0x29   :  { %v5938_v4 = vld [vmem:[#allocation5 + $0x3dc] sm:$0xf0]  ;;  %v4410_v10 = vld [vmem:[#allocation5 + $0x3e0] sm:$0xf0] }
  0x2a   :  { %v4409_v7 = vor.u32 %v5938_v4, %v4408_v2  ;;  %v4120_v11 = vld [vmem:[#allocation5 + $0x180] sm:$0xf]  ;;  %951 = vmatpush.bf16.msra.mxu0 %v4153_v3  ;;  %v4413_v12 = vor.u32 %v5934_v9, %v4410_v10  ;;  %977 = vmatpush.bf16.msra.mxu2 %v4157_v8  ;;  %v5862_v18 = vld [vmem:[#allocation5 + $0x184] sm:$0xf] }
  0x2b   :  { %v5866_v13 = vld [vmem:[#allocation5 + $0x19c] sm:$0xf0]  ;;  %v4122_v19 = vld [vmem:[#allocation5 + $0x1a0] sm:$0xf0] }
  0x2c   :  { %v4376_v14 = vld [vmem:[#allocation5 + $0x380] sm:$0xf]  ;;  %964 = vmatpush.bf16.msra.mxu1 %v4409_v7  ;;  %v4121_v16 = vor.u32 %v5866_v13, %v4120_v11  ;;  %v5926_v20 = vld [vmem:[#allocation5 + $0x384] sm:$0xf]  ;;  %990 = vmatpush.bf16.msra.mxu3 %v4413_v12  ;;  %v4125_v21 = vor.u32 %v5862_v18, %v4122_v19 }
  0x2d   :  { %v5930_v15 = vld [vmem:[#allocation5 + $0x39c] sm:$0xf0]  ;;  %v4378_v22 = vld [vmem:[#allocation5 + $0x3a0] sm:$0xf0] }
  0x2e   :  { %v4377_v17 = vor.u32 %v5930_v15, %v4376_v14  ;;  %v4088_v23 = vld [vmem:[#allocation5 + $0x140] sm:$0xf]  ;;  %v4381_v25 = vor.u32 %v5926_v20, %v4378_v22  ;;  %v5854_v28 = vld [vmem:[#allocation5 + $0x144] sm:$0xf]  ;;  %952 = vmatpush.bf16.msra.mxu0 %v4121_v16  ;;  %978 = vmatpush.bf16.msra.mxu2 %v4125_v21 }
  0x2f   :  { %v5858_v24 = vld [vmem:[#allocation5 + $0x15c] sm:$0xf0]  ;;  %v4090_v30 = vld [vmem:[#allocation5 + $0x160] sm:$0xf0] }
  0x30   :  { %v4344_v26 = vld [vmem:[#allocation5 + $0x340] sm:$0xf]  ;;  %v4089_v29 = vor.u32 %v5858_v24, %v4088_v23  ;;  %v5918_v31 = vld [vmem:[#allocation5 + $0x344] sm:$0xf]  ;;  %965 = vmatpush.bf16.msra.mxu1 %v4377_v17  ;;  %v4093_v34 = vor.u32 %v5854_v28, %v4090_v30  ;;  %991 = vmatpush.bf16.msra.mxu3 %v4381_v25  ;;  %v4160_v28 = vld [vmem:[#allocation5 + $0x1c8] sm:$0xf] }
  0x31   :  { %v5922_v27 = vld [vmem:[#allocation5 + $0x35c] sm:$0xf0]  ;;  %v4346_v32 = vld [vmem:[#allocation5 + $0x360] sm:$0xf0]  ;;  %v4416_v30 = vld [vmem:[#allocation5 + $0x3c8] sm:$0xf] }
  0x32   :  { %v4345_v33 = vor.u32 %v5922_v27, %v4344_v26  ;;  %v4056_v35 = vld [vmem:[#allocation5 + $0x100] sm:$0xf]  ;;  %v4349_v38 = vor.u32 %v5918_v31, %v4346_v32  ;;  %v5846_v40 = vld [vmem:[#allocation5 + $0x104] sm:$0xf]  ;;  %953 = vmatpush.bf16.msra.mxu0 %v4089_v29  ;;  %979 = vmatpush.bf16.msra.mxu2 %v4093_v34  ;;  %v5875_v29 = vld [vmem:[#allocation5 + $0x1e4] sm:$0xf0] }
  0x33   :  { %v5850_v36 = vld [vmem:[#allocation5 + $0x11c] sm:$0xf0]  ;;  %v4058_v41 = vld [vmem:[#allocation5 + $0x120] sm:$0xf0]  ;;  %v5939_v32 = vld [vmem:[#allocation5 + $0x3e4] sm:$0xf0] }
  0x34   :  { %v4312_v37 = vld [vmem:[#allocation5 + $0x300] sm:$0xf]  ;;  %v5910_v42 = vld [vmem:[#allocation5 + $0x304] sm:$0xf]  ;;  %v4057_v44 = vor.u32 %v5850_v36, %v4056_v35  ;;  %966 = vmatpush.bf16.msra.mxu1 %v4345_v33  ;;  %v4061_v46 = vor.u32 %v5846_v40, %v4058_v41  ;;  %992 = vmatpush.bf16.msra.mxu3 %v4349_v38  ;;  %v5871_v33 = vld [vmem:[#allocation5 + $0x1cc] sm:$0xf]  ;;  %v4161_v40 = vor.u32 %v5875_v29, %v4160_v28 }
  0x35   :  { %v5914_v39 = vld [vmem:[#allocation5 + $0x31c] sm:$0xf0]  ;;  %v4314_v43 = vld [vmem:[#allocation5 + $0x320] sm:$0xf0]  ;;  %v4162_v34 = vld [vmem:[#allocation5 + $0x1e8] sm:$0xf0]  ;;  %v4417_v41 = vor.u32 %v5939_v32, %v4416_v30 }
  0x36   :  { %v4313_v45 = vor.u32 %v5914_v39, %v4312_v37  ;;  %v4024_v47 = vld [vmem:[#allocation5 + $0xc0] sm:$0xf]  ;;  %v4317_v50 = vor.u32 %v5910_v42, %v4314_v43  ;;  %v5838_v52 = vld [vmem:[#allocation5 + $0xc4] sm:$0xf]  ;;  %954 = vmatpush.bf16.msra.mxu0 %v4057_v44  ;;  %980 = vmatpush.bf16.msra.mxu2 %v4061_v46  ;;  %v5935_v37 = vld [vmem:[#allocation5 + $0x3cc] sm:$0xf]  ;;  %v4165_v42 = vor.u32 %v5871_v33, %v4162_v34 }
  0x37   :  { %v5842_v48 = vld [vmem:[#allocation5 + $0xdc] sm:$0xf0]  ;;  %v4026_v53 = vld [vmem:[#allocation5 + $0xe0] sm:$0xf0]  ;;  %v4418_v38 = vld [vmem:[#allocation5 + $0x3e8] sm:$0xf0] }
  0x38   :  { %v4280_v49 = vld [vmem:[#allocation5 + $0x2c0] sm:$0xf]  ;;  %v5902_v54 = vld [vmem:[#allocation5 + $0x2c4] sm:$0xf]  ;;  %v4025_v56 = vor.u32 %v5842_v48, %v4024_v47  ;;  %967 = vmatpush.bf16.msra.mxu1 %v4313_v45  ;;  %v4029_v58 = vor.u32 %v5838_v52, %v4026_v53  ;;  %993 = vmatpush.bf16.msra.mxu3 %v4317_v50  ;;  %v4128_v43 = vld [vmem:[#allocation5 + $0x188] sm:$0xf]  ;;  %v4421_v46 = vor.u32 %v5935_v37, %v4418_v38 }
  0x39   :  { %v5906_v51 = vld [vmem:[#allocation5 + $0x2dc] sm:$0xf0]  ;;  %v4282_v55 = vld [vmem:[#allocation5 + $0x2e0] sm:$0xf0]  ;;  %v5867_v44 = vld [vmem:[#allocation5 + $0x1a4] sm:$0xf0] }
  0x3a   :  { %v4281_v57 = vor.u32 %v5906_v51, %v4280_v49  ;;  %v3992_v59 = vld [vmem:[#allocation5 + $0x80] sm:$0xf]  ;;  %v4285_v62 = vor.u32 %v5902_v54, %v4282_v55  ;;  %v5830_v0 = vld [vmem:[#allocation5 + $0x84] sm:$0xf]  ;;  %955 = vmatpush.bf16.msra.mxu0 %v4025_v56  ;;  %981 = vmatpush.bf16.msra.mxu2 %v4029_v58  ;;  %v4384_v45 = vld [vmem:[#allocation5 + $0x388] sm:$0xf]  ;;  %v4129_v53 = vor.u32 %v5867_v44, %v4128_v43 }
  0x3b   :  { %v5834_v60 = vld [vmem:[#allocation5 + $0x9c] sm:$0xf0]  ;;  %v3994_v1 = vld [vmem:[#allocation5 + $0xa0] sm:$0xf0]  ;;  %v5931_v47 = vld [vmem:[#allocation5 + $0x3a4] sm:$0xf0] }
  0x3c   :  { %v4248_v61 = vld [vmem:[#allocation5 + $0x280] sm:$0xf]  ;;  %v5894_v2 = vld [vmem:[#allocation5 + $0x284] sm:$0xf]  ;;  %v3993_v4 = vor.u32 %v5834_v60, %v3992_v59  ;;  %968 = vmatpush.bf16.msra.mxu1 %v4281_v57  ;;  %v3997_v6 = vor.u32 %v5830_v0, %v3994_v1  ;;  %994 = vmatpush.bf16.msra.mxu3 %v4285_v62  ;;  %v5863_v48 = vld [vmem:[#allocation5 + $0x18c] sm:$0xf]  ;;  %v4385_v54 = vor.u32 %v5931_v47, %v4384_v45 }
  0x3d   :  { %v5898_v63 = vld [vmem:[#allocation5 + $0x29c] sm:$0xf0]  ;;  %v4250_v3 = vld [vmem:[#allocation5 + $0x2a0] sm:$0xf0]  ;;  %v4130_v49 = vld [vmem:[#allocation5 + $0x1a8] sm:$0xf0] }
  0x3e   :  { %v4249_v5 = vor.u32 %v5898_v63, %v4248_v61  ;;  %v3960_v7 = vld [vmem:[#allocation5 + $0x40] sm:$0xf]  ;;  %v4253_v10 = vor.u32 %v5894_v2, %v4250_v3  ;;  %v5822_v12 = vld [vmem:[#allocation5 + $0x44] sm:$0xf]  ;;  %956 = vmatpush.bf16.msra.mxu0 %v3993_v4  ;;  %982 = vmatpush.bf16.msra.mxu2 %v3997_v6  ;;  %v5927_v50 = vld [vmem:[#allocation5 + $0x38c] sm:$0xf]  ;;  %v4133_v55 = vor.u32 %v5863_v48, %v4130_v49 }
  0x3f   :  { %v5826_v8 = vld [vmem:[#allocation5 + $0x5c] sm:$0xf0]  ;;  %v3962_v13 = vld [vmem:[#allocation5 + $0x60] sm:$0xf0]  ;;  %v4386_v51 = vld [vmem:[#allocation5 + $0x3a8] sm:$0xf0] }
  0x40   :  { %v4216_v9 = vld [vmem:[#allocation5 + $0x240] sm:$0xf]  ;;  %v5886_v14 = vld [vmem:[#allocation5 + $0x244] sm:$0xf]  ;;  %v3961_v16 = vor.u32 %v5826_v8, %v3960_v7  ;;  %969 = vmatpush.bf16.msra.mxu1 %v4249_v5  ;;  %v3965_v20 = vor.u32 %v5822_v12, %v3962_v13  ;;  %995 = vmatpush.bf16.msra.mxu3 %v4253_v10  ;;  %v158_v52 = vld [vmem:[#allocation2] sm:$0x3]  ;;  %v4389_v59 = vor.u32 %v5927_v50, %v4386_v51 }
  0x41   :  { %v5890_v11 = vld [vmem:[#allocation5 + $0x25c] sm:$0xf0]  ;;  %v4218_v15 = vld [vmem:[#allocation5 + $0x260] sm:$0xf0]  ;;  %306 = vst [vmem:[#allocation1] ss:$9 sm:$0xff] %v158_v52 }
  0x42   :  { %v3928_v17 = vld [vmem:[#allocation5] sm:$0xf]  ;;  %v4217_v19 = vor.u32 %v5890_v11, %v4216_v9  ;;  %v5814_v23 = vld [vmem:[#allocation5 + $0x4] sm:$0xf]  ;;  %v4221_v24 = vor.u32 %v5886_v14, %v4218_v15  ;;  %957 = vmatpush.bf16.msra.mxu0 %v3961_v16  ;;  %983 = vmatpush.bf16.msra.mxu2 %v3965_v20  ;;  %v4096_v56 = vld [vmem:[#allocation5 + $0x148] sm:$0xf] }
  0x43   :  { %v5818_v18 = vld [vmem:[#allocation5 + $0x1c] sm:$0xf0]  ;;  %v3930_v25 = vld [vmem:[#allocation5 + $0x20] sm:$0xf0]  ;;  %v5859_v57 = vld [vmem:[#allocation5 + $0x164] sm:$0xf0] }
  0x44   :  { %v4184_v21 = vld [vmem:[#allocation5 + $0x200] sm:$0xf]  ;;  %v5878_v26 = vld [vmem:[#allocation5 + $0x204] sm:$0xf]  ;;  %v3929_v31 = vor.u32 %v5818_v18, %v3928_v17  ;;  %970 = vmatpush.bf16.msra.mxu1 %v4217_v19  ;;  %v3933_v36 = vor.u32 %v5814_v23, %v3930_v25  ;;  %996 = vmatpush.bf16.msra.mxu3 %v4221_v24  ;;  %v4352_v58 = vld [vmem:[#allocation5 + $0x348] sm:$0xf]  ;;  %v4097_v1 = vor.u32 %v5859_v57, %v4096_v56 }
  0x45   :  { %v5882_v22 = vld [vmem:[#allocation5 + $0x21c] sm:$0xf0]  ;;  %v4186_v27 = vld [vmem:[#allocation5 + $0x220] sm:$0xf0]  ;;  %v5923_v60 = vld [vmem:[#allocation5 + $0x364] sm:$0xf0] }
  0x46   :  { %v4185_v35 = vor.u32 %v5882_v22, %v4184_v21  ;;  %v4189_v39 = vor.u32 %v5878_v26, %v4186_v27  ;;  %958 = vmatpush.bf16.msra.mxu0 %v3929_v31  ;;  %984 = vmatpush.bf16.msra.mxu2 %v3933_v36  ;;  %v5855_v61 = vld [vmem:[#allocation5 + $0x14c] sm:$0xf]  ;;  %v4353_v2 = vor.u32 %v5923_v60, %v4352_v58  ;;  %v4064_v4 = vld [vmem:[#allocation5 + $0x108] sm:$0xf] }
  0x47   :  { %v4098_v62 = vld [vmem:[#allocation5 + $0x168] sm:$0xf0]  ;;  %v5851_v5 = vld [vmem:[#allocation5 + $0x124] sm:$0xf0] }
  0x48   :  { %971 = vmatpush.bf16.msra.mxu1 %v4185_v35  ;;  %997 = vmatpush.bf16.msra.mxu3 %v4189_v39  ;;  %v5919_v63 = vld [vmem:[#allocation5 + $0x34c] sm:$0xf]  ;;  %v4101_v3 = vor.u32 %v5855_v61, %v4098_v62  ;;  %v4320_v6 = vld [vmem:[#allocation5 + $0x308] sm:$0xf]  ;;  %v6669_v13 = vld [vmem:[#allocation1] sm:$0xff]  ;;  %v4065_v14 = vor.u32 %v5851_v5, %v4064_v4 }
  0x49   :  { %v4354_v0 = vld [vmem:[#allocation5 + $0x368] sm:$0xf0]  ;;  %v5915_v8 = vld [vmem:[#allocation5 + $0x324] sm:$0xf0]  ;;  %985 = vmatmul.bf16.vlgmr.msra.gmra.mxu2 %v6669_v13  ;;  %v6672_v15 = vld [vmem:[#allocation1 + $0x9] sm:$0xff]  ;;  %959 = vmatmul.bf16.vlgmr.msra.gmra.mxu0 %v6669_v13 }
  0x4a   :  { %1003 = vmatpush.bf16.msrb.mxu0 %v4161_v40  ;;  %1029 = vmatpush.bf16.msrb.mxu2 %v4165_v42  ;;  %v4357_v7 = vor.u32 %v5919_v63, %v4354_v0  ;;  %v5847_v9 = vld [vmem:[#allocation5 + $0x10c] sm:$0xf]  ;;  %v4321_v16 = vor.u32 %v5915_v8, %v4320_v6  ;;  %v4032_v18 = vld [vmem:[#allocation5 + $0xc8] sm:$0xf]  ;;  %v4168_v63 = vld [vmem:[#allocation5 + $0x1d0] sm:$0xf] }
  0x4b   :  { %v4066_v10 = vld [vmem:[#allocation5 + $0x128] sm:$0xf0]  ;;  %v5843_v19 = vld [vmem:[#allocation5 + $0xe4] sm:$0xf0]  ;;  %972 = vmatmul.bf16.vlgmr.msra.gmra.mxu1 %v6672_v15  ;;  %998 = vmatmul.bf16.vlgmr.msra.gmra.mxu3 %v6672_v15  ;;  %v5876_v0 = vld [vmem:[#allocation5 + $0x1ec] sm:$0xf0] }
  0x4c   :  { %1016 = vmatpush.bf16.msrb.mxu1 %v4417_v41  ;;  %1042 = vmatpush.bf16.msrb.mxu3 %v4421_v46  ;;  %v5911_v11 = vld [vmem:[#allocation5 + $0x30c] sm:$0xf]  ;;  %v4069_v17 = vor.u32 %v5847_v9, %v4066_v10  ;;  %v4288_v20 = vld [vmem:[#allocation5 + $0x2c8] sm:$0xf]  ;;  %v4033_v27 = vor.u32 %v5843_v19, %v4032_v18  ;;  %v5872_v4 = vld [vmem:[#allocation5 + $0x1d4] sm:$0xf] }
  0x4d   :  { %v4322_v12 = vld [vmem:[#allocation5 + $0x328] sm:$0xf0]  ;;  %v5907_v22 = vld [vmem:[#allocation5 + $0x2e4] sm:$0xf0]  ;;  %v4170_v5 = vld [vmem:[#allocation5 + $0x1f0] sm:$0xf0] }
  0x4e   :  { %1004 = vmatpush.bf16.msrb.mxu0 %v4129_v53  ;;  %1030 = vmatpush.bf16.msrb.mxu2 %v4133_v55  ;;  %v4325_v21 = vor.u32 %v5911_v11, %v4322_v12  ;;  %v5839_v23 = vld [vmem:[#allocation5 + $0xcc] sm:$0xf]  ;;  %v4289_v28 = vor.u32 %v5907_v22, %v4288_v20  ;;  %v4000_v30 = vld [vmem:[#allocation5 + $0x88] sm:$0xf]  ;;  %v5936_v8 = vld [vmem:[#allocation5 + $0x3d4] sm:$0xf]  ;;  %v4169_v11 = vor.u32 %v5876_v0, %v4168_v63 }
  0x4f   :  { %v4034_v24 = vld [vmem:[#allocation5 + $0xe8] sm:$0xf0]  ;;  %v5835_v31 = vld [vmem:[#allocation5 + $0xa4] sm:$0xf0]  ;;  %v4426_v9 = vld [vmem:[#allocation5 + $0x3f0] sm:$0xf0] }
  0x50   :  { %1017 = vmatpush.bf16.msrb.mxu1 %v4385_v54  ;;  %1043 = vmatpush.bf16.msrb.mxu3 %v4389_v59  ;;  %v5903_v25 = vld [vmem:[#allocation5 + $0x2cc] sm:$0xf]  ;;  %v4037_v29 = vor.u32 %v5839_v23, %v4034_v24  ;;  %v4256_v32 = vld [vmem:[#allocation5 + $0x288] sm:$0xf]  ;;  %v4001_v39 = vor.u32 %v5835_v31, %v4000_v30  ;;  %v4392_v18 = vld [vmem:[#allocation5 + $0x390] sm:$0xf]  ;;  %v4429_v19 = vor.u32 %v5936_v8, %v4426_v9 }
  0x51   :  { %v4290_v26 = vld [vmem:[#allocation5 + $0x2e8] sm:$0xf0]  ;;  %v5899_v34 = vld [vmem:[#allocation5 + $0x2a4] sm:$0xf0]  ;;  %v5932_v20 = vld [vmem:[#allocation5 + $0x3ac] sm:$0xf0] }
  0x52   :  { %1005 = vmatpush.bf16.msrb.mxu0 %v4097_v1  ;;  %1031 = vmatpush.bf16.msrb.mxu2 %v4101_v3  ;;  %v4293_v33 = vor.u32 %v5903_v25, %v4290_v26  ;;  %v5831_v35 = vld [vmem:[#allocation5 + $0x8c] sm:$0xf]  ;;  %v4257_v40 = vor.u32 %v5899_v34, %v4256_v32  ;;  %v3968_v42 = vld [vmem:[#allocation5 + $0x48] sm:$0xf]  ;;  %v4424_v1 = vld [vmem:[#allocation5 + $0x3d0] sm:$0xf]  ;;  %v4393_v26 = vor.u32 %v5932_v20, %v4392_v18 }
  0x53   :  { %v4002_v36 = vld [vmem:[#allocation5 + $0xa8] sm:$0xf0]  ;;  %v5827_v43 = vld [vmem:[#allocation5 + $0x64] sm:$0xf0]  ;;  %v5940_v3 = vld [vmem:[#allocation5 + $0x3ec] sm:$0xf0] }
  0x54   :  { %1018 = vmatpush.bf16.msrb.mxu1 %v4353_v2  ;;  %1044 = vmatpush.bf16.msrb.mxu3 %v4357_v7  ;;  %v5895_v37 = vld [vmem:[#allocation5 + $0x28c] sm:$0xf]  ;;  %v4005_v41 = vor.u32 %v5831_v35, %v4002_v36  ;;  %v4224_v44 = vld [vmem:[#allocation5 + $0x248] sm:$0xf]  ;;  %v3969_v51 = vor.u32 %v5827_v43, %v3968_v42  ;;  %v4425_v12 = vor.u32 %v5940_v3, %v4424_v1  ;;  %v4138_v22 = vld [vmem:[#allocation5 + $0x1b0] sm:$0xf0] }
  0x55   :  { %v4258_v38 = vld [vmem:[#allocation5 + $0x2a8] sm:$0xf0]  ;;  %v5891_v46 = vld [vmem:[#allocation5 + $0x264] sm:$0xf0]  ;;  %v5928_v23 = vld [vmem:[#allocation5 + $0x394] sm:$0xf] }
  0x56   :  { %1006 = vmatpush.bf16.msrb.mxu0 %v4065_v14  ;;  %1032 = vmatpush.bf16.msrb.mxu2 %v4069_v17  ;;  %v4261_v45 = vor.u32 %v5895_v37, %v4258_v38  ;;  %v5823_v47 = vld [vmem:[#allocation5 + $0x4c] sm:$0xf]  ;;  %v3936_v52 = vld [vmem:[#allocation5 + $0x8] sm:$0xf]  ;;  %v4225_v54 = vor.u32 %v5891_v46, %v4224_v44  ;;  %v4173_v14 = vor.u32 %v5872_v4, %v4170_v5  ;;  %v5868_v17 = vld [vmem:[#allocation5 + $0x1ac] sm:$0xf0] }
  0x57   :  { %v3970_v48 = vld [vmem:[#allocation5 + $0x68] sm:$0xf0]  ;;  %v5819_v53 = vld [vmem:[#allocation5 + $0x24] sm:$0xf0]  ;;  %v4394_v24 = vld [vmem:[#allocation5 + $0x3b0] sm:$0xf0] }
  0x58   :  { %1019 = vmatpush.bf16.msrb.mxu1 %v4321_v16  ;;  %1045 = vmatpush.bf16.msrb.mxu3 %v4325_v21  ;;  %v5887_v49 = vld [vmem:[#allocation5 + $0x24c] sm:$0xf]  ;;  %v3973_v55 = vor.u32 %v5823_v47, %v3970_v48  ;;  %v4192_v56 = vld [vmem:[#allocation5 + $0x208] sm:$0xf]  ;;  %v3937_v2 = vor.u32 %v5819_v53, %v3936_v52  ;;  %v4136_v16 = vld [vmem:[#allocation5 + $0x190] sm:$0xf]  ;;  %v4397_v31 = vor.u32 %v5928_v23, %v4394_v24 }
  0x59   :  { %v4226_v50 = vld [vmem:[#allocation5 + $0x268] sm:$0xf0]  ;;  %v5883_v57 = vld [vmem:[#allocation5 + $0x224] sm:$0xf0]  ;;  %v5864_v21 = vld [vmem:[#allocation5 + $0x194] sm:$0xf]  ;;  %v4137_v25 = vor.u32 %v5868_v17, %v4136_v16 }
  0x5a   :  { %1007 = vmatpush.bf16.msrb.mxu0 %v4033_v27  ;;  %1033 = vmatpush.bf16.msrb.mxu2 %v4037_v29  ;;  %v5815_v58 = vld [vmem:[#allocation5 + $0xc] sm:$0xf]  ;;  %v4229_v59 = vor.u32 %v5887_v49, %v4226_v50  ;;  %v4193_v6 = vor.u32 %v5883_v57, %v4192_v56  ;;  %v4141_v27 = vor.u32 %v5864_v21, %v4138_v22  ;;  %v5860_v29 = vld [vmem:[#allocation5 + $0x16c] sm:$0xf0]  ;;  %v4106_v34 = vld [vmem:[#allocation5 + $0x170] sm:$0xf0] }
  0x5b   :  { %v3938_v60 = vld [vmem:[#allocation5 + $0x28] sm:$0xf0]  ;;  %v4360_v30 = vld [vmem:[#allocation5 + $0x350] sm:$0xf]  ;;  %v5920_v35 = vld [vmem:[#allocation5 + $0x354] sm:$0xf] }
  0x5c   :  { %1020 = vmatpush.bf16.msrb.mxu1 %v4289_v28  ;;  %1046 = vmatpush.bf16.msrb.mxu3 %v4293_v33  ;;  %v5879_v61 = vld [vmem:[#allocation5 + $0x20c] sm:$0xf]  ;;  %v3941_v7 = vor.u32 %v5815_v58, %v3938_v60  ;;  %v4104_v28 = vld [vmem:[#allocation5 + $0x150] sm:$0xf]  ;;  %v5856_v33 = vld [vmem:[#allocation5 + $0x154] sm:$0xf] }
  0x5d   :  { %v4194_v62 = vld [vmem:[#allocation5 + $0x228] sm:$0xf0]  ;;  %v5924_v32 = vld [vmem:[#allocation5 + $0x36c] sm:$0xf0]  ;;  %v4362_v36 = vld [vmem:[#allocation5 + $0x370] sm:$0xf0]  ;;  %v4105_v37 = vor.u32 %v5860_v29, %v4104_v28 }
  0x5e   :  { %1008 = vmatpush.bf16.msrb.mxu0 %v4001_v39  ;;  %1034 = vmatpush.bf16.msrb.mxu2 %v4005_v41  ;;  %v4197_v10 = vor.u32 %v5879_v61, %v4194_v62  ;;  %v4361_v38 = vor.u32 %v5924_v32, %v4360_v30  ;;  %v4109_v39 = vor.u32 %v5856_v33, %v4106_v34  ;;  %v5852_v41 = vld [vmem:[#allocation5 + $0x12c] sm:$0xf0]  ;;  %v4074_v46 = vld [vmem:[#allocation5 + $0x130] sm:$0xf0] }
  0x5f   :  { %v4328_v42 = vld [vmem:[#allocation5 + $0x310] sm:$0xf]  ;;  %v4365_v43 = vor.u32 %v5920_v35, %v4362_v36  ;;  %v5912_v47 = vld [vmem:[#allocation5 + $0x314] sm:$0xf]  ;;  %v4176_v35 = vld [vmem:[#allocation5 + $0x1d8] sm:$0xf] }
  0x60   :  { %1021 = vmatpush.bf16.msrb.mxu1 %v4257_v40  ;;  %1047 = vmatpush.bf16.msrb.mxu3 %v4261_v45  ;;  %v4072_v40 = vld [vmem:[#allocation5 + $0x110] sm:$0xf]  ;;  %v5848_v45 = vld [vmem:[#allocation5 + $0x114] sm:$0xf]  ;;  %v5877_v36 = vld [vmem:[#allocation5 + $0x1f4] sm:$0xf0] }
  0x61   :  { %v5916_v44 = vld [vmem:[#allocation5 + $0x32c] sm:$0xf0]  ;;  %v4330_v48 = vld [vmem:[#allocation5 + $0x330] sm:$0xf0]  ;;  %v4073_v49 = vor.u32 %v5852_v41, %v4072_v40  ;;  %v5873_v40 = vld [vmem:[#allocation5 + $0x1dc] sm:$0xf] }
  0x62   :  { %1009 = vmatpush.bf16.msrb.mxu0 %v3969_v51  ;;  %1035 = vmatpush.bf16.msrb.mxu2 %v3973_v55  ;;  %v4329_v50 = vor.u32 %v5916_v44, %v4328_v42  ;;  %v4077_v51 = vor.u32 %v5848_v45, %v4074_v46  ;;  %v4040_v52 = vld [vmem:[#allocation5 + $0xd0] sm:$0xf]  ;;  %v4333_v55 = vor.u32 %v5912_v47, %v4330_v48  ;;  %v5840_v57 = vld [vmem:[#allocation5 + $0xd4] sm:$0xf]  ;;  %v4178_v41 = vld [vmem:[#allocation5 + $0x1f8] sm:$0xf0] }
  0x63   :  { %v5844_v53 = vld [vmem:[#allocation5 + $0xec] sm:$0xf0]  ;;  %v4042_v58 = vld [vmem:[#allocation5 + $0xf0] sm:$0xf0]  ;;  %v5937_v44 = vld [vmem:[#allocation5 + $0x3dc] sm:$0xf]  ;;  %v4177_v47 = vor.u32 %v5877_v36, %v4176_v35 }
  0x64   :  { %1022 = vmatpush.bf16.msrb.mxu1 %v4225_v54  ;;  %1048 = vmatpush.bf16.msrb.mxu3 %v4229_v59  ;;  %v4296_v54 = vld [vmem:[#allocation5 + $0x2d0] sm:$0xf]  ;;  %v5904_v59 = vld [vmem:[#allocation5 + $0x2d4] sm:$0xf]  ;;  %v4041_v61 = vor.u32 %v5844_v53, %v4040_v52  ;;  %v4045_v63 = vor.u32 %v5840_v57, %v4042_v58  ;;  %v4434_v45 = vld [vmem:[#allocation5 + $0x3f8] sm:$0xf0] }
  0x65   :  { %v5908_v56 = vld [vmem:[#allocation5 + $0x2ec] sm:$0xf0]  ;;  %v4298_v60 = vld [vmem:[#allocation5 + $0x2f0] sm:$0xf0]  ;;  %v4400_v52 = vld [vmem:[#allocation5 + $0x398] sm:$0xf]  ;;  %v4437_v53 = vor.u32 %v5937_v44, %v4434_v45 }
  0x66   :  { %1010 = vmatpush.bf16.msrb.mxu0 %v3937_v2  ;;  %1036 = vmatpush.bf16.msrb.mxu2 %v3941_v7  ;;  %v4297_v62 = vor.u32 %v5908_v56, %v4296_v54  ;;  %v4008_v0 = vld [vmem:[#allocation5 + $0x90] sm:$0xf]  ;;  %v4301_v3 = vor.u32 %v5904_v59, %v4298_v60  ;;  %v5832_v5 = vld [vmem:[#allocation5 + $0x94] sm:$0xf]  ;;  %v5933_v54 = vld [vmem:[#allocation5 + $0x3b4] sm:$0xf0] }
  0x67   :  { %v5836_v1 = vld [vmem:[#allocation5 + $0xac] sm:$0xf0]  ;;  %v5896_v7 = vld [vmem:[#allocation5 + $0x294] sm:$0xf]  ;;  %v4146_v56 = vld [vmem:[#allocation5 + $0x1b8] sm:$0xf0]  ;;  %v4401_v60 = vor.u32 %v5933_v54, %v4400_v52 }
  0x68   :  { %1023 = vmatpush.bf16.msrb.mxu1 %v4193_v6  ;;  %1049 = vmatpush.bf16.msrb.mxu3 %v4197_v10  ;;  %v4264_v2 = vld [vmem:[#allocation5 + $0x290] sm:$0xf]  ;;  %v4010_v6 = vld [vmem:[#allocation5 + $0xb0] sm:$0xf0]  ;;  %v4009_v9 = vor.u32 %v5836_v1, %v4008_v0  ;;  %v5929_v57 = vld [vmem:[#allocation5 + $0x39c] sm:$0xf] }
  0x69   :  { %1011 = vmatmul.bf16.vlgmr.msrb.gmra.mxu0 %v6669_v13  ;;  %1037 = vmatmul.bf16.vlgmr.msrb.gmra.mxu2 %v6669_v13  ;;  %v5900_v4 = vld [vmem:[#allocation5 + $0x2ac] sm:$0xf0]  ;;  %v4266_v8 = vld [vmem:[#allocation5 + $0x2b0] sm:$0xf0]  ;;  %v4402_v58 = vld [vmem:[#allocation5 + $0x3b8] sm:$0xf0] }
  0x6a   :  { %1055 = vmatpush.bf16.msra.mxu0 %v4169_v11  ;;  %1081 = vmatpush.bf16.msra.mxu2 %v4173_v14  ;;  %v4265_v10 = vor.u32 %v5900_v4, %v4264_v2  ;;  %v4013_v11 = vor.u32 %v5832_v5, %v4010_v6  ;;  %v5828_v14 = vld [vmem:[#allocation5 + $0x6c] sm:$0xf0]  ;;  %v4269_v17 = vor.u32 %v5896_v7, %v4266_v8  ;;  %v3978_v20 = vld [vmem:[#allocation5 + $0x70] sm:$0xf0]  ;;  %v4368_v0 = vld [vmem:[#allocation5 + $0x358] sm:$0xf] }
  0x6b   :  { %1024 = vmatmul.bf16.vlgmr.msrb.gmra.mxu1 %v6672_v15  ;;  %1050 = vmatmul.bf16.vlgmr.msrb.gmra.mxu3 %v6672_v15  ;;  %v4232_v16 = vld [vmem:[#allocation5 + $0x250] sm:$0xf]  ;;  %v5888_v21 = vld [vmem:[#allocation5 + $0x254] sm:$0xf]  ;;  %v4405_v1 = vor.u32 %v5929_v57, %v4402_v58  ;;  %v5925_v2 = vld [vmem:[#allocation5 + $0x374] sm:$0xf0] }
  0x6c   :  { %1068 = vmatpush.bf16.msra.mxu1 %v4425_v12  ;;  %1094 = vmatpush.bf16.msra.mxu3 %v4429_v19  ;;  %v3976_v12 = vld [vmem:[#allocation5 + $0x50] sm:$0xf]  ;;  %v5824_v19 = vld [vmem:[#allocation5 + $0x54] sm:$0xf]  ;;  %v4114_v4 = vld [vmem:[#allocation5 + $0x178] sm:$0xf0]  ;;  %v4369_v8 = vor.u32 %v5925_v2, %v4368_v0 }
  0x6d   :  { %v5892_v18 = vld [vmem:[#allocation5 + $0x26c] sm:$0xf0]  ;;  %v4234_v22 = vld [vmem:[#allocation5 + $0x270] sm:$0xf0]  ;;  %v3977_v23 = vor.u32 %v5828_v14, %v3976_v12  ;;  %v5921_v5 = vld [vmem:[#allocation5 + $0x35c] sm:$0xf] }
  0x6e   :  { %1056 = vmatpush.bf16.msra.mxu0 %v4137_v25  ;;  %1082 = vmatpush.bf16.msra.mxu2 %v4141_v27  ;;  %v3944_v24 = vld [vmem:[#allocation5 + $0x10] sm:$0xf]  ;;  %v3981_v27 = vor.u32 %v5824_v19, %v3978_v20  ;;  %v5816_v30 = vld [vmem:[#allocation5 + $0x14] sm:$0xf]  ;;  %v4370_v6 = vld [vmem:[#allocation5 + $0x378] sm:$0xf0] }
  0x6f   :  { %v5820_v25 = vld [vmem:[#allocation5 + $0x2c] sm:$0xf0]  ;;  %v3946_v32 = vld [vmem:[#allocation5 + $0x30] sm:$0xf0]  ;;  %v4336_v12 = vld [vmem:[#allocation5 + $0x318] sm:$0xf]  ;;  %v4373_v14 = vor.u32 %v5921_v5, %v4370_v6 }
  0x70   :  { %1069 = vmatpush.bf16.msra.mxu1 %v4393_v26  ;;  %1095 = vmatpush.bf16.msra.mxu3 %v4397_v31  ;;  %v4233_v26 = vor.u32 %v5892_v18, %v4232_v16  ;;  %v4200_v28 = vld [vmem:[#allocation5 + $0x210] sm:$0xf]  ;;  %v4237_v31 = vor.u32 %v5888_v21, %v4234_v22  ;;  %v5880_v33 = vld [vmem:[#allocation5 + $0x214] sm:$0xf]  ;;  %v5917_v16 = vld [vmem:[#allocation5 + $0x334] sm:$0xf0] }
  0x71   :  { %v5884_v29 = vld [vmem:[#allocation5 + $0x22c] sm:$0xf0]  ;;  %v4202_v34 = vld [vmem:[#allocation5 + $0x230] sm:$0xf0]  ;;  %v4082_v18 = vld [vmem:[#allocation5 + $0x138] sm:$0xf0]  ;;  %v4337_v22 = vor.u32 %v5917_v16, %v4336_v12 }
  0x72   :  { %1057 = vmatpush.bf16.msra.mxu0 %v4105_v37  ;;  %1083 = vmatpush.bf16.msra.mxu2 %v4109_v39  ;;  %v4432_v37 = vld [vmem:[#allocation5 + $0x3d8] sm:$0xf]  ;;  %v4201_v42 = vor.u32 %v5884_v29, %v4200_v28  ;;  %v4205_v46 = vor.u32 %v5880_v33, %v4202_v34  ;;  %v5913_v19 = vld [vmem:[#allocation5 + $0x31c] sm:$0xf]  ;;  %v4552_v5 = vld [vmem:[#allocation8 + $0xe0] sm:$0xf] }
  0x73   :  { %v5941_v39 = vld [vmem:[#allocation5 + $0x3f4] sm:$0xf0]  ;;  %v4338_v20 = vld [vmem:[#allocation5 + $0x338] sm:$0xf0]  ;;  %v4808_v16 = vld [vmem:[#allocation8 + $0x2e0] sm:$0xf] }
  0x74   :  { %1070 = vmatpush.bf16.msra.mxu1 %v4361_v38  ;;  %1096 = vmatpush.bf16.msra.mxu3 %v4365_v43  ;;  %v3945_v38 = vor.u32 %v5820_v25, %v3944_v24  ;;  %v3949_v43 = vor.u32 %v5816_v30, %v3946_v32  ;;  %v4433_v48 = vor.u32 %v5941_v39, %v4432_v37  ;;  %v4048_v24 = vld [vmem:[#allocation5 + $0xd8] sm:$0xf]  ;;  %v5841_v29 = vld [vmem:[#allocation5 + $0xdc] sm:$0xf] }
  0x75   :  { %v5845_v25 = vld [vmem:[#allocation5 + $0xf4] sm:$0xf0]  ;;  %v4050_v30 = vld [vmem:[#allocation5 + $0xf8] sm:$0xf0] }
  0x76   :  { %1058 = vmatpush.bf16.msra.mxu0 %v4073_v49  ;;  %1084 = vmatpush.bf16.msra.mxu2 %v4077_v51  ;;  %v4181_v49 = vor.u32 %v5873_v40, %v4178_v41  ;;  %v5869_v51 = vld [vmem:[#allocation5 + $0x1b4] sm:$0xf0]  ;;  %v4306_v32 = vld [vmem:[#allocation5 + $0x2f8] sm:$0xf0]  ;;  %v4049_v33 = vor.u32 %v5845_v25, %v4048_v24  ;;  %v4053_v35 = vor.u32 %v5841_v29, %v4050_v30  ;;  %v4520_v25 = vld [vmem:[#allocation8 + $0xa0] sm:$0xf] }
  0x77   :  { %v5909_v28 = vld [vmem:[#allocation5 + $0x2f4] sm:$0xf0]  ;;  %v5833_v41 = vld [vmem:[#allocation5 + $0x9c] sm:$0xf] }
  0x78   :  { %1071 = vmatpush.bf16.msra.mxu1 %v4329_v50  ;;  %1097 = vmatpush.bf16.msra.mxu3 %v4333_v55  ;;  %v4144_v50 = vld [vmem:[#allocation5 + $0x198] sm:$0xf]  ;;  %v5865_v55 = vld [vmem:[#allocation5 + $0x19c] sm:$0xf] }
  0x79   :  { %v4145_v59 = vor.u32 %v5869_v51, %v4144_v50  ;;  %v4016_v36 = vld [vmem:[#allocation5 + $0x98] sm:$0xf]  ;;  %v4274_v44 = vld [vmem:[#allocation5 + $0x2b8] sm:$0xf0] }
  0x7a   :  { %1059 = vmatpush.bf16.msra.mxu0 %v4041_v61  ;;  %1085 = vmatpush.bf16.msra.mxu2 %v4045_v63  ;;  %v4149_v61 = vor.u32 %v5865_v55, %v4146_v56  ;;  %v5861_v63 = vld [vmem:[#allocation5 + $0x174] sm:$0xf0]  ;;  %v3986_v54 = vld [vmem:[#allocation5 + $0x78] sm:$0xf0] }
  0x7b   :  { %v5837_v37 = vld [vmem:[#allocation5 + $0xb4] sm:$0xf0]  ;;  %v5889_v55 = vld [vmem:[#allocation5 + $0x25c] sm:$0xf] }
  0x7c   :  { %1072 = vmatpush.bf16.msra.mxu1 %v4297_v62  ;;  %1098 = vmatpush.bf16.msra.mxu3 %v4301_v3  ;;  %v4112_v62 = vld [vmem:[#allocation5 + $0x158] sm:$0xf]  ;;  %v5857_v3 = vld [vmem:[#allocation5 + $0x15c] sm:$0xf]  ;;  %v4017_v45 = vor.u32 %v5837_v37, %v4016_v36  ;;  %v4488_v37 = vld [vmem:[#allocation8 + $0x60] sm:$0xf] }
  0x7d   :  { %v4113_v7 = vor.u32 %v5861_v63, %v4112_v62  ;;  %v5901_v40 = vld [vmem:[#allocation5 + $0x2b4] sm:$0xf0]  ;;  %v4242_v56 = vld [vmem:[#allocation5 + $0x278] sm:$0xf0] }
  0x7e   :  { %1060 = vmatpush.bf16.msra.mxu0 %v4009_v9  ;;  %1086 = vmatpush.bf16.msra.mxu2 %v4013_v11  ;;  %v4117_v9 = vor.u32 %v5857_v3, %v4114_v4  ;;  %v5853_v11 = vld [vmem:[#allocation5 + $0x134] sm:$0xf0]  ;;  %v4245_v0 = vor.u32 %v5889_v55, %v4242_v56  ;;  %v3954_v2 = vld [vmem:[#allocation5 + $0x38] sm:$0xf0] }
  0x7f   :  { %v4240_v50 = vld [vmem:[#allocation5 + $0x258] sm:$0xf]  ;;  %v5881_v3 = vld [vmem:[#allocation5 + $0x21c] sm:$0xf] }
  0x80   :  { %1073 = vmatpush.bf16.msra.mxu1 %v4265_v10  ;;  %1099 = vmatpush.bf16.msra.mxu3 %v4269_v17  ;;  %v4080_v10 = vld [vmem:[#allocation5 + $0x118] sm:$0xf]  ;;  %v5849_v17 = vld [vmem:[#allocation5 + $0x11c] sm:$0xf] }
  0x81   :  { %v4081_v21 = vor.u32 %v5853_v11, %v4080_v10  ;;  %v5893_v52 = vld [vmem:[#allocation5 + $0x274] sm:$0xf0]  ;;  %v4210_v4 = vld [vmem:[#allocation5 + $0x238] sm:$0xf0] }
  0x82   :  { %1061 = vmatpush.bf16.msra.mxu0 %v3977_v23  ;;  %1087 = vmatpush.bf16.msra.mxu2 %v3981_v27  ;;  %v4085_v23 = vor.u32 %v5849_v17, %v4082_v18  ;;  %v4341_v27 = vor.u32 %v5913_v19, %v4338_v20  ;;  %v3952_v58 = vld [vmem:[#allocation5 + $0x18] sm:$0xf]  ;;  %v4213_v12 = vor.u32 %v5881_v3, %v4210_v4  ;;  %v4536_v18 = vld [vmem:[#allocation8 + $0xc0] sm:$0xf] }
  0x83   :  { %v4208_v62 = vld [vmem:[#allocation5 + $0x218] sm:$0xf]  ;;  %v4568_v4 = vld [vmem:[#allocation8 + $0x100] sm:$0xf] }
  0x84   :  { %1074 = vmatpush.bf16.msra.mxu1 %v4233_v26  ;;  %1100 = vmatpush.bf16.msra.mxu3 %v4237_v31  ;;  %v4304_v26 = vld [vmem:[#allocation5 + $0x2d8] sm:$0xf]  ;;  %v5905_v31 = vld [vmem:[#allocation5 + $0x2dc] sm:$0xf] }
  0x85   :  { %v4305_v34 = vor.u32 %v5909_v28, %v4304_v26  ;;  %v4309_v39 = vor.u32 %v5905_v31, %v4306_v32  ;;  %v5885_v63 = vld [vmem:[#allocation5 + $0x234] sm:$0xf0]  ;;  %v4648_v28 = vld [vmem:[#allocation8 + $0x1a0] sm:$0xf] }
  0x86   :  { %1062 = vmatpush.bf16.msra.mxu0 %v3945_v38  ;;  %1088 = vmatpush.bf16.msra.mxu2 %v3949_v43  ;;  %v4272_v38 = vld [vmem:[#allocation5 + $0x298] sm:$0xf]  ;;  %v5897_v43 = vld [vmem:[#allocation5 + $0x29c] sm:$0xf]  ;;  %v4209_v10 = vor.u32 %v5885_v63, %v4208_v62  ;;  %v4504_v31 = vld [vmem:[#allocation8 + $0x80] sm:$0xf] }
  0x87   :  { %v4277_v51 = vor.u32 %v5897_v43, %v4274_v44  ;;  %v5972_v6 = vld [vmem:[#allocation8 + $0xec] sm:$0xf0]  ;;  %v4600_v44 = vld [vmem:[#allocation8 + $0x140] sm:$0xf] }
  0x88   :  { %1075 = vmatpush.bf16.msra.mxu1 %v4201_v42  ;;  %1101 = vmatpush.bf16.msra.mxu3 %v4205_v46  ;;  %v4018_v42 = vld [vmem:[#allocation5 + $0xb8] sm:$0xf0]  ;;  %v4273_v46 = vor.u32 %v5901_v40, %v4272_v38  ;;  %v6036_v17 = vld [vmem:[#allocation8 + $0x2ec] sm:$0xf0]  ;;  %v4936_v62 = vld [vmem:[#allocation8 + $0x3e0] sm:$0xf] }
  0x89   :  { %1063 = vmatmul.bf16.vlgmr.msra.gmra.mxu0 %v6669_v13  ;;  %1089 = vmatmul.bf16.vlgmr.msra.gmra.mxu2 %v6669_v13  ;;  %v5968_v19 = vld [vmem:[#allocation8 + $0xcc] sm:$0xf0] }
  0x8a   :  { %1107 = vmatpush.bf16.msrb.mxu0 %v4177_v47  ;;  %1133 = vmatpush.bf16.msrb.mxu2 %v4181_v49  ;;  %v4021_v47 = vor.u32 %v5833_v41, %v4018_v42  ;;  %v5829_v49 = vld [vmem:[#allocation5 + $0x74] sm:$0xf0]  ;;  %v4537_v24 = vor.u32 %v5968_v19, %v4536_v18  ;;  %v5032_v19 = vld [vmem:[#allocation8 + $0x4a0] sm:$0xf] }
  0x8b   :  { %1076 = vmatmul.bf16.vlgmr.msra.gmra.mxu1 %v6672_v15  ;;  %1102 = vmatmul.bf16.vlgmr.msra.gmra.mxu3 %v6672_v15  ;;  %v5964_v26 = vld [vmem:[#allocation8 + $0xac] sm:$0xf0] }
  0x8c   :  { %1120 = vmatpush.bf16.msrb.mxu1 %v4433_v48  ;;  %1146 = vmatpush.bf16.msrb.mxu3 %v4437_v53  ;;  %v3984_v48 = vld [vmem:[#allocation5 + $0x58] sm:$0xf]  ;;  %v5825_v53 = vld [vmem:[#allocation5 + $0x5c] sm:$0xf]  ;;  %v4521_v30 = vor.u32 %v5964_v26, %v4520_v25  ;;  %v4904_v26 = vld [vmem:[#allocation8 + $0x3a0] sm:$0xf] }
  0x8d   :  { %v3985_v57 = vor.u32 %v5829_v49, %v3984_v48  ;;  %v5996_v29 = vld [vmem:[#allocation8 + $0x1ac] sm:$0xf0] }
  0x8e   :  { %1108 = vmatpush.bf16.msrb.mxu0 %v4145_v59  ;;  %1134 = vmatpush.bf16.msrb.mxu2 %v4149_v61  ;;  %v4241_v59 = vor.u32 %v5893_v52, %v4240_v50  ;;  %v5821_v61 = vld [vmem:[#allocation5 + $0x34] sm:$0xf0] }
  0x8f   :  { %v5960_v32 = vld [vmem:[#allocation8 + $0x8c] sm:$0xf0] }
  0x90   :  { %1121 = vmatpush.bf16.msrb.mxu1 %v4401_v60  ;;  %1147 = vmatpush.bf16.msrb.mxu3 %v4405_v1  ;;  %v3989_v60 = vor.u32 %v5825_v53, %v3986_v54  ;;  %v5817_v1 = vld [vmem:[#allocation5 + $0x1c] sm:$0xf]  ;;  %v4505_v36 = vor.u32 %v5960_v32, %v4504_v31  ;;  %v5956_v38 = vld [vmem:[#allocation8 + $0x6c] sm:$0xf0]  ;;  %v5064_v53 = vld [vmem:[#allocation8 + $0x4e0] sm:$0xf] }
  0x91   :  { %v3957_v11 = vor.u32 %v5817_v1, %v3954_v2  ;;  %v5988_v40 = vld [vmem:[#allocation8 + $0x16c] sm:$0xf0]  ;;  %v4489_v41 = vor.u32 %v5956_v38, %v4488_v37  ;;  %v4584_v54 = vld [vmem:[#allocation8 + $0x120] sm:$0xf] }
  0x92   :  { %1109 = vmatpush.bf16.msrb.mxu0 %v4113_v7  ;;  %1135 = vmatpush.bf16.msrb.mxu2 %v4117_v9  ;;  %v3953_v7 = vor.u32 %v5821_v61, %v3952_v58  ;;  %v6004_v9 = vld [vmem:[#allocation8 + $0x1ec] sm:$0xf0]  ;;  %v4792_v58 = vld [vmem:[#allocation8 + $0x2c0] sm:$0xf] }
  0x93   :  { %v5952_v42 = vld [vmem:[#allocation8 + $0x4c] sm:$0xf0]  ;;  %v5048_v2 = vld [vmem:[#allocation8 + $0x4c0] sm:$0xf] }
  0x94   :  { %1122 = vmatpush.bf16.msrb.mxu1 %v4369_v8  ;;  %1148 = vmatpush.bf16.msrb.mxu3 %v4373_v14  ;;  %v4680_v8 = vld [vmem:[#allocation8 + $0x1e0] sm:$0xf]  ;;  %v4553_v14 = vor.u32 %v5972_v6, %v4552_v5  ;;  %v5948_v48 = vld [vmem:[#allocation8 + $0x2c] sm:$0xf0] }
  0x95   :  { %v4681_v20 = vor.u32 %v6004_v9, %v4680_v8  ;;  %v5944_v52 = vld [vmem:[#allocation8 + $0xc] sm:$0xf0]  ;;  %v4776_v6 = vld [vmem:[#allocation8 + $0x2a0] sm:$0xf] }
  0x96   :  { %1110 = vmatpush.bf16.msrb.mxu0 %v4081_v21  ;;  %1136 = vmatpush.bf16.msrb.mxu2 %v4085_v23  ;;  %v4664_v21 = vld [vmem:[#allocation8 + $0x1c0] sm:$0xf]  ;;  %v4809_v23 = vor.u32 %v6036_v17, %v4808_v16  ;;  %v5980_v55 = vld [vmem:[#allocation8 + $0x12c] sm:$0xf0] }
  0x97   :  { %v6100_v56 = vld [vmem:[#allocation8 + $0x4ec] sm:$0xf0] }
  0x98   :  { %1123 = vmatpush.bf16.msrb.mxu1 %v4337_v22  ;;  %1149 = vmatpush.bf16.msrb.mxu3 %v4341_v27  ;;  %v6000_v22 = vld [vmem:[#allocation8 + $0x1cc] sm:$0xf0] }
  0x99   :  { %v4665_v27 = vor.u32 %v6000_v22, %v4664_v21  ;;  %v6068_v63 = vld [vmem:[#allocation8 + $0x3ec] sm:$0xf0]  ;;  %v4760_v21 = vld [vmem:[#allocation8 + $0x280] sm:$0xf] }
  0x9a   :  { %1111 = vmatpush.bf16.msrb.mxu0 %v4049_v33  ;;  %1137 = vmatpush.bf16.msrb.mxu2 %v4053_v35  ;;  %v4649_v33 = vor.u32 %v5996_v29, %v4648_v28  ;;  %v5992_v35 = vld [vmem:[#allocation8 + $0x18c] sm:$0xf0]  ;;  %v4937_v1 = vor.u32 %v6068_v63, %v4936_v62  ;;  %v4856_v63 = vld [vmem:[#allocation8 + $0x340] sm:$0xf] }
  0x9b   :  { %v6096_v3 = vld [vmem:[#allocation8 + $0x4cc] sm:$0xf0] }
  0x9c   :  { %1124 = vmatpush.bf16.msrb.mxu1 %v4305_v34  ;;  %1150 = vmatpush.bf16.msrb.mxu3 %v4309_v39  ;;  %v4632_v34 = vld [vmem:[#allocation8 + $0x180] sm:$0xf]  ;;  %v5976_v5 = vld [vmem:[#allocation8 + $0x10c] sm:$0xf0]  ;;  %v5049_v17 = vor.u32 %v6096_v3, %v5048_v2 }
  0x9d   :  { %v4633_v39 = vor.u32 %v5992_v35, %v4632_v34  ;;  %v4569_v8 = vor.u32 %v5976_v5, %v4568_v4  ;;  %v6064_v16 = vld [vmem:[#allocation8 + $0x3cc] sm:$0xf0]  ;;  %v5016_v35 = vld [vmem:[#allocation8 + $0x480] sm:$0xf] }
  0x9e   :  { %1112 = vmatpush.bf16.msrb.mxu0 %v4017_v45  ;;  %1138 = vmatpush.bf16.msrb.mxu2 %v4021_v47  ;;  %v5984_v45 = vld [vmem:[#allocation8 + $0x14c] sm:$0xf0]  ;;  %v4456_v47 = vld [vmem:[#allocation8 + $0x20] sm:$0xf] }
  0x9f   :  { %v4601_v49 = vor.u32 %v5984_v45, %v4600_v44  ;;  %v4457_v50 = vor.u32 %v5948_v48, %v4456_v47  ;;  %v6024_v22 = vld [vmem:[#allocation8 + $0x28c] sm:$0xf0]  ;;  %v4728_v44 = vld [vmem:[#allocation8 + $0x240] sm:$0xf] }
  0xa0   :  { %1125 = vmatpush.bf16.msrb.mxu1 %v4273_v46  ;;  %1151 = vmatpush.bf16.msrb.mxu3 %v4277_v51  ;;  %v4440_v51 = vld [vmem:[#allocation8] sm:$0xf]  ;;  %v6128_v25 = vld [vmem:[#allocation8 + $0x5cc] sm:$0xf0] }
  0xa1   :  { %v4441_v61 = vor.u32 %v5944_v52, %v4440_v51  ;;  %v6020_v32 = vld [vmem:[#allocation8 + $0x26c] sm:$0xf0]  ;;  %v4968_v5 = vld [vmem:[#allocation8 + $0x420] sm:$0xf] }
  0xa2   :  { %1113 = vmatpush.bf16.msrb.mxu0 %v3985_v57  ;;  %1139 = vmatpush.bf16.msrb.mxu2 %v3989_v60  ;;  %v4585_v57 = vor.u32 %v5980_v55, %v4584_v54  ;;  %v6124_v34 = vld [vmem:[#allocation8 + $0x5ac] sm:$0xf0]  ;;  %v4984_v55 = vld [vmem:[#allocation8 + $0x440] sm:$0xf] }
  0xa3   :  { %v6016_v45 = vld [vmem:[#allocation8 + $0x24c] sm:$0xf0] }
  0xa4   :  { %1126 = vmatpush.bf16.msrb.mxu1 %v4241_v59  ;;  %1152 = vmatpush.bf16.msrb.mxu3 %v4245_v0  ;;  %v6032_v59 = vld [vmem:[#allocation8 + $0x2cc] sm:$0xf0]  ;;  %v5065_v0 = vor.u32 %v6100_v56, %v5064_v53  ;;  %v4729_v47 = vor.u32 %v6016_v45, %v4728_v44  ;;  %v5080_v44 = vld [vmem:[#allocation8 + $0x500] sm:$0xf] }
  0xa5   :  { %v4793_v60 = vor.u32 %v6032_v59, %v4792_v58  ;;  %v6120_v48 = vld [vmem:[#allocation8 + $0x58c] sm:$0xf0]  ;;  %v5128_v59 = vld [vmem:[#allocation8 + $0x560] sm:$0xf] }
  0xa6   :  { %1114 = vmatpush.bf16.msrb.mxu0 %v3953_v7  ;;  %1140 = vmatpush.bf16.msrb.mxu2 %v3957_v11  ;;  %v6028_v7 = vld [vmem:[#allocation8 + $0x2ac] sm:$0xf0] }
  0xa7   :  { %v4777_v9 = vor.u32 %v6028_v7, %v4776_v6  ;;  %v6132_v11 = vld [vmem:[#allocation8 + $0x5ec] sm:$0xf0] }
  0xa8   :  { %1127 = vmatpush.bf16.msrb.mxu1 %v4209_v10  ;;  %1153 = vmatpush.bf16.msrb.mxu3 %v4213_v12  ;;  %v5192_v10 = vld [vmem:[#allocation8 + $0x5e0] sm:$0xf]  ;;  %v6052_v51 = vld [vmem:[#allocation8 + $0x36c] sm:$0xf0] }
  0xa9   :  { %1115 = vmatmul.bf16.vlgmr.msrb.gmra.mxu0 %v6669_v13  ;;  %1141 = vmatmul.bf16.vlgmr.msrb.gmra.mxu2 %v6669_v13  ;;  %v4616_v13 = vld [vmem:[#allocation8 + $0x160] sm:$0xf]  ;;  %v5193_v12 = vor.u32 %v6132_v11, %v5192_v10  ;;  %v6080_v56 = vld [vmem:[#allocation8 + $0x44c] sm:$0xf0] }
  0xaa   :  { %2721 = vmatpush.bf16.msra.mxu0 %v4553_v14  ;;  %2747 = vmatpush.bf16.msra.mxu2 %v4809_v23  ;;  %v4617_v43 = vor.u32 %v5988_v40, %v4616_v13  ;;  %v4920_v14 = vld [vmem:[#allocation8 + $0x3c0] sm:$0xf]  ;;  %v6056_v13 = vld [vmem:[#allocation8 + $0x38c] sm:$0xf0]  ;;  %v6689_v40 = vld [vmem:[#allocation7] sm:$0xff]  ;;  %v4985_v3 = vor.u32 %v6080_v56, %v4984_v55 }
  0xab   :  { %1128 = vmatmul.bf16.vlgmr.msrb.gmra.mxu1 %v6672_v15  ;;  %1154 = vmatmul.bf16.vlgmr.msrb.gmra.mxu3 %v6672_v15  ;;  %v4472_v15 = vld [vmem:[#allocation8 + $0x40] sm:$0xf]  ;;  %v4921_v18 = vor.u32 %v6064_v16, %v4920_v14  ;;  %v289_v52 = vperm.slane %v6689_v40, 0  ;;  %v6012_v58 = vld [vmem:[#allocation8 + $0x22c] sm:$0xf0]  ;;  %v290_v2 = vperm.slane %v6689_v40, 1 }
  0xac   :  { %2734 = vmatpush.bf16.msra.mxu1 %v4681_v20  ;;  %v4473_v46 = vor.u32 %v5952_v42, %v4472_v15  ;;  %2760 = vmatpush.bf16.msra.mxu3 %v4937_v1  ;;  %v6092_v20 = vld [vmem:[#allocation8 + $0x4ac] sm:$0xf0]  ;;  %v5176_v23 = vld [vmem:[#allocation8 + $0x5c0] sm:$0xf]  ;;  %v5966_v56 = vld [vmem:[#allocation8 + $0xc4] sm:$0xf] }
  0xad   :  { %v5177_v28 = vor.u32 %v6128_v25, %v5176_v23  ;;  %v5033_v31 = vor.u32 %v6092_v20, %v5032_v19  ;;  %v5000_v42 = vld [vmem:[#allocation8 + $0x460] sm:$0xf]  ;;  %v6076_v6 = vld [vmem:[#allocation8 + $0x42c] sm:$0xf0] }
  0xae   :  { %2722 = vmatpush.bf16.msra.mxu0 %v4537_v24  ;;  %2748 = vmatpush.bf16.msra.mxu2 %v4793_v60  ;;  %v4761_v24 = vor.u32 %v6024_v22, %v4760_v21  ;;  %v6008_v10 = vld [vmem:[#allocation8 + $0x20c] sm:$0xf0]  ;;  %v5112_v11 = vld [vmem:[#allocation8 + $0x540] sm:$0xf]  ;;  %v4969_v21 = vor.u32 %v6076_v6, %v4968_v5 }
  0xaf   :  { %v6112_v14 = vld [vmem:[#allocation8 + $0x54c] sm:$0xf0]  ;;  %v5320_v23 = vld [vmem:[#allocation8 + $0x6e0] sm:$0xf] }
  0xb0   :  { %2735 = vmatpush.bf16.msra.mxu1 %v4665_v27  ;;  %2761 = vmatpush.bf16.msra.mxu3 %v4921_v18  ;;  %v6060_v27 = vld [vmem:[#allocation8 + $0x3ac] sm:$0xf0]  ;;  %v4840_v18 = vld [vmem:[#allocation8 + $0x320] sm:$0xf] }
  0xb1   :  { %v4905_v29 = vor.u32 %v6060_v27, %v4904_v26  ;;  %v6044_v19 = vld [vmem:[#allocation8 + $0x32c] sm:$0xf0]  ;;  %v4952_v26 = vld [vmem:[#allocation8 + $0x400] sm:$0xf] }
  0xb2   :  { %2723 = vmatpush.bf16.msra.mxu0 %v4521_v30  ;;  %2749 = vmatpush.bf16.msra.mxu2 %v4777_v9  ;;  %v4744_v30 = vld [vmem:[#allocation8 + $0x260] sm:$0xf]  ;;  %v4841_v22 = vor.u32 %v6044_v19, %v4840_v18  ;;  %v6072_v27 = vld [vmem:[#allocation8 + $0x40c] sm:$0xf0]  ;;  %v5958_v19 = vld [vmem:[#allocation8 + $0x84] sm:$0xf] }
  0xb3   :  { %v4745_v37 = vor.u32 %v6020_v32, %v4744_v30  ;;  %v4696_v9 = vld [vmem:[#allocation8 + $0x200] sm:$0xf]  ;;  %v6108_v30 = vld [vmem:[#allocation8 + $0x52c] sm:$0xf0]  ;;  %v5970_v32 = vld [vmem:[#allocation8 + $0xe4] sm:$0xf] }
  0xb4   :  { %2736 = vmatpush.bf16.msra.mxu1 %v4649_v33  ;;  %v5160_v33 = vld [vmem:[#allocation8 + $0x5a0] sm:$0xf]  ;;  %2762 = vmatpush.bf16.msra.mxu3 %v4905_v29  ;;  %v6104_v45 = vld [vmem:[#allocation8 + $0x50c] sm:$0xf0] }
  0xb5   :  { %v5161_v38 = vor.u32 %v6124_v34, %v5160_v33  ;;  %v5096_v29 = vld [vmem:[#allocation8 + $0x520] sm:$0xf]  ;;  %v6188_v5 = vld [vmem:[#allocation8 + $0x7ac] sm:$0xf0] }
  0xb6   :  { %2724 = vmatpush.bf16.msra.mxu0 %v4505_v36  ;;  %2750 = vmatpush.bf16.msra.mxu2 %v4761_v24  ;;  %v6088_v36 = vld [vmem:[#allocation8 + $0x48c] sm:$0xf0]  ;;  %v5097_v33 = vor.u32 %v6108_v30, %v5096_v29  ;;  %v4824_v34 = vld [vmem:[#allocation8 + $0x300] sm:$0xf] }
  0xb7   :  { %v6164_v24 = vld [vmem:[#allocation8 + $0x6ec] sm:$0xf0] }
  0xb8   :  { %2737 = vmatpush.bf16.msra.mxu1 %v4633_v39  ;;  %v4888_v39 = vld [vmem:[#allocation8 + $0x380] sm:$0xf]  ;;  %v6184_v29 = vld [vmem:[#allocation8 + $0x78c] sm:$0xf0] }
  0xb9   :  { %v4889_v15 = vor.u32 %v6056_v13, %v4888_v39  ;;  %v4554_v39 = vld [vmem:[#allocation8 + $0xf0] sm:$0xf0] }
  0xba   :  { %2725 = vmatpush.bf16.msra.mxu0 %v4489_v41  ;;  %v5017_v41 = vor.u32 %v6088_v36, %v5016_v35  ;;  %2751 = vmatpush.bf16.msra.mxu2 %v4745_v37  ;;  %v6040_v35 = vld [vmem:[#allocation8 + $0x30c] sm:$0xf0] }
  0xbb   :  { %2763 = vmatpush.bf16.msra.mxu3 %v4889_v15  ;;  %v4825_v13 = vor.u32 %v6040_v35, %v4824_v34  ;;  %v6160_v15 = vld [vmem:[#allocation8 + $0x6cc] sm:$0xf0] }
  0xbc   :  { %2738 = vmatpush.bf16.msra.mxu1 %v4617_v43  ;;  %v6084_v43 = vld [vmem:[#allocation8 + $0x46c] sm:$0xf0] }
  0xbd   :  { %v5001_v53 = vor.u32 %v6084_v43, %v5000_v42 }
  0xbe   :  { %2726 = vmatpush.bf16.msra.mxu0 %v4473_v46  ;;  %v5144_v46 = vld [vmem:[#allocation8 + $0x580] sm:$0xf]  ;;  %2752 = vmatpush.bf16.msra.mxu2 %v4729_v47 }
  0xbf   :  { %v5448_v47 = vld [vmem:[#allocation8 + $0x7e0] sm:$0xf] }
  0xc0   :  { %2739 = vmatpush.bf16.msra.mxu1 %v4601_v49  ;;  %v5145_v49 = vor.u32 %v6120_v48, %v5144_v46  ;;  %v5081_v46 = vor.u32 %v6104_v45, %v5080_v44  ;;  %v6196_v48 = vld [vmem:[#allocation8 + $0x7ec] sm:$0xf0] }
  0xc1   :  { %v6180_v44 = vld [vmem:[#allocation8 + $0x76c] sm:$0xf0] }
  0xc2   :  { %2727 = vmatpush.bf16.msra.mxu0 %v4457_v50  ;;  %v4872_v50 = vld [vmem:[#allocation8 + $0x360] sm:$0xf] }
  0xc3   :  { %v4873_v54 = vor.u32 %v6052_v51, %v4872_v50  ;;  %v4557_v50 = vor.u32 %v5970_v32, %v4554_v39  ;;  %v5449_v51 = vor.u32 %v6196_v48, %v5448_v47 }
  0xc4   :  { %2740 = vmatpush.bf16.msra.mxu1 %v4585_v57  ;;  %v4712_v57 = vld [vmem:[#allocation8 + $0x220] sm:$0xf] }
  0xc5   :  { %2764 = vmatpush.bf16.msra.mxu3 %v4873_v54  ;;  %v4713_v60 = vor.u32 %v6012_v58, %v4712_v57  ;;  %v4538_v57 = vld [vmem:[#allocation8 + $0xd0] sm:$0xf0] }
  0xc6   :  { %2728 = vmatpush.bf16.msra.mxu0 %v4441_v61  ;;  %v6116_v61 = vld [vmem:[#allocation8 + $0x56c] sm:$0xf0]  ;;  %v960_v1 = vpop.f32.mrf.mxu0 }
  0xc7   :  { %v5129_v62 = vor.u32 %v6116_v61, %v5128_v59  ;;  %v961_v7 = vadd.f32 %v960_v1, %v289_v52  ;;  %2753 = vmatpush.bf16.msra.mxu2 %v4713_v60  ;;  %v5288_v52 = vld [vmem:[#allocation8 + $0x6a0] sm:$0xf]  ;;  %v6002_v60 = vld [vmem:[#allocation8 + $0x1e4] sm:$0xf]  ;;  %v4682_v61 = vld [vmem:[#allocation8 + $0x1f0] sm:$0xf0] }
  0xc8   :  { %2741 = vmatpush.bf16.msra.mxu1 %v4569_v8  ;;  %v973_v8 = vpop.f32.mrf.mxu1  ;;  %v5432_v59 = vld [vmem:[#allocation8 + $0x7c0] sm:$0xf]  ;;  %v6152_v1 = vld [vmem:[#allocation8 + $0x68c] sm:$0xf0] }
  0xc9   :  { %v974_v16 = vadd.f32 %v973_v8, %v961_v7  ;;  %v4685_v7 = vor.u32 %v6002_v60, %v4682_v61  ;;  %v5962_v8 = vld [vmem:[#allocation8 + $0xa4] sm:$0xf]  ;;  %v5368_v60 = vld [vmem:[#allocation8 + $0x740] sm:$0xf]  ;;  %v6176_v61 = vld [vmem:[#allocation8 + $0x74c] sm:$0xf0] }
  0xca   :  { %2773 = vmatpush.bf16.msrb.mxu0 %v5065_v0  ;;  %v6048_v0 = vld [vmem:[#allocation8 + $0x34c] sm:$0xf0] }
  0xcb   :  { %v4857_v4 = vor.u32 %v6048_v0, %v4856_v63  ;;  %6305 = vtanh.f32 %v974_v16  ;;  %v5272_v0 = vld [vmem:[#allocation8 + $0x680] sm:$0xf] }
  0xcc   :  { %2786 = vmatpush.bf16.msrb.mxu1 %v5193_v12  ;;  %v4697_v12 = vor.u32 %v6008_v10, %v4696_v9  ;;  %v986_v20 = vpop.f32.mrf.mxu2  ;;  %v4522_v9 = vld [vmem:[#allocation8 + $0xb0] sm:$0xf0]  ;;  %v5273_v10 = vor.u32 %v6152_v1, %v5272_v0  ;;  %v5946_v0 = vld [vmem:[#allocation8 + $0x24] sm:$0xf] }
  0xcd   :  { %2765 = vmatpush.bf16.msra.mxu3 %v4857_v4  ;;  %v987_v25 = vadd.f32 %v986_v20, %v290_v2  ;;  %v5416_v4 = vld [vmem:[#allocation8 + $0x7a0] sm:$0xf]  ;;  %v4525_v18 = vor.u32 %v5962_v8, %v4522_v9  ;;  %v4458_v1 = vld [vmem:[#allocation8 + $0x30] sm:$0xf0] }
  0xce   :  { %2774 = vmatpush.bf16.msrb.mxu0 %v5049_v17  ;;  %v5113_v17 = vor.u32 %v6112_v14, %v5112_v11  ;;  %2754 = vmatpush.bf16.msra.mxu2 %v4697_v12  ;;  %v962_v36 = vpop.f32.mrf.mxu0  ;;  %v5998_v12 = vld [vmem:[#allocation8 + $0x1c4] sm:$0xf]  ;;  %v4666_v14 = vld [vmem:[#allocation8 + $0x1d0] sm:$0xf0]  ;;  %v5417_v16 = vor.u32 %v6188_v5, %v5416_v4 }
  0xcf   :  { %v4669_v20 = vor.u32 %v5998_v12, %v4666_v14  ;;  %v4490_v36 = vld [vmem:[#allocation8 + $0x70] sm:$0xf0]  ;;  %v5982_v5 = vld [vmem:[#allocation8 + $0x144] sm:$0xf] }
  0xd0   :  { %2787 = vmatpush.bf16.msrb.mxu1 %v5177_v28  ;;  %v5321_v28 = vor.u32 %v6164_v24, %v5320_v23  ;;  %v975_v42 = vpop.f32.mrf.mxu1  ;;  %v6148_v23 = vld [vmem:[#allocation8 + $0x66c] sm:$0xf0]  ;;  %v5994_v24 = vld [vmem:[#allocation8 + $0x1a4] sm:$0xf]  ;;  %v4602_v9 = vld [vmem:[#allocation8 + $0x150] sm:$0xf0] }
  0xd1   :  { %2766 = vmatpush.bf16.msra.mxu3 %v4841_v22  ;;  %v5256_v22 = vld [vmem:[#allocation8 + $0x660] sm:$0xf]  ;;  %v292_v42 = vperm.slane %v6689_v40, 3  ;;  %v6034_v12 = vld [vmem:[#allocation8 + $0x2e4] sm:$0xf] }
  0xd2   :  { %2775 = vmatpush.bf16.msrb.mxu0 %v5033_v31  ;;  %v999_v31 = vpop.f32.mrf.mxu3  ;;  %2799 = vmatpush.bf16.msrb.mxu2 %v5321_v28  ;;  %v5400_v28 = vld [vmem:[#allocation8 + $0x780] sm:$0xf]  ;;  %v4810_v14 = vld [vmem:[#allocation8 + $0x2f0] sm:$0xf0] }
  0xd3   :  { %v1000_v37 = vadd.f32 %v999_v31, %v987_v25  ;;  %v4650_v25 = vld [vmem:[#allocation8 + $0x1b0] sm:$0xf0]  ;;  %v5401_v34 = vor.u32 %v6184_v29, %v5400_v28  ;;  %v6030_v28 = vld [vmem:[#allocation8 + $0x2c4] sm:$0xf] }
  0xd4   :  { %2788 = vmatpush.bf16.msrb.mxu1 %v5161_v38  ;;  %v4953_v38 = vor.u32 %v6072_v27, %v4952_v26  ;;  %v988_v55 = vpop.f32.mrf.mxu2  ;;  %v5257_v26 = vor.u32 %v6148_v23, %v5256_v22  ;;  %v4653_v35 = vor.u32 %v5994_v24, %v4650_v25  ;;  %v5942_v22 = vld [vmem:[#allocation8 + $0x4] sm:$0xf]  ;;  %v4442_v23 = vld [vmem:[#allocation8 + $0x10] sm:$0xf0] }
  0xd5   :  { %6307 = vtanh.f32 %v1000_v37  ;;  %2767 = vmatpush.bf16.msra.mxu3 %v4825_v13  ;;  %v5240_v37 = vld [vmem:[#allocation8 + $0x640] sm:$0xf]  ;;  %v5990_v13 = vld [vmem:[#allocation8 + $0x184] sm:$0xf]  ;;  %v4618_v55 = vld [vmem:[#allocation8 + $0x170] sm:$0xf0] }
  0xd6   :  { %2776 = vmatpush.bf16.msrb.mxu0 %v5017_v41  ;;  %v5304_v41 = vld [vmem:[#allocation8 + $0x6c0] sm:$0xf]  ;;  %v5978_v25 = vld [vmem:[#allocation8 + $0x124] sm:$0xf]  ;;  %v4794_v29 = vld [vmem:[#allocation8 + $0x2d0] sm:$0xf0] }
  0xd7   :  { %v5305_v43 = vor.u32 %v6160_v15, %v5304_v41  ;;  %v4634_v41 = vld [vmem:[#allocation8 + $0x190] sm:$0xf0] }
  0xd8   :  { %2789 = vmatpush.bf16.msrb.mxu1 %v5145_v49  ;;  %v6306_v49 = vpop.eup %6305  ;;  %v4637_v48 = vor.u32 %v5990_v13, %v4634_v41  ;;  %v4938_v13 = vld [vmem:[#allocation8 + $0x3f0] sm:$0xf0] }
  0xd9   :  { %2800 = vmatpush.bf16.msrb.mxu2 %v5305_v43  ;;  %v6693_v54 = vpack.c.bf16 %v6306_v49, %v6306_v49  ;;  %2812 = vmatpush.bf16.msrb.mxu3 %v5449_v51  ;;  %v5384_v43 = vld [vmem:[#allocation8 + $0x760] sm:$0xf]  ;;  %v4474_v49 = vld [vmem:[#allocation8 + $0x50] sm:$0xf0]  ;;  %v6140_v51 = vld [vmem:[#allocation8 + $0x62c] sm:$0xf0] }
  0xda   :  { %2777 = vmatpush.bf16.msrb.mxu0 %v5001_v53  ;;  %v6156_v53 = vld [vmem:[#allocation8 + $0x6ac] sm:$0xf0]  ;;  %v1001_v2 = vpop.f32.mrf.mxu3  ;;  %v5385_v47 = vor.u32 %v6180_v44, %v5384_v43  ;;  %v6026_v43 = vld [vmem:[#allocation8 + $0x2a4] sm:$0xf]  ;;  %v4778_v44 = vld [vmem:[#allocation8 + $0x2b0] sm:$0xf0] }
  0xdb   :  { %v5289_v58 = vor.u32 %v6156_v53, %v5288_v52  ;;  %2729 = vmatmul.bf16.vlgmr.msra.gmra.mxu0 %v6693_v54  ;;  %v6308_v6 = vpop.eup %6307  ;;  %v5986_v53 = vld [vmem:[#allocation8 + $0x164] sm:$0xf]  ;;  %v5369_v2 = vor.u32 %v6176_v61, %v5368_v60 }
  0xdc   :  { %2790 = vmatpush.bf16.msrb.mxu1 %v5129_v62  ;;  %v6192_v62 = vld [vmem:[#allocation8 + $0x7cc] sm:$0xf0]  ;;  %v6696_v11 = vpack.c.bf16 %v6308_v6, %v6308_v6  ;;  %v4621_v4 = vor.u32 %v5986_v53, %v4618_v55  ;;  %v5208_v6 = vld [vmem:[#allocation8 + $0x600] sm:$0xf]  ;;  %v6058_v53 = vld [vmem:[#allocation8 + $0x3a4] sm:$0xf] }
  0xdd   :  { %v5433_v63 = vor.u32 %v6192_v62, %v5432_v59  ;;  %2801 = vmatpush.bf16.msrb.mxu2 %v5289_v58  ;;  %v4906_v55 = vld [vmem:[#allocation8 + $0x3b0] sm:$0xf0]  ;;  %v6054_v61 = vld [vmem:[#allocation8 + $0x384] sm:$0xf] }
  0xde   :  { %2778 = vmatpush.bf16.msrb.mxu0 %v4985_v3  ;;  %v4541_v3 = vor.u32 %v5966_v56, %v4538_v57  ;;  %2742 = vmatmul.bf16.vlgmr.msra.gmra.mxu1 %v6696_v11 }
  0xdf   :  { %2813 = vmatpush.bf16.msrb.mxu3 %v5433_v63 }
  0xe0   :  { %2791 = vmatpush.bf16.msrb.mxu1 %v5113_v17  ;;  %v291_v17 = vperm.slane %v6689_v40, 2 }
  0xe1   :  { %2802 = vmatpush.bf16.msrb.mxu2 %v5273_v10 }
  0xe2   :  { %2779 = vmatpush.bf16.msrb.mxu0 %v4969_v21  ;;  %v4506_v21 = vld [vmem:[#allocation8 + $0x90] sm:$0xf0] }
  0xe3   :  { %2814 = vmatpush.bf16.msrb.mxu3 %v5417_v16  ;;  %v4509_v32 = vor.u32 %v5958_v19, %v4506_v21  ;;  %v4461_v19 = vor.u32 %v5946_v0, %v4458_v1  ;;  %v4605_v21 = vor.u32 %v5982_v5, %v4602_v9  ;;  %v294_v9 = vperm.slane %v6689_v40, 5 }
  0xe4   :  { %2792 = vmatpush.bf16.msrb.mxu1 %v5097_v33  ;;  %v5954_v33 = vld [vmem:[#allocation8 + $0x64] sm:$0xf] }
  0xe5   :  { %2803 = vmatpush.bf16.msrb.mxu2 %v5257_v26  ;;  %v4493_v45 = vor.u32 %v5954_v33, %v4490_v36  ;;  %v6168_v33 = vld [vmem:[#allocation8 + $0x70c] sm:$0xf0]  ;;  %v6066_v36 = vld [vmem:[#allocation8 + $0x3e4] sm:$0xf] }
  0xe6   :  { %2780 = vmatpush.bf16.msrb.mxu0 %v4953_v38  ;;  %v1012_v27 = vpop.f32.mrf.mxu0  ;;  %v6144_v38 = vld [vmem:[#allocation8 + $0x64c] sm:$0xf0] }
  0xe7   :  { %v1013_v30 = vadd.f32 %v1012_v27, %v291_v17  ;;  %2815 = vmatpush.bf16.msrb.mxu3 %v5401_v34  ;;  %v5241_v15 = vor.u32 %v6144_v38, %v5240_v37  ;;  %v4813_v17 = vor.u32 %v6034_v12, %v4810_v14  ;;  %v4586_v27 = vld [vmem:[#allocation8 + $0x130] sm:$0xf0]  ;;  %v4445_v34 = vor.u32 %v5942_v22, %v4442_v23  ;;  %v6010_v12 = vld [vmem:[#allocation8 + $0x224] sm:$0xf] }
  0xe8   :  { %2793 = vmatpush.bf16.msrb.mxu1 %v5081_v46  ;;  %v1025_v31 = vpop.f32.mrf.mxu1  ;;  %v5950_v46 = vld [vmem:[#allocation8 + $0x44] sm:$0xf]  ;;  %v4589_v38 = vor.u32 %v5978_v25, %v4586_v27  ;;  %v4714_v14 = vld [vmem:[#allocation8 + $0x230] sm:$0xf0] }
  0xe9   :  { %v1026_v39 = vadd.f32 %v1025_v31, %v1013_v30  ;;  %2804 = vmatpush.bf16.msrb.mxu2 %v5241_v15  ;;  %v4477_v63 = vor.u32 %v5950_v46, %v4474_v49  ;;  %v4797_v31 = vor.u32 %v6030_v28, %v4794_v29  ;;  %v4570_v15 = vld [vmem:[#allocation8 + $0x110] sm:$0xf0]  ;;  %v6062_v46 = vld [vmem:[#allocation8 + $0x3c4] sm:$0xf] }
  0xea   :  { %2825 = vmatpush.bf16.msra.mxu0 %v4557_v50  ;;  %v5224_v50 = vld [vmem:[#allocation8 + $0x620] sm:$0xf]  ;;  %v6098_v23 = vld [vmem:[#allocation8 + $0x4e4] sm:$0xf]  ;;  %v4698_v29 = vld [vmem:[#allocation8 + $0x210] sm:$0xf0] }
  0xeb   :  { %6309 = vtanh.f32 %v1026_v39  ;;  %2816 = vmatpush.bf16.msrb.mxu3 %v5385_v47  ;;  %v5225_v56 = vor.u32 %v6140_v51, %v5224_v50  ;;  %v5974_v39 = vld [vmem:[#allocation8 + $0x104] sm:$0xf]  ;;  %v4922_v47 = vld [vmem:[#allocation8 + $0x3d0] sm:$0xf0] }
  0xec   :  { %2838 = vmatpush.bf16.msra.mxu1 %v4685_v7  ;;  %v1038_v52 = vpop.f32.mrf.mxu2  ;;  %v6136_v7 = vld [vmem:[#allocation8 + $0x60c] sm:$0xf0]  ;;  %v4925_v49 = vor.u32 %v6062_v46, %v4922_v47  ;;  %v6022_v50 = vld [vmem:[#allocation8 + $0x284] sm:$0xf]  ;;  %v4762_v51 = vld [vmem:[#allocation8 + $0x290] sm:$0xf0] }
  0xed   :  { %v1039_v57 = vadd.f32 %v1038_v52, %v292_v42  ;;  %2805 = vmatpush.bf16.msrb.mxu2 %v5225_v56  ;;  %v5209_v10 = vor.u32 %v6136_v7, %v5208_v6  ;;  %v4941_v42 = vor.u32 %v6066_v36, %v4938_v13  ;;  %v4765_v52 = vor.u32 %v6022_v50, %v4762_v51  ;;  %v6050_v7 = vld [vmem:[#allocation8 + $0x364] sm:$0xf] }
  0xee   :  { %2826 = vmatpush.bf16.msra.mxu0 %v4541_v3  ;;  %v1051_v58 = vpop.f32.mrf.mxu3  ;;  %v1014_v59 = vpop.f32.mrf.mxu0  ;;  %v4909_v56 = vor.u32 %v6058_v53, %v4906_v55  ;;  %v6006_v28 = vld [vmem:[#allocation8 + $0x204] sm:$0xf] }
  0xef   :  { %v1052_v3 = vadd.f32 %v1051_v58, %v1039_v57  ;;  %2817 = vmatpush.bf16.msrb.mxu3 %v5369_v2  ;;  %v293_v57 = vperm.slane %v6689_v40, 4  ;;  %v6018_v58 = vld [vmem:[#allocation8 + $0x264] sm:$0xf]  ;;  %v4746_v59 = vld [vmem:[#allocation8 + $0x270] sm:$0xf0] }
  0xf0   :  { %2839 = vmatpush.bf16.msra.mxu1 %v4669_v20  ;;  %v1027_v62 = vpop.f32.mrf.mxu1  ;;  %v6172_v20 = vld [vmem:[#allocation8 + $0x72c] sm:$0xf0]  ;;  %v4749_v60 = vor.u32 %v6018_v58, %v4746_v59  ;;  %v6094_v36 = vld [vmem:[#allocation8 + $0x4c4] sm:$0xf]  ;;  %v5018_v58 = vld [vmem:[#allocation8 + $0x490] sm:$0xf0] }
  0xf1   :  { %v6310_v8 = vpop.eup %6309  ;;  %6311 = vtanh.f32 %v1052_v3  ;;  %2806 = vmatpush.bf16.msrb.mxu2 %v5209_v10  ;;  %v4890_v62 = vld [vmem:[#allocation8 + $0x390] sm:$0xf0]  ;;  %v6014_v3 = vld [vmem:[#allocation8 + $0x244] sm:$0xf] }
  0xf2   :  { %2827 = vmatpush.bf16.msra.mxu0 %v4525_v18  ;;  %v6701_v16 = vpack.c.bf16 %v6310_v8, %v6310_v8  ;;  %v5352_v18 = vld [vmem:[#allocation8 + $0x720] sm:$0xf]  ;;  %v4893_v0 = vor.u32 %v6054_v61, %v4890_v62  ;;  %v4874_v8 = vld [vmem:[#allocation8 + $0x370] sm:$0xf0]  ;;  %v6130_v13 = vld [vmem:[#allocation8 + $0x5e4] sm:$0xf] }
  0xf3   :  { %v5353_v24 = vor.u32 %v6172_v20, %v5352_v18  ;;  %v4877_v10 = vor.u32 %v6050_v7, %v4874_v8  ;;  %v4858_v20 = vld [vmem:[#allocation8 + $0x350] sm:$0xf0]  ;;  %v6090_v47 = vld [vmem:[#allocation8 + $0x4a4] sm:$0xf] }
  0xf4   :  { %2840 = vmatpush.bf16.msra.mxu1 %v4653_v35  ;;  %2755 = vmatmul.bf16.vlgmr.msra.gmra.mxu2 %v6701_v16  ;;  %v1040_v26 = vpop.f32.mrf.mxu2  ;;  %v6126_v55 = vld [vmem:[#allocation8 + $0x5c4] sm:$0xf]  ;;  %v5162_v62 = vld [vmem:[#allocation8 + $0x5b0] sm:$0xf0] }
  0xf5   :  { %2851 = vmatpush.bf16.msra.mxu2 %v4813_v17  ;;  %2818 = vmatpush.bf16.msrb.mxu3 %v5353_v24  ;;  %v4717_v17 = vor.u32 %v6010_v12, %v4714_v14  ;;  %v5066_v24 = vld [vmem:[#allocation8 + $0x4f0] sm:$0xf0]  ;;  %v6122_v61 = vld [vmem:[#allocation8 + $0x5a4] sm:$0xf] }
  0xf6   :  { %2828 = vmatpush.bf16.msra.mxu0 %v4509_v32  ;;  %v1053_v30 = vpop.f32.mrf.mxu3  ;;  %v5336_v32 = vld [vmem:[#allocation8 + $0x700] sm:$0xf]  ;;  %v4986_v7 = vld [vmem:[#allocation8 + $0x450] sm:$0xf0] }
  0xf7   :  { %v5337_v35 = vor.u32 %v6168_v33, %v5336_v32  ;;  %v6312_v37 = vpop.eup %6311  ;;  %v5069_v33 = vor.u32 %v6098_v23, %v5066_v24 }
  0xf8   :  { %2841 = vmatpush.bf16.msra.mxu1 %v4637_v48  ;;  %v6704_v41 = vpack.c.bf16 %v6312_v37, %v6312_v37  ;;  %v4573_v48 = vor.u32 %v5974_v39, %v4570_v15  ;;  %v5050_v37 = vld [vmem:[#allocation8 + $0x4d0] sm:$0xf0] }
  0xf9   :  { %2852 = vmatpush.bf16.msra.mxu2 %v4797_v31  ;;  %2819 = vmatpush.bf16.msrb.mxu3 %v5337_v35  ;;  %v4701_v31 = vor.u32 %v6006_v28, %v4698_v29  ;;  %v5053_v15 = vor.u32 %v6094_v36, %v5050_v37  ;;  %v6070_v28 = vld [vmem:[#allocation8 + $0x404] sm:$0xf]  ;;  %v4954_v29 = vld [vmem:[#allocation8 + $0x410] sm:$0xf0]  ;;  %v4560_v36 = vld [vmem:[#allocation8 + $0xe8] sm:$0xf] }
  0xfa   :  { %2829 = vmatpush.bf16.msra.mxu0 %v4493_v45  ;;  %v4781_v45 = vor.u32 %v6026_v43, %v4778_v44  ;;  %2768 = vmatmul.bf16.vlgmr.msra.gmra.mxu3 %v6704_v41  ;;  %v5194_v43 = vld [vmem:[#allocation8 + $0x5f0] sm:$0xf0]  ;;  %v6038_v44 = vld [vmem:[#allocation8 + $0x304] sm:$0xf]  ;;  %v5973_v37 = vld [vmem:[#allocation8 + $0xf4] sm:$0xf0] }
  0xfb   :  { %v5197_v51 = vor.u32 %v6130_v13, %v5194_v43  ;;  %v4957_v13 = vor.u32 %v6070_v28, %v4954_v29  ;;  %v5418_v28 = vld [vmem:[#allocation8 + $0x7b0] sm:$0xf0]  ;;  %v4656_v29 = vld [vmem:[#allocation8 + $0x1a8] sm:$0xf] }
  0xfc   :  { %2842 = vmatpush.bf16.msra.mxu1 %v4621_v4  ;;  %v4730_v4 = vld [vmem:[#allocation8 + $0x250] sm:$0xf0] }
  0xfd   :  { %2864 = vmatpush.bf16.msra.mxu3 %v4941_v42  ;;  %2853 = vmatpush.bf16.msra.mxu2 %v4781_v45  ;;  %v4733_v5 = vor.u32 %v6014_v3, %v4730_v4  ;;  %v4826_v45 = vld [vmem:[#allocation8 + $0x310] sm:$0xf0]  ;;  %v6118_v4 = vld [vmem:[#allocation8 + $0x584] sm:$0xf] }
  0xfe   :  { %2830 = vmatpush.bf16.msra.mxu0 %v4477_v63 }
 0x100   :  { %2843 = vmatpush.bf16.msra.mxu1 %v4605_v21 }
 0x101   :  { %2865 = vmatpush.bf16.msra.mxu3 %v4925_v49  ;;  %2854 = vmatpush.bf16.msra.mxu2 %v4765_v52  ;;  %v4829_v49 = vor.u32 %v6038_v44, %v4826_v45  ;;  %v4561_v45 = vor.u32 %v5973_v37, %v4560_v36 }
 0x102   :  { %2831 = vmatpush.bf16.msra.mxu0 %v4461_v19  ;;  %v6046_v19 = vld [vmem:[#allocation8 + $0x344] sm:$0xf] }
 0x103   :  { %v4861_v26 = vor.u32 %v6046_v19, %v4858_v20  ;;  %v6074_v20 = vld [vmem:[#allocation8 + $0x424] sm:$0xf] }
 0x104   :  { %2844 = vmatpush.bf16.msra.mxu1 %v4589_v38  ;;  %v4842_v38 = vld [vmem:[#allocation8 + $0x330] sm:$0xf0] }
 0x105   :  { %2866 = vmatpush.bf16.msra.mxu3 %v4909_v56  ;;  %2855 = vmatpush.bf16.msra.mxu2 %v4749_v60  ;;  %v5178_v56 = vld [vmem:[#allocation8 + $0x5d0] sm:$0xf0] }
 0x106   :  { %2832 = vmatpush.bf16.msra.mxu0 %v4445_v34  ;;  %v1064_v63 = vpop.f32.mrf.mxu0  ;;  %v6042_v34 = vld [vmem:[#allocation8 + $0x324] sm:$0xf]  ;;  %v5181_v59 = vor.u32 %v6126_v55, %v5178_v56  ;;  %v5082_v55 = vld [vmem:[#allocation8 + $0x510] sm:$0xf0] }
 0x107   :  { %v1065_v1 = vadd.f32 %v1064_v63, %v293_v57  ;;  %v4845_v39 = vor.u32 %v6042_v34, %v4842_v38  ;;  %v6086_v57 = vld [vmem:[#allocation8 + $0x484] sm:$0xf]  ;;  %v5322_v34 = vld [vmem:[#allocation8 + $0x6f0] sm:$0xf0] }
 0x108   :  { %2845 = vmatpush.bf16.msra.mxu1 %v4573_v48  ;;  %v1077_v2 = vpop.f32.mrf.mxu1  ;;  %v5034_v48 = vld [vmem:[#allocation8 + $0x4b0] sm:$0xf0]  ;;  %v5021_v60 = vor.u32 %v6086_v57, %v5018_v58  ;;  %v6082_v63 = vld [vmem:[#allocation8 + $0x464] sm:$0xf] }
 0x109   :  { %v1078_v6 = vadd.f32 %v1077_v2, %v1065_v1  ;;  %2867 = vmatpush.bf16.msra.mxu3 %v4893_v0  ;;  %2856 = vmatpush.bf16.msra.mxu2 %v4733_v5  ;;  %v5037_v53 = vor.u32 %v6090_v47, %v5034_v48  ;;  %v5002_v0 = vld [vmem:[#allocation8 + $0x470] sm:$0xf0]  ;;  %v5165_v1 = vor.u32 %v6122_v61, %v5162_v62  ;;  %v295_v2 = vperm.slane %v6689_v40, 6  ;;  %v6194_v56 = vld [vmem:[#allocation8 + $0x7e4] sm:$0xf] }
 0x10a   :  { %v5005_v3 = vor.u32 %v6082_v63, %v5002_v0  ;;  %v5146_v5 = vld [vmem:[#allocation8 + $0x590] sm:$0xf0]  ;;  %v4688_v61 = vld [vmem:[#allocation8 + $0x1e8] sm:$0xf]  ;;  %v6005_v62 = vld [vmem:[#allocation8 + $0x1f4] sm:$0xf0] }
 0x10b   :  { %6313 = vtanh.f32 %v1078_v6  ;;  %v6078_v6 = vld [vmem:[#allocation8 + $0x444] sm:$0xf]  ;;  %v5149_v12 = vor.u32 %v6118_v4, %v5146_v5  ;;  %v5306_v48 = vld [vmem:[#allocation8 + $0x6d0] sm:$0xf0] }
 0x10c   :  { %v1090_v18 = vpop.f32.mrf.mxu2  ;;  %v4989_v14 = vor.u32 %v6078_v6, %v4986_v7  ;;  %v5450_v57 = vld [vmem:[#allocation8 + $0x7f0] sm:$0xf0]  ;;  %v6154_v63 = vld [vmem:[#allocation8 + $0x6a4] sm:$0xf]  ;;  %v4689_v7 = vor.u32 %v6005_v62, %v4688_v61 }
 0x10d   :  { %v1091_v21 = vadd.f32 %v1090_v18, %v294_v9  ;;  %2868 = vmatpush.bf16.msra.mxu3 %v4877_v10  ;;  %2857 = vmatpush.bf16.msra.mxu2 %v4717_v17  ;;  %v6114_v17 = vld [vmem:[#allocation8 + $0x564] sm:$0xf]  ;;  %v5130_v18 = vld [vmem:[#allocation8 + $0x570] sm:$0xf0]  ;;  %v5453_v6 = vor.u32 %v6194_v56, %v5450_v57  ;;  %v5989_v56 = vld [vmem:[#allocation8 + $0x174] sm:$0xf0] }
 0x10e   :  { %v1103_v22 = vpop.f32.mrf.mxu3  ;;  %v1066_v25 = vpop.f32.mrf.mxu0  ;;  %v5133_v23 = vor.u32 %v6114_v17, %v5130_v18  ;;  %v4672_v17 = vld [vmem:[#allocation8 + $0x1c8] sm:$0xf]  ;;  %v6001_v18 = vld [vmem:[#allocation8 + $0x1d4] sm:$0xf0]  ;;  %v5226_v61 = vld [vmem:[#allocation8 + $0x630] sm:$0xf0] }
 0x10f   :  { %v1104_v30 = vadd.f32 %v1103_v22, %v1091_v21  ;;  %v4970_v21 = vld [vmem:[#allocation8 + $0x430] sm:$0xf0]  ;;  %v296_v22 = vperm.slane %v6689_v40, 7  ;;  %v6110_v25 = vld [vmem:[#allocation8 + $0x544] sm:$0xf] }
 0x110   :  { %v1079_v27 = vpop.f32.mrf.mxu1  ;;  %v4973_v24 = vor.u32 %v6074_v20, %v4970_v21  ;;  %v5274_v20 = vld [vmem:[#allocation8 + $0x690] sm:$0xf0]  ;;  %v4512_v21 = vld [vmem:[#allocation8 + $0x88] sm:$0xf] }
 0x111   :  { %v6314_v32 = vpop.eup %6313  ;;  %6315 = vtanh.f32 %v1104_v30  ;;  %2869 = vmatpush.bf16.msra.mxu3 %v4861_v26  ;;  %2858 = vmatpush.bf16.msra.mxu2 %v4701_v31  ;;  %v5114_v26 = vld [vmem:[#allocation8 + $0x550] sm:$0xf0]  ;;  %v6162_v30 = vld [vmem:[#allocation8 + $0x6e4] sm:$0xf] }
 0x112   :  { %v6709_v35 = vpack.c.bf16 %v6314_v32, %v6314_v32  ;;  %v5117_v38 = vor.u32 %v6110_v25, %v5114_v26  ;;  %v5325_v44 = vor.u32 %v6162_v30, %v5322_v34  ;;  %v6186_v25 = vld [vmem:[#allocation8 + $0x7a4] sm:$0xf]  ;;  %v5997_v30 = vld [vmem:[#allocation8 + $0x1b4] sm:$0xf0]  ;;  %v5258_v34 = vld [vmem:[#allocation8 + $0x670] sm:$0xf0] }
 0x113   :  { %v5421_v36 = vor.u32 %v6186_v25, %v5418_v28  ;;  %v4657_v37 = vor.u32 %v5997_v30, %v4656_v29  ;;  %v5981_v25 = vld [vmem:[#allocation8 + $0x134] sm:$0xf0]  ;;  %v4800_v29 = vld [vmem:[#allocation8 + $0x2c8] sm:$0xf] }
 0x114   :  { %2781 = vmatmul.bf16.vlgmr.msrb.gmra.mxu0 %v6709_v35  ;;  %v1092_v42 = vpop.f32.mrf.mxu2  ;;  %v5056_v30 = vld [vmem:[#allocation8 + $0x4c8] sm:$0xf] }
 0x115   :  { %2877 = vmatpush.bf16.msrb.mxu0 %v5069_v33  ;;  %2870 = vmatpush.bf16.msra.mxu3 %v4845_v39  ;;  %v5098_v42 = vld [vmem:[#allocation8 + $0x530] sm:$0xf0] }
 0x116   :  { %v1105_v46 = vpop.f32.mrf.mxu3 }
 0x117   :  { %v6316_v50 = vpop.eup %6315  ;;  %v6158_v46 = vld [vmem:[#allocation8 + $0x6c4] sm:$0xf] }
 0x118   :  { %v6712_v52 = vpack.c.bf16 %v6316_v50, %v6316_v50  ;;  %v5969_v50 = vld [vmem:[#allocation8 + $0xd4] sm:$0xf0] }
 0x119   :  { %2878 = vmatpush.bf16.msrb.mxu0 %v5053_v15  ;;  %2871 = vmatpush.bf16.msra.mxu3 %v4829_v49  ;;  %v6106_v15 = vld [vmem:[#allocation8 + $0x524] sm:$0xf]  ;;  %v4544_v49 = vld [vmem:[#allocation8 + $0xc8] sm:$0xf] }
 0x11a   :  { %2794 = vmatmul.bf16.vlgmr.msrb.gmra.mxu1 %v6712_v52 }
 0x11b   :  { %2890 = vmatpush.bf16.msrb.mxu1 %v5197_v51  ;;  %v5101_v51 = vor.u32 %v6106_v15, %v5098_v42  ;;  %v5993_v15 = vld [vmem:[#allocation8 + $0x194] sm:$0xf0] }
 0x11d   :  { %2879 = vmatpush.bf16.msrb.mxu0 %v5037_v53  ;;  %v6102_v53 = vld [vmem:[#allocation8 + $0x504] sm:$0xf] }
 0x11e   :  { %v5085_v4 = vor.u32 %v6102_v53, %v5082_v55  ;;  %v5386_v53 = vld [vmem:[#allocation8 + $0x770] sm:$0xf0]  ;;  %v4624_v55 = vld [vmem:[#allocation8 + $0x168] sm:$0xf] }
 0x11f   :  { %2891 = vmatpush.bf16.msrb.mxu1 %v5181_v59  ;;  %v5309_v59 = vor.u32 %v6158_v46, %v5306_v48  ;;  %v5242_v46 = vld [vmem:[#allocation8 + $0x650] sm:$0xf0] }
 0x121   :  { %2880 = vmatpush.bf16.msrb.mxu0 %v5021_v60  ;;  %v4545_v60 = vor.u32 %v5969_v50, %v4544_v49  ;;  %v6178_v50 = vld [vmem:[#allocation8 + $0x764] sm:$0xf] }
 0x122   :  { %v5389_v62 = vor.u32 %v6178_v50, %v5386_v53  ;;  %v4784_v50 = vld [vmem:[#allocation8 + $0x2a8] sm:$0xf] }
 0x123   :  { %2892 = vmatpush.bf16.msrb.mxu1 %v5165_v1  ;;  %v5290_v1 = vld [vmem:[#allocation8 + $0x6b0] sm:$0xf0] }
 0x124   :  { %2833 = vmatmul.bf16.vlgmr.msra.gmra.mxu0 %v6693_v54 }
 0x125   :  { %2881 = vmatpush.bf16.msrb.mxu0 %v5005_v3  ;;  %v5965_v3 = vld [vmem:[#allocation8 + $0xb4] sm:$0xf0] }
 0x126   :  { %v1116_v8 = vpop.f32.mrf.mxu0 }
 0x127   :  { %v1117_v9 = vadd.f32 %v1116_v8, %v295_v2  ;;  %2893 = vmatpush.bf16.msrb.mxu1 %v5149_v12  ;;  %v4528_v2 = vld [vmem:[#allocation8 + $0xa8] sm:$0xf]  ;;  %v6190_v8 = vld [vmem:[#allocation8 + $0x7c4] sm:$0xf]  ;;  %v5293_v12 = vor.u32 %v6154_v63, %v5290_v1  ;;  %v4625_v63 = vor.u32 %v5989_v56, %v4624_v55 }
 0x128   :  { %v1129_v10 = vpop.f32.mrf.mxu1  ;;  %v4928_v56 = vld [vmem:[#allocation8 + $0x3c8] sm:$0xf] }
 0x129   :  { %v1130_v19 = vadd.f32 %v1129_v10, %v1117_v9  ;;  %2882 = vmatpush.bf16.msrb.mxu0 %v4989_v14  ;;  %v5434_v9 = vld [vmem:[#allocation8 + $0x7d0] sm:$0xf0]  ;;  %v4529_v14 = vor.u32 %v5965_v3, %v4528_v2  ;;  %v4608_v3 = vld [vmem:[#allocation8 + $0x148] sm:$0xf] }
 0x12a   :  { %2846 = vmatmul.bf16.vlgmr.msra.gmra.mxu1 %v6696_v11  ;;  %v5370_v2 = vld [vmem:[#allocation8 + $0x750] sm:$0xf0] }
 0x12b   :  { %6317 = vtanh.f32 %v1130_v19  ;;  %2894 = vmatpush.bf16.msrb.mxu1 %v5133_v23  ;;  %v6150_v19 = vld [vmem:[#allocation8 + $0x684] sm:$0xf]  ;;  %v5437_v23 = vor.u32 %v6190_v8, %v5434_v9  ;;  %v5945_v8 = vld [vmem:[#allocation8 + $0x14] sm:$0xf0]  ;;  %v5210_v9 = vld [vmem:[#allocation8 + $0x610] sm:$0xf0] }
 0x12c   :  { %v1142_v27 = vpop.f32.mrf.mxu2  ;;  %v5277_v26 = vor.u32 %v6150_v19, %v5274_v20  ;;  %v4816_v19 = vld [vmem:[#allocation8 + $0x2e8] sm:$0xf]  ;;  %v6037_v20 = vld [vmem:[#allocation8 + $0x2f4] sm:$0xf0] }
 0x12d   :  { %v1143_v31 = vadd.f32 %v1142_v27, %v296_v22  ;;  %2883 = vmatpush.bf16.msrb.mxu0 %v4973_v24  ;;  %v5961_v22 = vld [vmem:[#allocation8 + $0x94] sm:$0xf0]  ;;  %v4673_v24 = vor.u32 %v6001_v18, %v4672_v17  ;;  %v4817_v28 = vor.u32 %v6037_v20, %v4816_v19 }
 0x12e   :  { %v1155_v32 = vpop.f32.mrf.mxu3  ;;  %v1118_v33 = vpop.f32.mrf.mxu0  ;;  %v4513_v27 = vor.u32 %v5961_v22, %v4512_v21  ;;  %v6170_v21 = vld [vmem:[#allocation8 + $0x724] sm:$0xf]  ;;  %v6021_v19 = vld [vmem:[#allocation8 + $0x274] sm:$0xf0] }
 0x12f   :  { %v1156_v39 = vadd.f32 %v1155_v32, %v1143_v31  ;;  %2895 = vmatpush.bf16.msrb.mxu1 %v5117_v38  ;;  %v4496_v31 = vld [vmem:[#allocation8 + $0x68] sm:$0xf]  ;;  %v5957_v32 = vld [vmem:[#allocation8 + $0x74] sm:$0xf0]  ;;  %v6146_v33 = vld [vmem:[#allocation8 + $0x664] sm:$0xf] }
 0x130   :  { %v1131_v40 = vpop.f32.mrf.mxu1  ;;  %v4497_v38 = vor.u32 %v5957_v32, %v4496_v31  ;;  %v5261_v42 = vor.u32 %v6146_v33, %v5258_v34  ;;  %v6097_v31 = vld [vmem:[#allocation8 + $0x4d4] sm:$0xf0] }
 0x131   :  { %v6318_v43 = vpop.eup %6317  ;;  %6319 = vtanh.f32 %v1156_v39  ;;  %2884 = vmatpush.bf16.msrb.mxu0 %v4957_v13  ;;  %v6182_v40 = vld [vmem:[#allocation8 + $0x784] sm:$0xf]  ;;  %v5402_v39 = vld [vmem:[#allocation8 + $0x790] sm:$0xf0]  ;;  %v4640_v13 = vld [vmem:[#allocation8 + $0x188] sm:$0xf] }
 0x132   :  { %v6719_v47 = vpack.c.bf16 %v6318_v43, %v6318_v43  ;;  %v4480_v43 = vld [vmem:[#allocation8 + $0x48] sm:$0xf]  ;;  %v5405_v48 = vor.u32 %v6182_v40, %v5402_v39  ;;  %v4641_v49 = vor.u32 %v5993_v15, %v4640_v13  ;;  %v6033_v34 = vld [vmem:[#allocation8 + $0x2d4] sm:$0xf0]  ;;  %v5057_v13 = vor.u32 %v6097_v31, %v5056_v30 }
 0x133   :  { %2896 = vmatpush.bf16.msrb.mxu1 %v5101_v51  ;;  %v4576_v40 = vld [vmem:[#allocation8 + $0x108] sm:$0xf]  ;;  %v6069_v15 = vld [vmem:[#allocation8 + $0x3f4] sm:$0xf0] }
 0x134   :  { %2807 = vmatmul.bf16.vlgmr.msrb.gmra.mxu2 %v6719_v47  ;;  %v1144_v58 = vpop.f32.mrf.mxu2  ;;  %2885 = vmatmul.bf16.vlgmr.msrb.gmra.mxu0 %v6709_v35  ;;  %v4944_v39 = vld [vmem:[#allocation8 + $0x3e8] sm:$0xf]  ;;  %v6081_v30 = vld [vmem:[#allocation8 + $0x454] sm:$0xf0] }
 0x135   :  { %2903 = vmatpush.bf16.msrb.mxu2 %v5325_v44  ;;  %2929 = vmatpush.bf16.msra.mxu0 %v4561_v45  ;;  %v5953_v44 = vld [vmem:[#allocation8 + $0x54] sm:$0xf0]  ;;  %v6142_v45 = vld [vmem:[#allocation8 + $0x644] sm:$0xf]  ;;  %v4464_v58 = vld [vmem:[#allocation8 + $0x28] sm:$0xf]  ;;  %v4945_v53 = vor.u32 %v6069_v15, %v4944_v39 }
 0x136   :  { %v1157_v0 = vpop.f32.mrf.mxu3  ;;  %v4481_v51 = vor.u32 %v5953_v44, %v4480_v43  ;;  %v5245_v57 = vor.u32 %v6142_v45, %v5242_v46  ;;  %v6133_v43 = vld [vmem:[#allocation8 + $0x5f4] sm:$0xf0]  ;;  %v4801_v44 = vor.u32 %v6033_v34, %v4800_v29  ;;  %v5040_v45 = vld [vmem:[#allocation8 + $0x4a8] sm:$0xf] }
 0x137   :  { %v6320_v5 = vpop.eup %6319  ;;  %2897 = vmatpush.bf16.msrb.mxu1 %v5085_v4  ;;  %v6174_v0 = vld [vmem:[#allocation8 + $0x744] sm:$0xf]  ;;  %v5985_v4 = vld [vmem:[#allocation8 + $0x154] sm:$0xf0]  ;;  %v4992_v29 = vld [vmem:[#allocation8 + $0x448] sm:$0xf] }
 0x138   :  { %v6723_v10 = vpack.c.bf16 %v6320_v5, %v6320_v5  ;;  %v5373_v17 = vor.u32 %v6174_v0, %v5370_v2  ;;  %v4609_v18 = vor.u32 %v5985_v4, %v4608_v3  ;;  %v6093_v46 = vld [vmem:[#allocation8 + $0x4b4] sm:$0xf0]  ;;  %v4768_v0 = vld [vmem:[#allocation8 + $0x288] sm:$0xf] }
 0x139   :  { %2904 = vmatpush.bf16.msrb.mxu2 %v5309_v59  ;;  %2930 = vmatpush.bf16.msra.mxu0 %v4545_v60  ;;  %v5949_v59 = vld [vmem:[#allocation8 + $0x34] sm:$0xf0]  ;;  %v6138_v60 = vld [vmem:[#allocation8 + $0x624] sm:$0xf]  ;;  %v4912_v4 = vld [vmem:[#allocation8 + $0x3a8] sm:$0xf] }
 0x13a   :  { %2820 = vmatmul.bf16.vlgmr.msrb.gmra.mxu3 %v6723_v10  ;;  %2898 = vmatmul.bf16.vlgmr.msrb.gmra.mxu1 %v6712_v52  ;;  %v4465_v1 = vor.u32 %v5949_v59, %v4464_v58  ;;  %v5229_v5 = vor.u32 %v6138_v60, %v5226_v61  ;;  %v6065_v58 = vld [vmem:[#allocation8 + $0x3d4] sm:$0xf0]  ;;  %v5184_v59 = vld [vmem:[#allocation8 + $0x5c8] sm:$0xf] }
 0x13b   :  { %2916 = vmatpush.bf16.msrb.mxu3 %v5453_v6  ;;  %2942 = vmatpush.bf16.msra.mxu1 %v4689_v7  ;;  %v6134_v6 = vld [vmem:[#allocation8 + $0x604] sm:$0xf]  ;;  %v4448_v7 = vld [vmem:[#allocation8 + $0x8] sm:$0xf]  ;;  %v6129_v60 = vld [vmem:[#allocation8 + $0x5d4] sm:$0xf0]  ;;  %v4929_v2 = vor.u32 %v6065_v58, %v4928_v56 }
 0x13c   :  { %v4449_v22 = vor.u32 %v5945_v8, %v4448_v7  ;;  %v5185_v3 = vor.u32 %v6129_v60, %v5184_v59  ;;  %v5168_v7 = vld [vmem:[#allocation8 + $0x5a8] sm:$0xf]  ;;  %v6125_v8 = vld [vmem:[#allocation8 + $0x5b4] sm:$0xf0] }
 0x13d   :  { %2905 = vmatpush.bf16.msrb.mxu2 %v5293_v12  ;;  %2931 = vmatpush.bf16.msra.mxu0 %v4529_v14  ;;  %v5072_v12 = vld [vmem:[#allocation8 + $0x4e8] sm:$0xf]  ;;  %v6101_v14 = vld [vmem:[#allocation8 + $0x4f4] sm:$0xf0] }
 0x13e   :  { %v4736_v31 = vld [vmem:[#allocation8 + $0x248] sm:$0xf] }
 0x13f   :  { %2917 = vmatpush.bf16.msrb.mxu3 %v5437_v23  ;;  %2943 = vmatpush.bf16.msra.mxu1 %v4673_v24  ;;  %v5354_v23 = vld [vmem:[#allocation8 + $0x730] sm:$0xf0]  ;;  %v4592_v24 = vld [vmem:[#allocation8 + $0x128] sm:$0xf] }
 0x140   :  { %v5357_v32 = vor.u32 %v6170_v21, %v5354_v23  ;;  %v4593_v33 = vor.u32 %v5981_v25, %v4592_v24  ;;  %v5169_v21 = vor.u32 %v6125_v8, %v5168_v7  ;;  %v6057_v23 = vld [vmem:[#allocation8 + $0x394] sm:$0xf0]  ;;  %v5152_v25 = vld [vmem:[#allocation8 + $0x588] sm:$0xf] }
 0x141   :  { %2906 = vmatpush.bf16.msrb.mxu2 %v5277_v26  ;;  %2932 = vmatpush.bf16.msra.mxu0 %v4513_v27  ;;  %v5213_v26 = vor.u32 %v6134_v6, %v5210_v9  ;;  %v5073_v27 = vor.u32 %v6101_v14, %v5072_v12  ;;  %v6061_v6 = vld [vmem:[#allocation8 + $0x3b4] sm:$0xf0]  ;;  %v5008_v12 = vld [vmem:[#allocation8 + $0x468] sm:$0xf] }
 0x142   :  { %v6085_v14 = vld [vmem:[#allocation8 + $0x474] sm:$0xf0]  ;;  %v4913_v20 = vor.u32 %v6061_v6, %v4912_v4  ;;  %v5136_v39 = vld [vmem:[#allocation8 + $0x568] sm:$0xf] }
 0x143   :  { %2918 = vmatpush.bf16.msrb.mxu3 %v5421_v36  ;;  %2944 = vmatpush.bf16.msra.mxu1 %v4657_v37  ;;  %v6166_v36 = vld [vmem:[#allocation8 + $0x704] sm:$0xf]  ;;  %v5338_v37 = vld [vmem:[#allocation8 + $0x710] sm:$0xf0]  ;;  %v5009_v24 = vor.u32 %v6085_v14, %v5008_v12  ;;  %v5120_v56 = vld [vmem:[#allocation8 + $0x548] sm:$0xf] }
 0x144   :  { %2859 = vmatmul.bf16.vlgmr.msra.gmra.mxu2 %v6701_v16  ;;  %v4704_v60 = vld [vmem:[#allocation8 + $0x208] sm:$0xf]  ;;  %v6165_v6 = vld [vmem:[#allocation8 + $0x6f4] sm:$0xf0] }
 0x145   :  { %2933 = vmatpush.bf16.msra.mxu0 %v4497_v38  ;;  %2907 = vmatpush.bf16.msrb.mxu2 %v5261_v42  ;;  %v5977_v38 = vld [vmem:[#allocation8 + $0x114] sm:$0xf0]  ;;  %v5200_v42 = vld [vmem:[#allocation8 + $0x5e8] sm:$0xf] }
 0x146   :  { %v5201_v55 = vor.u32 %v6133_v43, %v5200_v42  ;;  %v4976_v43 = vld [vmem:[#allocation8 + $0x428] sm:$0xf]  ;;  %v6109_v14 = vld [vmem:[#allocation8 + $0x534] sm:$0xf0] }
 0x147   :  { %2919 = vmatpush.bf16.msrb.mxu3 %v5405_v48  ;;  %2945 = vmatpush.bf16.msra.mxu1 %v4641_v49  ;;  %v5341_v48 = vor.u32 %v6166_v36, %v5338_v37  ;;  %v4577_v49 = vor.u32 %v5977_v38, %v4576_v40  ;;  %v4880_v37 = vld [vmem:[#allocation8 + $0x368] sm:$0xf]  ;;  %v4993_v40 = vor.u32 %v6081_v30, %v4992_v29  ;;  %v6053_v38 = vld [vmem:[#allocation8 + $0x374] sm:$0xf0] }
 0x148   :  { %v4848_v7 = vld [vmem:[#allocation8 + $0x328] sm:$0xf]  ;;  %v6105_v30 = vld [vmem:[#allocation8 + $0x514] sm:$0xf0] }
 0x149   :  { %2934 = vmatpush.bf16.msra.mxu0 %v4481_v51  ;;  %2908 = vmatpush.bf16.msrb.mxu2 %v5245_v57  ;;  %v6029_v51 = vld [vmem:[#allocation8 + $0x2b4] sm:$0xf0]  ;;  %v5041_v57 = vor.u32 %v6093_v46, %v5040_v45  ;;  %v4720_v45 = vld [vmem:[#allocation8 + $0x228] sm:$0xf] }
 0x14a   :  { %2872 = vmatmul.bf16.vlgmr.msra.gmra.mxu3 %v6704_v41  ;;  %v4785_v61 = vor.u32 %v6029_v51, %v4784_v50  ;;  %v6013_v46 = vld [vmem:[#allocation8 + $0x234] sm:$0xf0]  ;;  %v4864_v50 = vld [vmem:[#allocation8 + $0x348] sm:$0xf] }
 0x14b   :  { %2920 = vmatpush.bf16.msrb.mxu3 %v5389_v62  ;;  %2946 = vmatpush.bf16.msra.mxu1 %v4625_v63  ;;  %v5024_v62 = vld [vmem:[#allocation8 + $0x488] sm:$0xf]  ;;  %v6089_v63 = vld [vmem:[#allocation8 + $0x494] sm:$0xf0]  ;;  %v4721_v59 = vor.u32 %v6013_v46, %v4720_v45 }
 0x14c   :  { %v5104_v12 = vld [vmem:[#allocation8 + $0x528] sm:$0xf] }
 0x14d   :  { %2935 = vmatpush.bf16.msra.mxu0 %v4465_v1  ;;  %2909 = vmatpush.bf16.msrb.mxu2 %v5229_v5  ;;  %v6025_v1 = vld [vmem:[#allocation8 + $0x294] sm:$0xf0]  ;;  %v5025_v5 = vor.u32 %v6089_v63, %v5024_v62  ;;  %v5088_v29 = vld [vmem:[#allocation8 + $0x508] sm:$0xf] }
 0x14e   :  { %v4769_v9 = vor.u32 %v6025_v1, %v4768_v0  ;;  %v6073_v62 = vld [vmem:[#allocation8 + $0x414] sm:$0xf0]  ;;  %v5971_v0 = vld [vmem:[#allocation8 + $0xec] sm:$0xf]  ;;  %v4562_v1 = vld [vmem:[#allocation8 + $0xf8] sm:$0xf0] }
 0x14f   :  { %2921 = vmatpush.bf16.msrb.mxu3 %v5373_v17  ;;  %2947 = vmatpush.bf16.msra.mxu1 %v4609_v18  ;;  %v1431_v17 = vld [vmem:[#allocation10] sm:$0xf]  ;;  %v4752_v18 = vld [vmem:[#allocation8 + $0x268] sm:$0xf]  ;;  %v6009_v63 = vld [vmem:[#allocation8 + $0x214] sm:$0xf0] }
 0x150   :  { %v5440_v45 = vld [vmem:[#allocation8 + $0x7c8] sm:$0xf] }
 0x151   :  { %2936 = vmatpush.bf16.msra.mxu0 %v4449_v22  ;;  %2910 = vmatpush.bf16.msrb.mxu2 %v5213_v26  ;;  %v4896_v22 = vld [vmem:[#allocation8 + $0x388] sm:$0xf]  ;;  %v6121_v26 = vld [vmem:[#allocation8 + $0x594] sm:$0xf0] }
 0x152   :  { %v4897_v34 = vor.u32 %v6057_v23, %v4896_v22  ;;  %v5153_v36 = vor.u32 %v6121_v26, %v5152_v25  ;;  %v4546_v22 = vld [vmem:[#allocation8 + $0xd8] sm:$0xf0]  ;;  %v6161_v25 = vld [vmem:[#allocation8 + $0x6d4] sm:$0xf0]  ;;  %v4832_v26 = vld [vmem:[#allocation8 + $0x308] sm:$0xf] }
 0x153   :  { %2922 = vmatpush.bf16.msrb.mxu3 %v5357_v32  ;;  %2948 = vmatpush.bf16.msra.mxu1 %v4593_v33  ;;  %v6017_v32 = vld [vmem:[#allocation8 + $0x254] sm:$0xf0] }
 0x154   :  { %2937 = vmatmul.bf16.vlgmr.msra.gmra.mxu0 %v6693_v54  ;;  %2911 = vmatmul.bf16.vlgmr.msrb.gmra.mxu2 %v6719_v47  ;;  %v4737_v42 = vor.u32 %v6017_v32, %v4736_v31  ;;  %v5456_v31 = vld [vmem:[#allocation8 + $0x7e8] sm:$0xf] }
 0x155   :  { %2981 = vmatpush.bf16.msrb.mxu0 %v5073_v27  ;;  %2955 = vmatpush.bf16.msra.mxu2 %v4817_v28  ;;  %v1433_v27 = vperm.slane %v1431_v17, 0  ;;  %v4753_v28 = vor.u32 %v6021_v19, %v4752_v18  ;;  %v4705_v17 = vor.u32 %v6009_v63, %v4704_v60  ;;  %v4565_v18 = vor.u32 %v5971_v0, %v4562_v1  ;;  %v6153_v60 = vld [vmem:[#allocation8 + $0x694] sm:$0xf0]  ;;  %v5995_v0 = vld [vmem:[#allocation8 + $0x1ac] sm:$0xf] }
 0x156   :  { %v6189_v63 = vld [vmem:[#allocation8 + $0x7b4] sm:$0xf0]  ;;  %v4658_v1 = vld [vmem:[#allocation8 + $0x1b8] sm:$0xf0] }
 0x157   :  { %2923 = vmatpush.bf16.msrb.mxu3 %v5341_v48  ;;  %2949 = vmatpush.bf16.msra.mxu1 %v4577_v49  ;;  %v4881_v48 = vor.u32 %v6053_v38, %v4880_v37  ;;  %v4530_v38 = vld [vmem:[#allocation8 + $0xb8] sm:$0xf0] }
 0x158   :  { %v2730_v33 = vpop.f32.mrf.mxu0 }
 0x159   :  { %2982 = vmatpush.bf16.msrb.mxu0 %v5057_v13  ;;  %2956 = vmatpush.bf16.msra.mxu2 %v4801_v44  ;;  %v6117_v13 = vld [vmem:[#allocation8 + $0x574] sm:$0xf0]  ;;  %v2731_v15 = vadd.f32 %v2730_v33, %v1433_v27 }
 0x15a   :  { %2950 = vmatmul.bf16.vlgmr.msra.gmra.mxu1 %v6696_v11  ;;  %2924 = vmatmul.bf16.vlgmr.msrb.gmra.mxu3 %v6723_v10  ;;  %v6077_v44 = vld [vmem:[#allocation8 + $0x434] sm:$0xf0]  ;;  %v5137_v49 = vor.u32 %v6117_v13, %v5136_v39  ;;  %v5089_v13 = vor.u32 %v6105_v30, %v5088_v29  ;;  %v5987_v30 = vld [vmem:[#allocation8 + $0x16c] sm:$0xf] }
 0x15b   :  { %2968 = vmatpush.bf16.msra.mxu3 %v4945_v53  ;;  %2994 = vmatpush.bf16.msrb.mxu1 %v5201_v55  ;;  %v2743_v51 = vpop.f32.mrf.mxu1  ;;  %v4977_v53 = vor.u32 %v6077_v44, %v4976_v43  ;;  %v6049_v55 = vld [vmem:[#allocation8 + $0x354] sm:$0xf0]  ;;  %v5296_v43 = vld [vmem:[#allocation8 + $0x6a8] sm:$0xf] }
 0x15c   :  { %v6733_v58 = vadd.f32 %v2743_v51, %v2731_v15  ;;  %v6041_v27 = vld [vmem:[#allocation8 + $0x314] sm:$0xf0]  ;;  %v5959_v51 = vld [vmem:[#allocation8 + $0x8c] sm:$0xf] }
 0x15d   :  { %2983 = vmatpush.bf16.msrb.mxu0 %v5041_v57  ;;  %2957 = vmatpush.bf16.msra.mxu2 %v4785_v61  ;;  %v6113_v57 = vld [vmem:[#allocation8 + $0x554] sm:$0xf0]  ;;  %v4960_v61 = vld [vmem:[#allocation8 + $0x408] sm:$0xf]  ;;  %v4833_v39 = vor.u32 %v6041_v27, %v4832_v26 }
 0x15e   :  { %v5121_v4 = vor.u32 %v6113_v57, %v5120_v56  ;;  %v4961_v8 = vor.u32 %v6073_v62, %v4960_v61  ;;  %v6197_v33 = vld [vmem:[#allocation8 + $0x7f4] sm:$0xf0]  ;;  %v5424_v61 = vld [vmem:[#allocation8 + $0x7a8] sm:$0xf] }
 0x15f   :  { %2969 = vmatpush.bf16.msra.mxu3 %v4929_v2  ;;  %2995 = vmatpush.bf16.msrb.mxu1 %v5185_v3  ;;  %v4865_v3 = vor.u32 %v6049_v55, %v4864_v50  ;;  %v5457_v15 = vor.u32 %v6197_v33, %v5456_v31  ;;  %v6157_v44 = vld [vmem:[#allocation8 + $0x6b4] sm:$0xf0]  ;;  %v4674_v50 = vld [vmem:[#allocation8 + $0x1d8] sm:$0xf0]  ;;  %v5392_v27 = vld [vmem:[#allocation8 + $0x768] sm:$0xf] }
 0x160   :  { %v2732_v2 = vpop.f32.mrf.mxu0  ;;  %v5297_v55 = vor.u32 %v6157_v44, %v5296_v43  ;;  %v6145_v26 = vld [vmem:[#allocation8 + $0x654] sm:$0xf0]  ;;  %v4626_v31 = vld [vmem:[#allocation8 + $0x178] sm:$0xf0]  ;;  %v5983_v43 = vld [vmem:[#allocation8 + $0x14c] sm:$0xf] }
 0x161   :  { %2984 = vmatpush.bf16.msrb.mxu0 %v5025_v5  ;;  %2958 = vmatpush.bf16.msra.mxu2 %v4769_v9  ;;  %v5328_v5 = vld [vmem:[#allocation8 + $0x6e8] sm:$0xf]  ;;  %v6045_v9 = vld [vmem:[#allocation8 + $0x334] sm:$0xf0]  ;;  %v5955_v2 = vld [vmem:[#allocation8 + $0x6c] sm:$0xf] }
 0x162   :  { %v5329_v19 = vor.u32 %v6165_v6, %v5328_v5  ;;  %v4849_v23 = vor.u32 %v6045_v9, %v4848_v7  ;;  %v5425_v5 = vor.u32 %v6189_v63, %v5424_v61  ;;  %v4661_v6 = vor.u32 %v5995_v0, %v4658_v1  ;;  %v5264_v7 = vld [vmem:[#allocation8 + $0x668] sm:$0xf]  ;;  %v6181_v29 = vld [vmem:[#allocation8 + $0x774] sm:$0xf0]  ;;  %v4466_v33 = vld [vmem:[#allocation8 + $0x38] sm:$0xf0] }
 0x163   :  { %2970 = vmatpush.bf16.msra.mxu3 %v4913_v20  ;;  %2996 = vmatpush.bf16.msrb.mxu1 %v5169_v21  ;;  %v5312_v20 = vld [vmem:[#allocation8 + $0x6c8] sm:$0xf]  ;;  %v5967_v21 = vld [vmem:[#allocation8 + $0xcc] sm:$0xf]  ;;  %v4610_v44 = vld [vmem:[#allocation8 + $0x158] sm:$0xf0] }
 0x164   :  { %v4549_v32 = vor.u32 %v5967_v21, %v4546_v22  ;;  %v5313_v37 = vor.u32 %v6161_v25, %v5312_v20  ;;  %v5408_v9 = vld [vmem:[#allocation8 + $0x788] sm:$0xf]  ;;  %v5951_v20 = vld [vmem:[#allocation8 + $0x4c] sm:$0xf]  ;;  %v4482_v21 = vld [vmem:[#allocation8 + $0x58] sm:$0xf0] }
 0x165   :  { %2985 = vmatpush.bf16.msrb.mxu0 %v5009_v24  ;;  %2959 = vmatpush.bf16.msra.mxu2 %v4753_v28  ;;  %v5105_v24 = vor.u32 %v6109_v14, %v5104_v12  ;;  %v2745_v28 = vpop.f32.mrf.mxu1  ;;  %v6185_v14 = vld [vmem:[#allocation8 + $0x794] sm:$0xf0]  ;;  %v5248_v25 = vld [vmem:[#allocation8 + $0x648] sm:$0xf]  ;;  %v4818_v61 = vld [vmem:[#allocation8 + $0x2f8] sm:$0xf0] }
 0x166   :  { %v4485_v28 = vor.u32 %v5951_v20, %v4482_v21  ;;  %v6173_v63 = vld [vmem:[#allocation8 + $0x734] sm:$0xf0]  ;;  %v5979_v1 = vld [vmem:[#allocation8 + $0x12c] sm:$0xf]  ;;  %v4578_v20 = vld [vmem:[#allocation8 + $0x118] sm:$0xf0] }
 0x167   :  { %2971 = vmatpush.bf16.msra.mxu3 %v4897_v34  ;;  %2997 = vmatpush.bf16.msrb.mxu1 %v5153_v36  ;;  %v6003_v34 = vld [vmem:[#allocation8 + $0x1ec] sm:$0xf]  ;;  %v4690_v36 = vld [vmem:[#allocation8 + $0x1f8] sm:$0xf0] }
 0x169   :  { %2986 = vmatpush.bf16.msrb.mxu0 %v4993_v40  ;;  %2960 = vmatpush.bf16.msra.mxu2 %v4737_v42  ;;  %v5963_v40 = vld [vmem:[#allocation8 + $0xac] sm:$0xf]  ;;  %v4693_v42 = vor.u32 %v6003_v34, %v4690_v36  ;;  %v5249_v34 = vor.u32 %v6145_v26, %v5248_v25  ;;  %v5393_v36 = vor.u32 %v6181_v29, %v5392_v27  ;;  %v5202_v26 = vld [vmem:[#allocation8 + $0x5f8] sm:$0xf0] }
 0x16a   :  { %v4533_v46 = vor.u32 %v5963_v40, %v4530_v38  ;;  %v5232_v40 = vld [vmem:[#allocation8 + $0x628] sm:$0xf]  ;;  %v6141_v38 = vld [vmem:[#allocation8 + $0x634] sm:$0xf0]  ;;  %v6131_v25 = vld [vmem:[#allocation8 + $0x5ec] sm:$0xf] }
 0x16b   :  { %2972 = vmatpush.bf16.msra.mxu3 %v4881_v48  ;;  %2998 = vmatpush.bf16.msrb.mxu1 %v5137_v49  ;;  %v6193_v48 = vld [vmem:[#allocation8 + $0x7d4] sm:$0xf0]  ;;  %v5999_v49 = vld [vmem:[#allocation8 + $0x1cc] sm:$0xf] }
 0x16c   :  { %v5441_v56 = vor.u32 %v6193_v48, %v5440_v45  ;;  %v4677_v57 = vor.u32 %v5999_v49, %v4674_v50  ;;  %v5943_v45 = vld [vmem:[#allocation8 + $0xc] sm:$0xf]  ;;  %v5233_v49 = vor.u32 %v6141_v38, %v5232_v40  ;;  %v4930_v38 = vld [vmem:[#allocation8 + $0x3d8] sm:$0xf0] }
 0x16d   :  { %2987 = vmatpush.bf16.msrb.mxu0 %v4977_v53  ;;  %2961 = vmatpush.bf16.msra.mxu2 %v4721_v59  ;;  %v4514_v53 = vld [vmem:[#allocation8 + $0x98] sm:$0xf0]  ;;  %v5280_v59 = vld [vmem:[#allocation8 + $0x688] sm:$0xf]  ;;  %v6099_v50 = vld [vmem:[#allocation8 + $0x4ec] sm:$0xf] }
 0x16e   :  { %v4517_v62 = vor.u32 %v5959_v51, %v4514_v53  ;;  %v5074_v51 = vld [vmem:[#allocation8 + $0x4f8] sm:$0xf0]  ;;  %v6091_v27 = vld [vmem:[#allocation8 + $0x4ac] sm:$0xf] }
 0x16f   :  { %2973 = vmatpush.bf16.msra.mxu3 %v4865_v3  ;;  %2999 = vmatpush.bf16.msrb.mxu1 %v5121_v4  ;;  %v4498_v3 = vld [vmem:[#allocation8 + $0x78] sm:$0xf0]  ;;  %v5281_v4 = vor.u32 %v6153_v60, %v5280_v59  ;;  %v6035_v59 = vld [vmem:[#allocation8 + $0x2ec] sm:$0xf]  ;;  %v5077_v0 = vor.u32 %v6099_v50, %v5074_v51 }
 0x170   :  { %v4501_v12 = vor.u32 %v5955_v2, %v4498_v3  ;;  %v4594_v2 = vld [vmem:[#allocation8 + $0x138] sm:$0xf0]  ;;  %v6063_v40 = vld [vmem:[#allocation8 + $0x3cc] sm:$0xf] }
 0x171   :  { %2988 = vmatpush.bf16.msrb.mxu0 %v4961_v8  ;;  %2962 = vmatpush.bf16.msra.mxu2 %v4705_v17  ;;  %v6149_v8 = vld [vmem:[#allocation8 + $0x674] sm:$0xf0]  ;;  %v5991_v17 = vld [vmem:[#allocation8 + $0x18c] sm:$0xf] }
 0x172   :  { %v5265_v22 = vor.u32 %v6149_v8, %v5264_v7  ;;  %v6031_v8 = vld [vmem:[#allocation8 + $0x2cc] sm:$0xf] }
 0x173   :  { %2974 = vmatpush.bf16.msra.mxu3 %v4849_v23  ;;  %3000 = vmatpush.bf16.msrb.mxu1 %v5105_v24  ;;  %v5409_v23 = vor.u32 %v6185_v14, %v5408_v9  ;;  %v4802_v9 = vld [vmem:[#allocation8 + $0x2d8] sm:$0xf0]  ;;  %v4597_v14 = vor.u32 %v5979_v1, %v4594_v2  ;;  %v6059_v51 = vld [vmem:[#allocation8 + $0x3ac] sm:$0xf] }
 0x174   :  { %2963 = vmatmul.bf16.vlgmr.msra.gmra.mxu2 %v6701_v16  ;;  %2989 = vmatmul.bf16.vlgmr.msrb.gmra.mxu0 %v6709_v35  ;;  %v4805_v29 = vor.u32 %v6031_v8, %v4802_v9  ;;  %v6055_v2 = vld [vmem:[#allocation8 + $0x38c] sm:$0xf] }
 0x175   :  { %3033 = vmatpush.bf16.msra.mxu0 %v4565_v18  ;;  %3007 = vmatpush.bf16.msrb.mxu2 %v5329_v19  ;;  %v4642_v18 = vld [vmem:[#allocation8 + $0x198] sm:$0xf0] }
 0x176   :  { %v4645_v24 = vor.u32 %v5991_v17, %v4642_v18  ;;  %v6169_v17 = vld [vmem:[#allocation8 + $0x714] sm:$0xf0]  ;;  %v5975_v18 = vld [vmem:[#allocation8 + $0x10c] sm:$0xf] }
 0x177   :  { %2975 = vmatpush.bf16.msra.mxu3 %v4833_v39  ;;  %3001 = vmatpush.bf16.msrb.mxu1 %v5089_v13  ;;  %v6739_v19 = vpop.f32.mrf.mxu2  ;;  %v5376_v39 = vld [vmem:[#allocation8 + $0x748] sm:$0xf] }
 0x179   :  { %3034 = vmatpush.bf16.msra.mxu0 %v4549_v32  ;;  %3008 = vmatpush.bf16.msrb.mxu2 %v5313_v37  ;;  %v5947_v32 = vld [vmem:[#allocation8 + $0x2c] sm:$0xf]  ;;  %v4629_v37 = vor.u32 %v5987_v30, %v4626_v31  ;;  %v4581_v31 = vor.u32 %v5975_v18, %v4578_v20 }
 0x17a   :  { %2976 = vmatmul.bf16.vlgmr.msra.gmra.mxu3 %v6704_v41  ;;  %3002 = vmatmul.bf16.vlgmr.msrb.gmra.mxu1 %v6712_v52 }
 0x17b   :  { %3020 = vmatpush.bf16.msrb.mxu3 %v5457_v15  ;;  %3046 = vmatpush.bf16.msra.mxu1 %v4693_v42  ;;  %v4469_v15 = vor.u32 %v5947_v32, %v4466_v33  ;;  %v6177_v42 = vld [vmem:[#allocation8 + $0x754] sm:$0xf0]  ;;  %v6027_v33 = vld [vmem:[#allocation8 + $0x2ac] sm:$0xf] }
 0x17c   :  { %v5377_v53 = vor.u32 %v6177_v42, %v5376_v39  ;;  %v6127_v39 = vld [vmem:[#allocation8 + $0x5cc] sm:$0xf] }
 0x17d   :  { %3035 = vmatpush.bf16.msra.mxu0 %v4533_v46  ;;  %3009 = vmatpush.bf16.msrb.mxu2 %v5297_v55  ;;  %v6741_v13 = vpop.f32.mrf.mxu3  ;;  %v4450_v46 = vld [vmem:[#allocation8 + $0x18] sm:$0xf0]  ;;  %v4613_v55 = vor.u32 %v5983_v43, %v4610_v44  ;;  %v6087_v42 = vld [vmem:[#allocation8 + $0x48c] sm:$0xf] }
 0x17e   :  { %v4453_v60 = vor.u32 %v5943_v45, %v4450_v46  ;;  %v5026_v43 = vld [vmem:[#allocation8 + $0x498] sm:$0xf0]  ;;  %v6023_v45 = vld [vmem:[#allocation8 + $0x28c] sm:$0xf] }
 0x17f   :  { %3021 = vmatpush.bf16.msrb.mxu3 %v5441_v56  ;;  %3047 = vmatpush.bf16.msra.mxu1 %v4677_v57  ;;  %v2758_v48 = vpop.f32.mrf.mxu2  ;;  %v5216_v56 = vld [vmem:[#allocation8 + $0x608] sm:$0xf]  ;;  %v6137_v57 = vld [vmem:[#allocation8 + $0x614] sm:$0xf0]  ;;  %v4770_v46 = vld [vmem:[#allocation8 + $0x298] sm:$0xf0]  ;;  %v5029_v50 = vor.u32 %v6087_v42, %v5026_v43 }
 0x180   :  { %v5217_v3 = vor.u32 %v6137_v57, %v5216_v56  ;;  %v5170_v56 = vld [vmem:[#allocation8 + $0x5b8] sm:$0xf0]  ;;  %v6083_v57 = vld [vmem:[#allocation8 + $0x46c] sm:$0xf] }
 0x181   :  { %3036 = vmatpush.bf16.msra.mxu0 %v4517_v62  ;;  %3010 = vmatpush.bf16.msrb.mxu2 %v5281_v4  ;;  %v5360_v62 = vld [vmem:[#allocation8 + $0x728] sm:$0xf]  ;;  %v6095_v4 = vld [vmem:[#allocation8 + $0x4cc] sm:$0xf]  ;;  %v6213_v42 = vld [vmem:[#allocation11 + $0x74] sm:$0xf0] }
 0x182   :  { %v5361_v7 = vor.u32 %v6173_v63, %v5360_v62  ;;  %v6019_v62 = vld [vmem:[#allocation8 + $0x26c] sm:$0xf]  ;;  %v4754_v63 = vld [vmem:[#allocation8 + $0x278] sm:$0xf0] }
 0x183   :  { %3022 = vmatpush.bf16.msrb.mxu3 %v5425_v5  ;;  %3048 = vmatpush.bf16.msra.mxu1 %v4661_v6  ;;  %v5058_v5 = vld [vmem:[#allocation8 + $0x4d8] sm:$0xf0]  ;;  %v4821_v6 = vor.u32 %v6035_v59, %v4818_v61  ;;  %v4757_v8 = vor.u32 %v6019_v62, %v4754_v63  ;;  %v5512_v62 = vld [vmem:[#allocation11 + $0x60] sm:$0xf]  ;;  %v6211_v63 = vld [vmem:[#allocation11 + $0x64] sm:$0xf0] }
 0x184   :  { %v5010_v59 = vld [vmem:[#allocation8 + $0x478] sm:$0xf0] }
 0x185   :  { %3037 = vmatpush.bf16.msra.mxu0 %v4501_v12  ;;  %3011 = vmatpush.bf16.msrb.mxu2 %v5265_v22  ;;  %v5344_v12 = vld [vmem:[#allocation8 + $0x708] sm:$0xf]  ;;  %v2771_v21 = vpop.f32.mrf.mxu3  ;;  %v5061_v22 = vor.u32 %v6095_v4, %v5058_v5  ;;  %v5013_v1 = vor.u32 %v6083_v57, %v5010_v59  ;;  %v6119_v4 = vld [vmem:[#allocation8 + $0x58c] sm:$0xf]  ;;  %v5154_v5 = vld [vmem:[#allocation8 + $0x598] sm:$0xf0] }
 0x186   :  { %v5345_v30 = vor.u32 %v6169_v17, %v5344_v12  ;;  %v6015_v12 = vld [vmem:[#allocation8 + $0x24c] sm:$0xf]  ;;  %v5157_v18 = vor.u32 %v6119_v4, %v5154_v5 }
 0x187   :  { %3023 = vmatpush.bf16.msrb.mxu3 %v5409_v23  ;;  %3049 = vmatpush.bf16.msra.mxu1 %v4645_v24  ;;  %v6067_v23 = vld [vmem:[#allocation8 + $0x3ec] sm:$0xf]  ;;  %v4946_v24 = vld [vmem:[#allocation8 + $0x3f8] sm:$0xf0] }
 0x188   :  { %v4949_v32 = vor.u32 %v6067_v23, %v4946_v24  ;;  %v6051_v21 = vld [vmem:[#allocation8 + $0x36c] sm:$0xf]  ;;  %v5138_v24 = vld [vmem:[#allocation8 + $0x578] sm:$0xf0] }
 0x189   :  { %3038 = vmatpush.bf16.msra.mxu0 %v4485_v28  ;;  %3012 = vmatpush.bf16.msrb.mxu2 %v5249_v34  ;;  %v5042_v28 = vld [vmem:[#allocation8 + $0x4b8] sm:$0xf0]  ;;  %v6115_v23 = vld [vmem:[#allocation8 + $0x56c] sm:$0xf] }
 0x18a   :  { %v4786_v34 = vld [vmem:[#allocation8 + $0x2b8] sm:$0xf0]  ;;  %v6107_v59 = vld [vmem:[#allocation8 + $0x52c] sm:$0xf] }
 0x18b   :  { %3024 = vmatpush.bf16.msrb.mxu3 %v5393_v36  ;;  %3050 = vmatpush.bf16.msra.mxu1 %v4629_v37  ;;  %v5205_v36 = vor.u32 %v6131_v25, %v5202_v26  ;;  %v5045_v37 = vor.u32 %v6091_v27, %v5042_v28  ;;  %v4789_v44 = vor.u32 %v6027_v33, %v4786_v34  ;;  %v6075_v25 = vld [vmem:[#allocation8 + $0x42c] sm:$0xf]  ;;  %v4978_v26 = vld [vmem:[#allocation8 + $0x438] sm:$0xf0] }
 0x18c   :  { %v6047_v33 = vld [vmem:[#allocation8 + $0x34c] sm:$0xf]  ;;  %v4866_v34 = vld [vmem:[#allocation8 + $0x358] sm:$0xf0] }
 0x18d   :  { %3039 = vmatpush.bf16.msra.mxu0 %v4469_v15  ;;  %3013 = vmatpush.bf16.msrb.mxu2 %v5233_v49  ;;  %v5186_v15 = vld [vmem:[#allocation8 + $0x5d8] sm:$0xf0]  ;;  %v6039_v4 = vld [vmem:[#allocation8 + $0x30c] sm:$0xf] }
 0x18e   :  { %v5189_v49 = vor.u32 %v6127_v39, %v5186_v15  ;;  %v5520_v15 = vld [vmem:[#allocation11 + $0x70] sm:$0xf] }
 0x18f   :  { %3025 = vmatpush.bf16.msrb.mxu3 %v5377_v53  ;;  %3051 = vmatpush.bf16.msra.mxu1 %v4613_v55  ;;  %v4914_v53 = vld [vmem:[#allocation8 + $0x3b8] sm:$0xf0]  ;;  %v6123_v55 = vld [vmem:[#allocation8 + $0x5ac] sm:$0xf]  ;;  %v5521_v57 = vor.u32 %v6213_v42, %v5520_v15 }
 0x190   :  { %v4917_v61 = vor.u32 %v6059_v51, %v4914_v53  ;;  %v5330_v53 = vld [vmem:[#allocation8 + $0x6f8] sm:$0xf0] }
 0x191   :  { %3040 = vmatpush.bf16.msra.mxu0 %v4453_v60  ;;  %3014 = vmatpush.bf16.msrb.mxu2 %v5217_v3  ;;  %v6745_v48 = vpop.f32.mrf.mxu0  ;;  %v4773_v60 = vor.u32 %v6023_v45, %v4770_v46  ;;  %v4898_v3 = vld [vmem:[#allocation8 + $0x398] sm:$0xf0]  ;;  %v6163_v46 = vld [vmem:[#allocation8 + $0x6ec] sm:$0xf] }
 0x192   :  { %v4901_v9 = vor.u32 %v6055_v2, %v4898_v3  ;;  %v4706_v45 = vld [vmem:[#allocation8 + $0x218] sm:$0xf0]  ;;  %v6159_v2 = vld [vmem:[#allocation8 + $0x6cc] sm:$0xf] }
 0x193   :  { %3026 = vmatpush.bf16.msrb.mxu3 %v5361_v7  ;;  %3052 = vmatpush.bf16.msra.mxu1 %v4597_v14  ;;  %v4994_v7 = vld [vmem:[#allocation8 + $0x458] sm:$0xf0] }
 0x194   :  { %3041 = vmatmul.bf16.vlgmr.msra.gmra.mxu0 %v6693_v54  ;;  %3015 = vmatmul.bf16.vlgmr.msrb.gmra.mxu2 %v6719_v47  ;;  %v4933_v54 = vor.u32 %v6063_v40, %v4930_v38  ;;  %v4738_v14 = vld [vmem:[#allocation8 + $0x258] sm:$0xf0]  ;;  %v6071_v40 = vld [vmem:[#allocation8 + $0x40c] sm:$0xf] }
 0x195   :  { %3085 = vmatpush.bf16.msrb.mxu0 %v5077_v0  ;;  %3059 = vmatpush.bf16.msra.mxu2 %v4821_v6  ;;  %v5173_v0 = vor.u32 %v6123_v55, %v5170_v56  ;;  %v6079_v6 = vld [vmem:[#allocation8 + $0x44c] sm:$0xf]  ;;  %v4741_v27 = vor.u32 %v6015_v12, %v4738_v14  ;;  %v4962_v38 = vld [vmem:[#allocation8 + $0x418] sm:$0xf0] }
 0x196   :  { %v4997_v20 = vor.u32 %v6079_v6, %v4994_v7  ;;  %v4965_v51 = vor.u32 %v6071_v40, %v4962_v38  ;;  %v6043_v55 = vld [vmem:[#allocation8 + $0x32c] sm:$0xf]  ;;  %v4850_v56 = vld [vmem:[#allocation8 + $0x338] sm:$0xf0] }
 0x197   :  { %3027 = vmatpush.bf16.msrb.mxu3 %v5345_v30  ;;  %3053 = vmatpush.bf16.msra.mxu1 %v4581_v31  ;;  %v4722_v30 = vld [vmem:[#allocation8 + $0x238] sm:$0xf0]  ;;  %v5141_v31 = vor.u32 %v6115_v23, %v5138_v24  ;;  %v6103_v7 = vld [vmem:[#allocation8 + $0x50c] sm:$0xf] }
 0x198   :  { %v5314_v3 = vld [vmem:[#allocation8 + $0x6d8] sm:$0xf0]  ;;  %v6195_v12 = vld [vmem:[#allocation8 + $0x7ec] sm:$0xf] }
 0x199   :  { %3086 = vmatpush.bf16.msrb.mxu0 %v5061_v22  ;;  %3060 = vmatpush.bf16.msra.mxu2 %v4805_v29  ;;  %v2784_v17 = vpop.f32.mrf.mxu0  ;;  %v4882_v22 = vld [vmem:[#allocation8 + $0x378] sm:$0xf0]  ;;  %v6011_v29 = vld [vmem:[#allocation8 + $0x22c] sm:$0xf]  ;;  %v5317_v23 = vor.u32 %v6159_v2, %v5314_v3 }
 0x19a   :  { %3028 = vmatmul.bf16.vlgmr.msrb.gmra.mxu3 %v6723_v10  ;;  %3054 = vmatmul.bf16.vlgmr.msra.gmra.mxu1 %v6696_v11  ;;  %v6749_v11 = vpop.f32.mrf.mxu1  ;;  %v4885_v28 = vor.u32 %v6051_v21, %v4882_v22  ;;  %v4725_v39 = vor.u32 %v6011_v29, %v4722_v30  ;;  %v4834_v6 = vld [vmem:[#allocation8 + $0x318] sm:$0xf0]  ;;  %v5504_v17 = vld [vmem:[#allocation11 + $0x50] sm:$0xf]  ;;  %v6227_v40 = vld [vmem:[#allocation11 + $0xe4] sm:$0xf0] }
 0x19b   :  { %3072 = vmatpush.bf16.msra.mxu3 %v4949_v32  ;;  %3098 = vmatpush.bf16.msrb.mxu1 %v5205_v36  ;;  %v4981_v32 = vor.u32 %v6075_v25, %v4978_v26  ;;  %v6111_v36 = vld [vmem:[#allocation8 + $0x54c] sm:$0xf]  ;;  %v5458_v14 = vld [vmem:[#allocation8 + $0x7f8] sm:$0xf0]  ;;  %v4837_v24 = vor.u32 %v6039_v4, %v4834_v6 }
 0x19c   :  { %v6229_v21 = vld [vmem:[#allocation11 + $0xf4] sm:$0xf0]  ;;  %v6223_v2 = vld [vmem:[#allocation11 + $0xc4] sm:$0xf0] }
 0x19d   :  { %3087 = vmatpush.bf16.msrb.mxu0 %v5045_v37  ;;  %3061 = vmatpush.bf16.msra.mxu2 %v4789_v44  ;;  %v5122_v37 = vld [vmem:[#allocation8 + $0x558] sm:$0xf0]  ;;  %v4869_v44 = vor.u32 %v6047_v33, %v4866_v34  ;;  %v5496_v33 = vld [vmem:[#allocation11 + $0x40] sm:$0xf] }
 0x19e   :  { %v5298_v29 = vld [vmem:[#allocation8 + $0x6b8] sm:$0xf0] }
 0x19f   :  { %3073 = vmatpush.bf16.msra.mxu3 %v4933_v54  ;;  %3099 = vmatpush.bf16.msrb.mxu1 %v5189_v49  ;;  %v6007_v54 = vld [vmem:[#allocation8 + $0x20c] sm:$0xf]  ;;  %v5282_v15 = vld [vmem:[#allocation8 + $0x698] sm:$0xf0] }
 0x1a1   :  { %3088 = vmatpush.bf16.msrb.mxu0 %v5029_v50  ;;  %3062 = vmatpush.bf16.msra.mxu2 %v4773_v60  ;;  %v6751_v49 = vpop.f32.mrf.mxu0  ;;  %v5125_v50 = vor.u32 %v6111_v36, %v5122_v37  ;;  %v5106_v60 = vld [vmem:[#allocation8 + $0x538] sm:$0xf0]  ;;  %v6207_v36 = vld [vmem:[#allocation11 + $0x44] sm:$0xf0]  ;;  %v5576_v37 = vld [vmem:[#allocation11 + $0xe0] sm:$0xf] }
 0x1a2   :  { %v2797_v43 = vpop.f32.mrf.mxu1  ;;  %v5109_v5 = vor.u32 %v6107_v59, %v5106_v60  ;;  %v5497_v42 = vor.u32 %v6207_v36, %v5496_v33  ;;  %v5266_v59 = vld [vmem:[#allocation8 + $0x678] sm:$0xf0]  ;;  %v2757_v60 = vadd.f32 %v6739_v19, %v6733_v58  ;;  %v6199_v36 = vld [vmem:[#allocation11 + $0x4] sm:$0xf0] }
 0x1a3   :  { %3074 = vmatpush.bf16.msra.mxu3 %v4917_v61  ;;  %3100 = vmatpush.bf16.msrb.mxu1 %v5173_v0  ;;  %v4709_v61 = vor.u32 %v6007_v54, %v4706_v45  ;;  %v5333_v0 = vor.u32 %v6163_v46, %v5330_v53  ;;  %v5426_v43 = vld [vmem:[#allocation8 + $0x7b8] sm:$0xf0]  ;;  %v5577_v54 = vor.u32 %v6227_v40, %v5576_v37  ;;  %v5568_v46 = vld [vmem:[#allocation11 + $0xd0] sm:$0xf]  ;;  %v6219_v37 = vld [vmem:[#allocation11 + $0xa4] sm:$0xf0] }
 0x1a4   :  { %v6205_v45 = vld [vmem:[#allocation11 + $0x34] sm:$0xf0]  ;;  %v2770_v3 = vadd.f32 %v6741_v13, %v2757_v60  ;;  %v6210_v60 = vld [vmem:[#allocation11 + $0x64] sm:$0xf] }
 0x1a5   :  { %3089 = vmatpush.bf16.msrb.mxu0 %v5013_v1  ;;  %3063 = vmatpush.bf16.msra.mxu2 %v4757_v8  ;;  %v4853_v1 = vor.u32 %v6043_v55, %v4850_v56  ;;  %v5090_v8 = vld [vmem:[#allocation8 + $0x518] sm:$0xf0] }
 0x1a6   :  { %v5093_v26 = vor.u32 %v6103_v7, %v5090_v8  ;;  %v6143_v7 = vld [vmem:[#allocation8 + $0x64c] sm:$0xf]  ;;  %v5250_v8 = vld [vmem:[#allocation8 + $0x658] sm:$0xf0]  ;;  %v2783_v58 = vadd.f32 %v6745_v48, %v2770_v3 }
 0x1a7   :  { %3075 = vmatpush.bf16.msra.mxu3 %v4901_v9  ;;  %3101 = vmatpush.bf16.msrb.mxu1 %v5157_v18  ;;  %v5513_v9 = vor.u32 %v6211_v63, %v5512_v62  ;;  %v6209_v18 = vld [vmem:[#allocation11 + $0x54] sm:$0xf0]  ;;  %v5480_v63 = vld [vmem:[#allocation11 + $0x20] sm:$0xf]  ;;  %v6139_v48 = vld [vmem:[#allocation8 + $0x62c] sm:$0xf] }
 0x1a8   :  { %v5505_v30 = vor.u32 %v6209_v18, %v5504_v17  ;;  %v5410_v62 = vld [vmem:[#allocation8 + $0x798] sm:$0xf0]  ;;  %v2796_v13 = vadd.f32 %v6749_v11, %v2783_v58  ;;  %v5544_v11 = vld [vmem:[#allocation11 + $0xa0] sm:$0xf]  ;;  %v6208_v58 = vld [vmem:[#allocation11 + $0x54] sm:$0xf] }
 0x1a9   :  { %3090 = vmatpush.bf16.msrb.mxu0 %v4997_v20  ;;  %3064 = vmatpush.bf16.msra.mxu2 %v4741_v27  ;;  %v5584_v20 = vld [vmem:[#allocation11 + $0xf0] sm:$0xf]  ;;  %v2836_v25 = vpop.f32.mrf.mxu0  ;;  %v5461_v27 = vor.u32 %v6195_v12, %v5458_v14  ;;  %v5394_v12 = vld [vmem:[#allocation8 + $0x778] sm:$0xf0] }
 0x1aa   :  { %v6753_v22 = vpop.f32.mrf.mxu1  ;;  %v5585_v34 = vor.u32 %v6229_v21, %v5584_v20  ;;  %v5472_v14 = vld [vmem:[#allocation11 + $0x10] sm:$0xf]  ;;  %v6201_v18 = vld [vmem:[#allocation11 + $0x14] sm:$0xf0] }
 0x1ab   :  { %3076 = vmatpush.bf16.msra.mxu3 %v4885_v28  ;;  %3102 = vmatpush.bf16.msrb.mxu1 %v5141_v31  ;;  %v6155_v28 = vld [vmem:[#allocation8 + $0x6ac] sm:$0xf]  ;;  %v5552_v20 = vld [vmem:[#allocation11 + $0xb0] sm:$0xf]  ;;  %v6221_v21 = vld [vmem:[#allocation11 + $0xb4] sm:$0xf0] }
 0x1ac   :  { %v6191_v31 = vld [vmem:[#allocation8 + $0x7cc] sm:$0xf]  ;;  %v5301_v38 = vor.u32 %v6155_v28, %v5298_v29  ;;  %v5473_v29 = vor.u32 %v6201_v18, %v5472_v14  ;;  %v5553_v33 = vor.u32 %v6221_v21, %v5552_v20  ;;  %v6226_v20 = vld [vmem:[#allocation11 + $0xe4] sm:$0xf]  ;;  %v5578_v21 = vld [vmem:[#allocation11 + $0xe8] sm:$0xf0] }
 0x1ad   :  { %3091 = vmatpush.bf16.msrb.mxu0 %v4981_v32  ;;  %3065 = vmatpush.bf16.msra.mxu2 %v4725_v39  ;;  %v5442_v32 = vld [vmem:[#allocation8 + $0x7d8] sm:$0xf0]  ;;  %v6151_v39 = vld [vmem:[#allocation8 + $0x68c] sm:$0xf] }
 0x1ae   :  { %v5285_v53 = vor.u32 %v6151_v39, %v5282_v15  ;;  %v6212_v39 = vld [vmem:[#allocation11 + $0x74] sm:$0xf]  ;;  %v5522_v15 = vld [vmem:[#allocation11 + $0x78] sm:$0xf0] }
 0x1af   :  { %3077 = vmatpush.bf16.msra.mxu3 %v4869_v44  ;;  %3103 = vmatpush.bf16.msrb.mxu1 %v5125_v50  ;;  %v5488_v44 = vld [vmem:[#allocation11 + $0x30] sm:$0xf]  ;;  %v6225_v50 = vld [vmem:[#allocation11 + $0xd4] sm:$0xf0] }
 0x1b1   :  { %3092 = vmatpush.bf16.msrb.mxu0 %v4965_v51  ;;  %3066 = vmatpush.bf16.msra.mxu2 %v4709_v61  ;;  %v6759_v55 = vpop.f32.mrf.mxu0  ;;  %v5489_v61 = vor.u32 %v6205_v45, %v5488_v44  ;;  %v5362_v45 = vld [vmem:[#allocation8 + $0x738] sm:$0xf0] }
 0x1b2   :  { %v2849_v51 = vpop.f32.mrf.mxu1 }
 0x1b3   :  { %3078 = vmatpush.bf16.msra.mxu3 %v4853_v1  ;;  %3104 = vmatpush.bf16.msrb.mxu1 %v5109_v5  ;;  %v5560_v1 = vld [vmem:[#allocation11 + $0xc0] sm:$0xf]  ;;  %v5536_v51 = vld [vmem:[#allocation11 + $0x90] sm:$0xf] }
 0x1b4   :  { %3093 = vmatmul.bf16.vlgmr.msrb.gmra.mxu0 %v6709_v35  ;;  %3067 = vmatmul.bf16.vlgmr.msra.gmra.mxu2 %v6701_v16  ;;  %v5445_v35 = vor.u32 %v6191_v31, %v5442_v32  ;;  %v6187_v16 = vld [vmem:[#allocation8 + $0x7ac] sm:$0xf]  ;;  %v5561_v17 = vor.u32 %v6223_v2, %v5560_v1  ;;  %v5378_v31 = vld [vmem:[#allocation8 + $0x758] sm:$0xf0]  ;;  %v5464_v32 = vld [vmem:[#allocation11] sm:$0xf] }
 0x1b5   :  { %3535 = vmatpush.bf16.msra.mxu0 %v5521_v57  ;;  %3111 = vmatpush.bf16.msrb.mxu2 %v5333_v0  ;;  %v5429_v56 = vor.u32 %v6187_v16, %v5426_v43  ;;  %v6147_v57 = vld [vmem:[#allocation8 + $0x66c] sm:$0xf]  ;;  %v5569_v0 = vor.u32 %v6225_v50, %v5568_v46  ;;  %v5218_v43 = vld [vmem:[#allocation8 + $0x618] sm:$0xf0]  ;;  %v5465_v44 = vor.u32 %v6199_v36, %v5464_v32  ;;  %v5490_v32 = vld [vmem:[#allocation11 + $0x38] sm:$0xf0] }
 0x1b6   :  { %v5269_v5 = vor.u32 %v6147_v57, %v5266_v59  ;;  %v6135_v16 = vld [vmem:[#allocation8 + $0x60c] sm:$0xf]  ;;  %v5545_v46 = vor.u32 %v6219_v37, %v5544_v11  ;;  %v5525_v50 = vor.u32 %v6212_v39, %v5522_v15  ;;  %v6222_v11 = vld [vmem:[#allocation11 + $0xc4] sm:$0xf]  ;;  %v5562_v37 = vld [vmem:[#allocation11 + $0xc8] sm:$0xf0] }
 0x1b7   :  { %3079 = vmatpush.bf16.msra.mxu3 %v4837_v24  ;;  %3105 = vmatpush.bf16.msrb.mxu1 %v5093_v26  ;;  %v2808_v4 = vpop.f32.mrf.mxu2  ;;  %v5253_v24 = vor.u32 %v6143_v7, %v5250_v8  ;;  %v5221_v57 = vor.u32 %v6135_v16, %v5218_v43  ;;  %v6215_v1 = vld [vmem:[#allocation11 + $0x84] sm:$0xf0]  ;;  %v5565_v39 = vor.u32 %v6222_v11, %v5562_v37  ;;  %v5648_v15 = vld [vmem:[#allocation11 + $0x170] sm:$0xf]  ;;  %v6220_v16 = vld [vmem:[#allocation11 + $0xb4] sm:$0xf] }
 0x1b8   :  { %v2809_v28 = vadd.f32 %v2808_v4, %v2796_v13  ;;  %v6228_v4 = vld [vmem:[#allocation11 + $0xf4] sm:$0xf]  ;;  %v6206_v13 = vld [vmem:[#allocation11 + $0x44] sm:$0xf]  ;;  %v5554_v43 = vld [vmem:[#allocation11 + $0xb8] sm:$0xf0] }
 0x1b9   :  { %3536 = vmatpush.bf16.msra.mxu0 %v5513_v9  ;;  %3112 = vmatpush.bf16.msrb.mxu2 %v5317_v23  ;;  %v6179_v9 = vld [vmem:[#allocation8 + $0x76c] sm:$0xf]  ;;  %v2888_v25 = vpop.f32.mrf.mxu0  ;;  %v5592_v11 = vld [vmem:[#allocation11 + $0x100] sm:$0xf] }
 0x1ba   :  { %3080 = vmatmul.bf16.vlgmr.msra.gmra.mxu3 %v6704_v41  ;;  %3106 = vmatmul.bf16.vlgmr.msrb.gmra.mxu1 %v6712_v52  ;;  %v6183_v41 = vld [vmem:[#allocation8 + $0x78c] sm:$0xf]  ;;  %v6766_v23 = vpop.f32.mrf.mxu1  ;;  %v5397_v26 = vor.u32 %v6179_v9, %v5394_v12  ;;  %v6770_v12 = vld [vmem:[#allocation10] sm:$0xf] }
 0x1bb   :  { %3124 = vmatpush.bf16.msrb.mxu3 %v5461_v27  ;;  %3548 = vmatpush.bf16.msra.mxu1 %v5585_v34  ;;  %v6203_v52 = vld [vmem:[#allocation11 + $0x24] sm:$0xf0]  ;;  %v5413_v6 = vor.u32 %v6183_v41, %v5410_v62  ;;  %v5234_v27 = vld [vmem:[#allocation8 + $0x638] sm:$0xf0]  ;;  %v1434_v14 = vperm.slane %v6770_v12, 1 }
 0x1bc   :  { %v5481_v19 = vor.u32 %v6203_v52, %v5480_v63  ;;  %v6167_v41 = vld [vmem:[#allocation8 + $0x70c] sm:$0xf]  ;;  %v5346_v62 = vld [vmem:[#allocation8 + $0x718] sm:$0xf0]  ;;  %v5528_v52 = vld [vmem:[#allocation11 + $0x80] sm:$0xf] }
 0x1bd   :  { %3537 = vmatpush.bf16.msra.mxu0 %v5505_v30  ;;  %3113 = vmatpush.bf16.msrb.mxu2 %v5301_v38  ;;  %v6175_v30 = vld [vmem:[#allocation8 + $0x74c] sm:$0xf]  ;;  %v2821_v34 = vpop.f32.mrf.mxu3  ;;  %v5349_v8 = vor.u32 %v6167_v41, %v5346_v62  ;;  %v5529_v9 = vor.u32 %v6215_v1, %v5528_v52  ;;  %v2835_v25 = vadd.f32 %v6751_v49, %v1434_v14  ;;  %v5546_v41 = vld [vmem:[#allocation11 + $0xa8] sm:$0xf0] }
 0x1be   :  { %v2822_v40 = vadd.f32 %v2821_v34, %v2809_v28  ;;  %v5570_v28 = vld [vmem:[#allocation11 + $0xd8] sm:$0xf0]  ;;  %v6231_v37 = vld [vmem:[#allocation11 + $0x104] sm:$0xf0] }
 0x1bf   :  { %3125 = vmatpush.bf16.msrb.mxu3 %v5445_v35  ;;  %3549 = vmatpush.bf16.msra.mxu1 %v5577_v54  ;;  %v2810_v38 = vpop.f32.mrf.mxu2  ;;  %v5237_v35 = vor.u32 %v6139_v48, %v5234_v27  ;;  %v6171_v54 = vld [vmem:[#allocation8 + $0x72c] sm:$0xf]  ;;  %v5581_v48 = vor.u32 %v6226_v20, %v5578_v21  ;;  %v6224_v27 = vld [vmem:[#allocation11 + $0xd4] sm:$0xf]  ;;  %v5530_v21 = vld [vmem:[#allocation11 + $0x88] sm:$0xf0] }
 0x1c0   :  { %6321 = vtanh.f32 %v2822_v40  ;;  %v5365_v59 = vor.u32 %v6171_v54, %v5362_v45  ;;  %v5573_v36 = vor.u32 %v6224_v27, %v5570_v28  ;;  %v5482_v38 = vld [vmem:[#allocation11 + $0x28] sm:$0xf0]  ;;  %v6239_v20 = vld [vmem:[#allocation11 + $0x144] sm:$0xf0] }
 0x1c1   :  { %3538 = vmatpush.bf16.msra.mxu0 %v5497_v42  ;;  %3114 = vmatpush.bf16.msrb.mxu2 %v5285_v53  ;;  %v5381_v42 = vor.u32 %v6175_v30, %v5378_v31  ;;  %v6217_v53 = vld [vmem:[#allocation11 + $0x94] sm:$0xf0]  ;;  %v6204_v31 = vld [vmem:[#allocation11 + $0x34] sm:$0xf] }
 0x1c2   :  { %v5537_v63 = vor.u32 %v6217_v53, %v5536_v51  ;;  %v5493_v49 = vor.u32 %v6204_v31, %v5490_v32  ;;  %v5474_v51 = vld [vmem:[#allocation11 + $0x18] sm:$0xf0]  ;;  %v5600_v32 = vld [vmem:[#allocation11 + $0x110] sm:$0xf] }
 0x1c3   :  { %3126 = vmatpush.bf16.msrb.mxu3 %v5429_v56  ;;  %3550 = vmatpush.bf16.msra.mxu1 %v5569_v0  ;;  %v2901_v56 = vpop.f32.mrf.mxu1 }
 0x1c4   :  { %v5557_v56 = vor.u32 %v6220_v16, %v5554_v43 }
 0x1c5   :  { %3539 = vmatpush.bf16.msra.mxu0 %v5489_v61  ;;  %3115 = vmatpush.bf16.msrb.mxu2 %v5269_v5  ;;  %v5514_v61 = vld [vmem:[#allocation11 + $0x68] sm:$0xf0]  ;;  %v2823_v0 = vpop.f32.mrf.mxu3  ;;  %v5586_v5 = vld [vmem:[#allocation11 + $0xf8] sm:$0xf0] }
 0x1c6   :  { %v6322_v2 = vpop.eup %6321  ;;  %v5517_v3 = vor.u32 %v6210_v60, %v5514_v61  ;;  %v6218_v61 = vld [vmem:[#allocation11 + $0xa4] sm:$0xf] }
 0x1c7   :  { %3127 = vmatpush.bf16.msrb.mxu3 %v5413_v6  ;;  %3551 = vmatpush.bf16.msra.mxu1 %v5561_v17  ;;  %v6768_v6 = vpack.c.bf16 %v6322_v2, %v6322_v2  ;;  %v2860_v7 = vpop.f32.mrf.mxu2  ;;  %v5589_v17 = vor.u32 %v6228_v4, %v5586_v5  ;;  %v6198_v0 = vld [vmem:[#allocation11 + $0x4] sm:$0xf]  ;;  %v5549_v1 = vor.u32 %v6218_v61, %v5546_v41  ;;  %v5632_v2 = vld [vmem:[#allocation11 + $0x150] sm:$0xf]  ;;  %v6236_v61 = vld [vmem:[#allocation11 + $0x134] sm:$0xf] }
 0x1c8   :  { %v5618_v41 = vld [vmem:[#allocation11 + $0x138] sm:$0xf0] }
 0x1c9   :  { %3540 = vmatpush.bf16.msra.mxu0 %v5481_v19  ;;  %3116 = vmatpush.bf16.msrb.mxu2 %v5253_v24  ;;  %v5506_v19 = vld [vmem:[#allocation11 + $0x58] sm:$0xf0]  ;;  %v5498_v24 = vld [vmem:[#allocation11 + $0x48] sm:$0xf0] }
 0x1ca   :  { %v5509_v18 = vor.u32 %v6208_v58, %v5506_v19 }
 0x1cb   :  { %3128 = vmatpush.bf16.msrb.mxu3 %v5397_v26  ;;  %3552 = vmatpush.bf16.msra.mxu1 %v5553_v33 }
 0x1cd   :  { %3541 = vmatpush.bf16.msra.mxu0 %v5473_v29  ;;  %3117 = vmatpush.bf16.msrb.mxu2 %v5237_v35  ;;  %v2873_v26 = vpop.f32.mrf.mxu3  ;;  %v2848_v29 = vadd.f32 %v6753_v22, %v2835_v25  ;;  %v6245_v22 = vld [vmem:[#allocation11 + $0x174] sm:$0xf0] }
 0x1ce   :  { %v6237_v25 = vld [vmem:[#allocation11 + $0x134] sm:$0xf0] }
 0x1cf   :  { %3129 = vmatpush.bf16.msrb.mxu3 %v5381_v42  ;;  %3553 = vmatpush.bf16.msra.mxu1 %v5545_v46  ;;  %v2862_v30 = vpop.f32.mrf.mxu2  ;;  %v2861_v33 = vadd.f32 %v2860_v7, %v2848_v29  ;;  %v6216_v7 = vld [vmem:[#allocation11 + $0x94] sm:$0xf]  ;;  %v5608_v29 = vld [vmem:[#allocation11 + $0x120] sm:$0xf] }
 0x1d0   :  { %v6235_v30 = vld [vmem:[#allocation11 + $0x124] sm:$0xf0] }
 0x1d1   :  { %3542 = vmatpush.bf16.msra.mxu0 %v5465_v44  ;;  %3118 = vmatpush.bf16.msrb.mxu2 %v5221_v57  ;;  %v6778_v34 = vpop.f32.mrf.mxu0  ;;  %v2874_v40 = vadd.f32 %v2873_v26, %v2861_v33  ;;  %v5649_v44 = vor.u32 %v6245_v22, %v5648_v15  ;;  %v5640_v57 = vld [vmem:[#allocation11 + $0x160] sm:$0xf]  ;;  %v5609_v31 = vor.u32 %v6235_v30, %v5608_v29  ;;  %v6233_v33 = vld [vmem:[#allocation11 + $0x114] sm:$0xf0]  ;;  %v6242_v22 = vld [vmem:[#allocation11 + $0x164] sm:$0xf] }
 0x1d3   :  { %3130 = vmatpush.bf16.msrb.mxu3 %v5365_v59  ;;  %3554 = vmatpush.bf16.msra.mxu1 %v5537_v63  ;;  %v2887_v54 = vadd.f32 %v6759_v55, %v2874_v40  ;;  %v6243_v59 = vld [vmem:[#allocation11 + $0x164] sm:$0xf0]  ;;  %v5466_v55 = vld [vmem:[#allocation11 + $0x8] sm:$0xf0]  ;;  %v6244_v40 = vld [vmem:[#allocation11 + $0x174] sm:$0xf] }
 0x1d4   :  { %3119 = vmatmul.bf16.vlgmr.msrb.gmra.mxu2 %v6719_v47  ;;  %3543 = vmatmul.bf16.vlgmr.msra.gmra.mxu0 %v6768_v6  ;;  %v5501_v47 = vor.u32 %v6206_v13, %v5498_v24  ;;  %v5641_v62 = vor.u32 %v6243_v59, %v5640_v57  ;;  %v5469_v5 = vor.u32 %v6198_v0, %v5466_v55  ;;  %v5616_v24 = vld [vmem:[#allocation11 + $0x130] sm:$0xf]  ;;  %v1435_v59 = vperm.slane %v6770_v12, 2  ;;  %v6234_v0 = vld [vmem:[#allocation11 + $0x124] sm:$0xf] }
 0x1d5   :  { %3587 = vmatpush.bf16.msrb.mxu0 %v5525_v50  ;;  %v2875_v35 = vpop.f32.mrf.mxu3  ;;  %v6200_v50 = vld [vmem:[#allocation11 + $0x14] sm:$0xf]  ;;  %3561 = vmatpush.bf16.msra.mxu2 %v5649_v44  ;;  %v2900_v63 = vadd.f32 %v6766_v23, %v2887_v54  ;;  %v5617_v26 = vor.u32 %v6237_v25, %v5616_v24  ;;  %v5634_v54 = vld [vmem:[#allocation11 + $0x158] sm:$0xf0]  ;;  %v5610_v55 = vld [vmem:[#allocation11 + $0x128] sm:$0xf0] }
 0x1d6   :  { %v5477_v60 = vor.u32 %v6200_v50, %v5474_v51  ;;  %v6240_v44 = vld [vmem:[#allocation11 + $0x154] sm:$0xf] }
 0x1d7   :  { %3131 = vmatpush.bf16.msrb.mxu3 %v5349_v8  ;;  %3555 = vmatpush.bf16.msra.mxu1 %v5529_v9  ;;  %v6781_v45 = vpop.f32.mrf.mxu1  ;;  %v2912_v46 = vpop.f32.mrf.mxu2  ;;  %v5538_v8 = vld [vmem:[#allocation11 + $0x98] sm:$0xf0] }
 0x1d8   :  { %v2913_v52 = vadd.f32 %v2912_v46, %v2900_v63  ;;  %v5541_v23 = vor.u32 %v6216_v7, %v5538_v8  ;;  %v5637_v46 = vor.u32 %v6240_v44, %v5634_v54  ;;  %v2939_v63 = vadd.f32 %v6778_v34, %v1435_v59  ;;  %v6247_v44 = vld [vmem:[#allocation11 + $0x184] sm:$0xf0]  ;;  %v6258_v59 = vld [vmem:[#allocation11 + $0x1e4] sm:$0xf] }
 0x1d9   :  { %3588 = vmatpush.bf16.msrb.mxu0 %v5517_v3  ;;  %v2940_v53 = vpop.f32.mrf.mxu0  ;;  %3562 = vmatpush.bf16.msra.mxu2 %v5641_v62  ;;  %v6241_v3 = vld [vmem:[#allocation11 + $0x154] sm:$0xf0]  ;;  %v5621_v62 = vor.u32 %v6236_v61, %v5618_v41 }
 0x1da   :  { %3132 = vmatmul.bf16.vlgmr.msrb.gmra.mxu3 %v6723_v10  ;;  %v6202_v10 = vld [vmem:[#allocation11 + $0x24] sm:$0xf]  ;;  %v5633_v58 = vor.u32 %v6241_v3, %v5632_v2  ;;  %v6232_v2 = vld [vmem:[#allocation11 + $0x114] sm:$0xf]  ;;  %v5602_v3 = vld [vmem:[#allocation11 + $0x118] sm:$0xf0] }
 0x1db   :  { %3600 = vmatpush.bf16.msrb.mxu1 %v5589_v17  ;;  %v5485_v42 = vor.u32 %v6202_v10, %v5482_v38  ;;  %v6214_v17 = vld [vmem:[#allocation11 + $0x84] sm:$0xf]  ;;  %v5650_v10 = vld [vmem:[#allocation11 + $0x178] sm:$0xf0] }
 0x1dc   :  { %v5653_v38 = vor.u32 %v6244_v40, %v5650_v10  ;;  %v6238_v53 = vld [vmem:[#allocation11 + $0x144] sm:$0xf]  ;;  %v5672_v40 = vld [vmem:[#allocation11 + $0x1a0] sm:$0xf]  ;;  %v6251_v10 = vld [vmem:[#allocation11 + $0x1a4] sm:$0xf0] }
 0x1dd   :  { %3589 = vmatpush.bf16.msrb.mxu0 %v5509_v18  ;;  %v2925_v4 = vpop.f32.mrf.mxu3  ;;  %3563 = vmatpush.bf16.msra.mxu2 %v5633_v58  ;;  %v5624_v18 = vld [vmem:[#allocation11 + $0x140] sm:$0xf]  ;;  %v6230_v58 = vld [vmem:[#allocation11 + $0x104] sm:$0xf] }
 0x1de   :  { %v2926_v19 = vadd.f32 %v2925_v4, %v2913_v52  ;;  %v5625_v13 = vor.u32 %v6239_v20, %v5624_v18  ;;  %v5613_v52 = vor.u32 %v6234_v0, %v5610_v55  ;;  %v5605_v4 = vor.u32 %v6232_v2, %v5602_v3  ;;  %v5690_v2 = vld [vmem:[#allocation11 + $0x1c8] sm:$0xf0] }
 0x1df   :  { %3601 = vmatpush.bf16.msrb.mxu1 %v5581_v48  ;;  %v2953_v9 = vpop.f32.mrf.mxu1  ;;  %v2914_v14 = vpop.f32.mrf.mxu2  ;;  %v5533_v48 = vor.u32 %v6214_v17, %v5530_v21  ;;  %v5704_v21 = vld [vmem:[#allocation11 + $0x1e0] sm:$0xf] }
 0x1e0   :  { %6323 = vtanh.f32 %v2926_v19  ;;  %v5594_v19 = vld [vmem:[#allocation11 + $0x108] sm:$0xf0]  ;;  %v5712_v14 = vld [vmem:[#allocation11 + $0x1f0] sm:$0xf] }
 0x1e1   :  { %3590 = vmatpush.bf16.msrb.mxu0 %v5501_v47  ;;  %3564 = vmatpush.bf16.msra.mxu2 %v5625_v13  ;;  %v5597_v9 = vor.u32 %v6230_v58, %v5594_v19  ;;  %v6259_v13 = vld [vmem:[#allocation11 + $0x1e4] sm:$0xf0]  ;;  %v5682_v58 = vld [vmem:[#allocation11 + $0x1b8] sm:$0xf0] }
 0x1e2   :  { %v5705_v25 = vor.u32 %v6259_v13, %v5704_v21 }
 0x1e3   :  { %3602 = vmatpush.bf16.msrb.mxu1 %v5573_v36  ;;  %v5601_v36 = vor.u32 %v6233_v33, %v5600_v32  ;;  %v5688_v32 = vld [vmem:[#allocation11 + $0x1c0] sm:$0xf]  ;;  %v6255_v33 = vld [vmem:[#allocation11 + $0x1c4] sm:$0xf0] }
 0x1e5   :  { %3591 = vmatpush.bf16.msrb.mxu0 %v5493_v49  ;;  %v2927_v47 = vpop.f32.mrf.mxu3  ;;  %3565 = vmatpush.bf16.msra.mxu2 %v5617_v26 }
 0x1e6   :  { %v6324_v27 = vpop.eup %6323  ;;  %v5696_v47 = vld [vmem:[#allocation11 + $0x1d0] sm:$0xf] }
 0x1e7   :  { %3603 = vmatpush.bf16.msrb.mxu1 %v5565_v39  ;;  %v3142_v28 = vpack.c.bf16 %v6324_v27, %v6324_v27  ;;  %v6257_v27 = vld [vmem:[#allocation11 + $0x1d4] sm:$0xf0] }
 0x1e8   :  { %v5697_v29 = vor.u32 %v6257_v27, %v5696_v47 }
 0x1e9   :  { %3592 = vmatpush.bf16.msrb.mxu0 %v5485_v42  ;;  %3556 = vmatmul.bf16.vlgmr.msra.gmra.mxu1 %v3142_v28  ;;  %v5642_v42 = vld [vmem:[#allocation11 + $0x168] sm:$0xf0] }
 0x1ea   :  { %3566 = vmatpush.bf16.msra.mxu2 %v5609_v31  ;;  %v5645_v16 = vor.u32 %v6242_v22, %v5642_v42  ;;  %v6249_v22 = vld [vmem:[#allocation11 + $0x194] sm:$0xf0] }
 0x1eb   :  { %3604 = vmatpush.bf16.msrb.mxu1 %v5557_v56  ;;  %v5626_v56 = vld [vmem:[#allocation11 + $0x148] sm:$0xf0] }
 0x1ec   :  { %v5629_v57 = vor.u32 %v6238_v53, %v5626_v56 }
 0x1ed   :  { %3593 = vmatpush.bf16.msrb.mxu0 %v5477_v60 }
 0x1ee   :  { %3567 = vmatpush.bf16.msra.mxu2 %v5601_v36  ;;  %v5689_v36 = vor.u32 %v6255_v33, %v5688_v32 }
 0x1ef   :  { %3605 = vmatpush.bf16.msrb.mxu1 %v5549_v1  ;;  %v2952_v1 = vadd.f32 %v6781_v45, %v2939_v63  ;;  %v5698_v63 = vld [vmem:[#allocation11 + $0x1d8] sm:$0xf0] }
 0x1f1   :  { %3594 = vmatpush.bf16.msrb.mxu0 %v5469_v5  ;;  %v2990_v49 = vpop.f32.mrf.mxu0 }
 0x1f3   :  { %3606 = vmatpush.bf16.msrb.mxu1 %v5541_v23  ;;  %v6261_v23 = vld [vmem:[#allocation11 + $0x1f4] sm:$0xf0] }
 0x1f4   :  { %3595 = vmatmul.bf16.vlgmr.msrb.gmra.mxu0 %v6768_v6  ;;  %v5593_v6 = vor.u32 %v6231_v37, %v5592_v11  ;;  %v5713_v17 = vor.u32 %v6261_v23, %v5712_v14  ;;  %v6253_v11 = vld [vmem:[#allocation11 + $0x1b4] sm:$0xf0]  ;;  %v6250_v14 = vld [vmem:[#allocation11 + $0x1a4] sm:$0xf]  ;;  %v5674_v23 = vld [vmem:[#allocation11 + $0x1a8] sm:$0xf0] }
 0x1f6   :  { %3568 = vmatpush.bf16.msra.mxu2 %v5593_v6  ;;  %3574 = vmatpush.bf16.msra.mxu3 %v5713_v17 }
 0x1f7   :  { %3607 = vmatpush.bf16.msrb.mxu1 %v5533_v48  ;;  %v2964_v35 = vpop.f32.mrf.mxu2  ;;  %v3003_v39 = vpop.f32.mrf.mxu1 }
 0x1f8   :  { %v2965_v5 = vadd.f32 %v2964_v35, %v2952_v1  ;;  %v6254_v1 = vld [vmem:[#allocation11 + $0x1c4] sm:$0xf] }
 0x1f9   :  { %v2992_v15 = vpop.f32.mrf.mxu0  ;;  %v5693_v3 = vor.u32 %v6254_v1, %v5690_v2  ;;  %v6271_v1 = vld [vmem:[#allocation13 + $0x48] sm:$0xff]  ;;  %v6270_v2 = vld [vmem:[#allocation13 + $0x40] sm:$0xff] }
 0x1fa   :  { %3613 = vmatpush.bf16.msrb.mxu2 %v5653_v38  ;;  %3608 = vmatmul.bf16.vlgmr.msrb.gmra.mxu1 %v3142_v28  ;;  %v5664_v15 = vld [vmem:[#allocation11 + $0x190] sm:$0xf] }
 0x1fb   :  { %3575 = vmatpush.bf16.msra.mxu3 %v5705_v25 }
 0x1fd   :  { %v2977_v43 = vpop.f32.mrf.mxu3 }
 0x1fe   :  { %3614 = vmatpush.bf16.msrb.mxu2 %v5645_v16  ;;  %v2978_v8 = vadd.f32 %v2977_v43, %v2965_v5  ;;  %v5665_v16 = vor.u32 %v6249_v22, %v5664_v15  ;;  %v5656_v43 = vld [vmem:[#allocation11 + $0x180] sm:$0xf] }
 0x1ff   :  { %v2966_v50 = vpop.f32.mrf.mxu2  ;;  %v3005_v51 = vpop.f32.mrf.mxu1  ;;  %3576 = vmatpush.bf16.msra.mxu3 %v5697_v29  ;;  %v5657_v54 = vor.u32 %v6247_v44, %v5656_v43  ;;  %v6269_v43 = vld [vmem:[#allocation13 + $0x38] sm:$0xff] }
 0x200   :  { %v2991_v34 = vadd.f32 %v2990_v49, %v2978_v8  ;;  %v5680_v49 = vld [vmem:[#allocation11 + $0x1b0] sm:$0xf]  ;;  %v5714_v50 = vld [vmem:[#allocation11 + $0x1f8] sm:$0xf0]  ;;  %v6252_v8 = vld [vmem:[#allocation11 + $0x1b4] sm:$0xf]  ;;  %3775 = vmatpush.bf16.msra.mxu0 %v6269_v43 }
 0x201   :  { %v5681_v37 = vor.u32 %v6253_v11, %v5680_v49  ;;  %v5685_v19 = vor.u32 %v6252_v8, %v5682_v58  ;;  %v3209_v49 = vld [vmem:[%s6813_s6] sm:$0x3]  ;;  %v6277_v44 = vld [vmem:[#allocation13 + $0x78] sm:$0xff] }
 0x202   :  { %3615 = vmatpush.bf16.msrb.mxu2 %v5637_v46  ;;  %v3004_v24 = vadd.f32 %v3003_v39, %v2991_v34  ;;  %v5673_v39 = vor.u32 %v6251_v10, %v5672_v40  ;;  %v6260_v46 = vld [vmem:[#allocation11 + $0x1f4] sm:$0xf]  ;;  %v5677_v34 = vor.u32 %v6250_v14, %v5674_v23  ;;  %v3211_v11 = vperm.slane %v3209_v49, 0  ;;  %3788 = vmatpush.bf16.msra.mxu1 %v6277_v44 }
 0x203   :  { %3577 = vmatpush.bf16.msra.mxu3 %v5689_v36  ;;  %v5717_v51 = vor.u32 %v6260_v46, %v5714_v50  ;;  %v6267_v46 = vld [vmem:[#allocation13 + $0x28] sm:$0xff] }
 0x205   :  { %v2979_v60 = vpop.f32.mrf.mxu3 }
 0x206   :  { %3616 = vmatpush.bf16.msrb.mxu2 %v5629_v57  ;;  %v5706_v60 = vld [vmem:[#allocation11 + $0x1e8] sm:$0xf0] }
 0x207   :  { %3578 = vmatpush.bf16.msra.mxu3 %v5681_v37  ;;  %v5709_v61 = vor.u32 %v6258_v59, %v5706_v60  ;;  %v6264_v60 = vld [vmem:[#allocation13 + $0x10] sm:$0xff] }
 0x20a   :  { %3617 = vmatpush.bf16.msrb.mxu2 %v5621_v62  ;;  %v6256_v62 = vld [vmem:[#allocation11 + $0x1d4] sm:$0xf] }
 0x20b   :  { %3579 = vmatpush.bf16.msra.mxu3 %v5673_v39  ;;  %v5701_v0 = vor.u32 %v6256_v62, %v5698_v63  ;;  %v3212_v39 = vperm.slane %v3209_v49, 1  ;;  %v6275_v62 = vld [vmem:[#allocation13 + $0x68] sm:$0xff]  ;;  %v6262_v63 = vld [vmem:[#allocation13] sm:$0xff] }
 0x20e   :  { %3618 = vmatpush.bf16.msrb.mxu2 %v5613_v52 }
 0x20f   :  { %3580 = vmatpush.bf16.msra.mxu3 %v5665_v16 }
 0x211   :  { %v6788_v7 = vpop.f32.mrf.mxu0 }
 0x212   :  { %3619 = vmatpush.bf16.msrb.mxu2 %v5605_v4  ;;  %v1436_v4 = vperm.slane %v6770_v12, 3  ;;  %v6246_v12 = vld [vmem:[#allocation11 + $0x184] sm:$0xf] }
 0x213   :  { %3581 = vmatpush.bf16.msra.mxu3 %v5657_v54  ;;  %v6268_v54 = vld [vmem:[#allocation13 + $0x30] sm:$0xff] }
 0x214   :  { %3776 = vmatpush.bf16.msra.mxu0 %v6268_v54 }
 0x216   :  { %3620 = vmatpush.bf16.msrb.mxu2 %v5597_v9  ;;  %v3043_v9 = vadd.f32 %v6788_v7, %v1436_v4 }
 0x217   :  { %v3016_v18 = vpop.f32.mrf.mxu2  ;;  %v6790_v20 = vpop.f32.mrf.mxu1  ;;  %3626 = vmatpush.bf16.msrb.mxu3 %v5717_v51  ;;  %v6266_v51 = vld [vmem:[#allocation13 + $0x20] sm:$0xff] }
 0x218   :  { %v3017_v26 = vadd.f32 %v3016_v18, %v3004_v24  ;;  %v3056_v17 = vadd.f32 %v6790_v20, %v3043_v9  ;;  %v6248_v18 = vld [vmem:[#allocation11 + $0x194] sm:$0xf]  ;;  %3777 = vmatpush.bf16.msra.mxu0 %v6267_v46 }
 0x219   :  { %v3044_v45 = vpop.f32.mrf.mxu0 }
 0x21a   :  { %v5666_v45 = vld [vmem:[#allocation11 + $0x198] sm:$0xf0] }
 0x21b   :  { %3627 = vmatpush.bf16.msrb.mxu3 %v5709_v61  ;;  %v5669_v13 = vor.u32 %v6248_v18, %v5666_v45  ;;  %v6276_v61 = vld [vmem:[#allocation13 + $0x70] sm:$0xff] }
 0x21c   :  { %3778 = vmatpush.bf16.msra.mxu0 %v6266_v51  ;;  %3789 = vmatpush.bf16.msra.mxu1 %v6276_v61 }
 0x21d   :  { %v3029_v48 = vpop.f32.mrf.mxu3 }
 0x21e   :  { %v3030_v28 = vadd.f32 %v3029_v48, %v3017_v26  ;;  %v5658_v26 = vld [vmem:[#allocation11 + $0x188] sm:$0xf0] }
 0x21f   :  { %v3018_v30 = vpop.f32.mrf.mxu2  ;;  %v3057_v31 = vpop.f32.mrf.mxu1  ;;  %3628 = vmatpush.bf16.msrb.mxu3 %v5701_v0  ;;  %v5661_v48 = vor.u32 %v6246_v12, %v5658_v26  ;;  %v6274_v0 = vld [vmem:[#allocation13 + $0x60] sm:$0xff]  ;;  %v6280_v12 = vld [vmem:[#allocation14 + $0x10] sm:$0xff]  ;;  %v6279_v26 = vld [vmem:[#allocation14 + $0x8] sm:$0xff] }
 0x220   :  { %6325 = vtanh.f32 %v3030_v28  ;;  %3790 = vmatpush.bf16.msra.mxu1 %v6275_v62 }
 0x223   :  { %3629 = vmatpush.bf16.msrb.mxu3 %v5693_v3  ;;  %v6285_v3 = vld [vmem:[#allocation14 + $0x38] sm:$0xff] }
 0x224   :  { %3791 = vmatpush.bf16.msra.mxu1 %v6274_v0 }
 0x225   :  { %v3031_v6 = vpop.f32.mrf.mxu3 }
 0x226   :  { %v6326_v38 = vpop.eup %6325 }
 0x227   :  { %v3143_v35 = vpack.c.bf16 %v6326_v38, %v6326_v38  ;;  %3630 = vmatpush.bf16.msrb.mxu3 %v5685_v19 }
 0x229   :  { %3569 = vmatmul.bf16.vlgmr.msra.gmra.mxu2 %v3143_v35 }
 0x22a   :  { %3871 = vmatpush.bf16.msra.mxu2 %v6285_v3 }
 0x22b   :  { %3631 = vmatpush.bf16.msrb.mxu3 %v5677_v34 }
 0x22f   :  { %3632 = vmatpush.bf16.msrb.mxu3 %v5669_v13  ;;  %v6283_v13 = vld [vmem:[#allocation14 + $0x28] sm:$0xff] }
 0x231   :  { %v3094_v42 = vpop.f32.mrf.mxu0 }
 0x233   :  { %3633 = vmatpush.bf16.msrb.mxu3 %v5661_v48  ;;  %v6278_v48 = vld [vmem:[#allocation14] sm:$0xff] }
 0x237   :  { %v3068_v53 = vpop.f32.mrf.mxu2  ;;  %v3107_v56 = vpop.f32.mrf.mxu1 }
 0x238   :  { %v3069_v21 = vadd.f32 %v3068_v53, %v3056_v17  ;;  %v6265_v53 = vld [vmem:[#allocation13 + $0x18] sm:$0xff] }
 0x239   :  { %v3096_v57 = vpop.f32.mrf.mxu0  ;;  %3621 = vmatmul.bf16.vlgmr.msrb.gmra.mxu2 %v3143_v35  ;;  %3779 = vmatpush.bf16.msra.mxu0 %v6265_v53 }
 0x23d   :  { %v3081_v41 = vpop.f32.mrf.mxu3  ;;  %3780 = vmatpush.bf16.msra.mxu0 %v6264_v60 }
 0x23e   :  { %v3082_v24 = vadd.f32 %v3081_v41, %v3069_v21  ;;  %v6263_v41 = vld [vmem:[#allocation13 + $0x8] sm:$0xff]  ;;  %v6284_v21 = vld [vmem:[#allocation14 + $0x30] sm:$0xff] }
 0x23f   :  { %v3070_v55 = vpop.f32.mrf.mxu2  ;;  %v3109_v52 = vpop.f32.mrf.mxu1  ;;  %3872 = vmatpush.bf16.msra.mxu2 %v6284_v21 }
 0x240   :  { %v3095_v47 = vadd.f32 %v3094_v42, %v3082_v24  ;;  %v6273_v55 = vld [vmem:[#allocation13 + $0x58] sm:$0xff]  ;;  %v6272_v52 = vld [vmem:[#allocation13 + $0x50] sm:$0xff]  ;;  %v6282_v24 = vld [vmem:[#allocation14 + $0x20] sm:$0xff] }
 0x241   :  { %3781 = vmatpush.bf16.msra.mxu0 %v6263_v41  ;;  %3792 = vmatpush.bf16.msra.mxu1 %v6273_v55 }
 0x242   :  { %v3108_v7 = vadd.f32 %v3107_v56, %v3095_v47 }
 0x243   :  { %3873 = vmatpush.bf16.msra.mxu2 %v6283_v13 }
 0x245   :  { %v3083_v5 = vpop.f32.mrf.mxu3  ;;  %3782 = vmatpush.bf16.msra.mxu0 %v6262_v63  ;;  %3793 = vmatpush.bf16.msra.mxu1 %v6272_v52 }
 0x247   :  { %3874 = vmatpush.bf16.msra.mxu2 %v6282_v24 }
 0x249   :  { %3794 = vmatpush.bf16.msra.mxu1 %v6271_v1 }
 0x24d   :  { %3795 = vmatpush.bf16.msra.mxu1 %v6270_v2 }
 0x251   :  { %v3544_v25 = vpop.f32.mrf.mxu0 }
 0x252   :  { %v3545_v6 = vadd.f32 %v3544_v25, %v3211_v11  ;;  %v6281_v25 = vld [vmem:[#allocation14 + $0x18] sm:$0xff] }
 0x253   :  { %3875 = vmatpush.bf16.msra.mxu2 %v6281_v25 }
 0x257   :  { %v3120_v27 = vpop.f32.mrf.mxu2  ;;  %3876 = vmatpush.bf16.msra.mxu2 %v6280_v12 }
 0x258   :  { %v3121_v29 = vadd.f32 %v3120_v27, %v3108_v7  ;;  %v6303_v7 = vld [vmem:[%s6815_s8] ss:$0 sm:$0xff]  ;;  %s6584_s8 = smov [#allocation16]  }
 0x259   :  { %v3546_v28 = vpop.f32.mrf.mxu0 }
 0x25b   :  { %3877 = vmatpush.bf16.msra.mxu2 %v6279_v26 }
 0x25d   :  { %v3133_v30 = vpop.f32.mrf.mxu3 }
 0x25e   :  { %v3134_v31 = vadd.f32 %v3133_v30, %v3121_v29 }
 0x25f   :  { %v3122_v20 = vpop.f32.mrf.mxu2  ;;  %3878 = vmatpush.bf16.msra.mxu2 %v6278_v48 }
 0x260   :  { %6327 = vtanh.f32 %v3134_v31 }
 0x265   :  { %v3135_v32 = vpop.f32.mrf.mxu3 }
 0x266   :  { %v6328_v33 = vpop.eup %6327  ;;  %v3557_v40 = vpop.f32.mrf.mxu1 }
 0x267   :  { %v3144_v36 = vpack.c.bf16 %v6328_v33, %v6328_v33  ;;  %v3558_v10 = vadd.f32 %v3557_v40, %v3545_v6  ;;  %v6304_v33 = vld [vmem:[%s6817_s10] ss:$0 sm:$0xff]  ;;  %s3910_s10 = sshll.u32 %s6584_s8, 4  ;;  %s3911_s10 = int_to_ptr.vmem [resolvable:$true] %s3910_s10 }
 0x269   :  { %3582 = vmatmul.bf16.vlgmr.msra.gmra.mxu3 %v3144_v36 }
 0x26e   :  { %v3559_v35 = vpop.f32.mrf.mxu1 }
 0x271   :  { %v3596_v37 = vpop.f32.mrf.mxu0 }
 0x272   :  { %v3597_v15 = vadd.f32 %v3596_v37, %v3212_v39 }
 0x277   :  { %v3609_v22 = vpop.f32.mrf.mxu1 }
 0x278   :  { %v3610_v42 = vadd.f32 %v3609_v22, %v3597_v15 }
 0x279   :  { %v3598_v38 = vpop.f32.mrf.mxu0  ;;  %3634 = vmatmul.bf16.vlgmr.msrb.gmra.mxu3 %v3144_v36 }
 0x27f   :  { %v3611_v16 = vpop.f32.mrf.mxu1 }
 0x2ac   :  { %v3570_v50 = vpop.f32.mrf.mxu2 }
 0x2ad   :  { %v3571_v4 = vadd.f32 %v3570_v50, %v3558_v10 }
 0x2b4   :  { %v3572_v56 = vpop.f32.mrf.mxu2 }
 0x2bc   :  { %v3622_v57 = vpop.f32.mrf.mxu2 }
 0x2bd   :  { %v3623_v14 = vadd.f32 %v3622_v57, %v3610_v42 }
 0x2c4   :  { %v3624_v59 = vpop.f32.mrf.mxu2 }
 0x2ec   :  { %v3583_v5 = vpop.f32.mrf.mxu3 }
 0x2ed   :  { %v3584_v8 = vadd.f32 %v3583_v5, %v3571_v4 }
 0x2ef   :  { %6329 = vtanh.f32 %v3584_v8 }
 0x2f4   :  { %v3585_v58 = vpop.f32.mrf.mxu3 }
 0x2f5   :  { %v6330_v19 = vpop.eup %6329 }
 0x2f6   :  { %v3641_v9 = vpack.c.bf16 %v6330_v19, %v6330_v19 }
 0x2f8   :  { %3783 = vmatmul.bf16.vlgmr.msra.gmra.mxu0 %v3641_v9 }
 0x2fc   :  { %v3635_v23 = vpop.f32.mrf.mxu3 }
 0x2fd   :  { %v3636_v34 = vadd.f32 %v3635_v23, %v3623_v14 }
 0x2ff   :  { %6331 = vtanh.f32 %v3636_v34 }
 0x304   :  { %v3637_v17 = vpop.f32.mrf.mxu3 }
 0x305   :  { %v6332_v18 = vpop.eup %6331 }
 0x306   :  { %v3642_v45 = vpack.c.bf16 %v6332_v18, %v6332_v18 }
 0x308   :  { %3796 = vmatmul.bf16.vlgmr.msra.gmra.mxu1 %v3642_v45 }
 0x375   :  { %v3784_v47 = vpop.f32.mrf.mxu0 }
 0x376   :  { %v3785_v28 = vadd.f32 %v6303_v7, %v3784_v47 }
 0x37d   :  { %v3786_v27 = vpop.f32.mrf.mxu0 }
 0x385   :  { %v3797_v29 = vpop.f32.mrf.mxu1 }
 0x386   :  { %v3798_v30 = vadd.f32 %v3797_v29, %v3785_v28 }
 0x388   :  { %6333 = vtanh.f32 %v3798_v30 }
 0x38d   :  { %v3799_v31 = vpop.f32.mrf.mxu1 }
 0x38e   :  { %v6334_v20 = vpop.eup %6333 }
 0x38f   :  { %v3802_v32 = vpack.c.bf16 %v6334_v20, %v6334_v20 }
 0x391   :  { %3879 = vmatmul.bf16.vlgmr.msra.gmra.mxu2 %v3802_v32 }
 0x414   :  { %v3880_v36 = vpop.f32.mrf.mxu2 }
 0x415   :  { %v3881_v49 = vadd.f32 %v6304_v33, %v3880_v36 }
 0x417   :  { %v3885_v11 = vsel %vm3884_vm0, %v3881_v49, -inf }
 0x418   :  { %v3886_v37 = vrot.slane %v3885_v11, 4 }
 0x41a   :  { %v3887_v6 = vmax.f32 %v3885_v11, %v3886_v37 }
 0x41c   :  { %v3888_v40 = vrot.slane %v3887_v6, 2  ;;  %v3882_v10 = vpop.f32.mrf.mxu2 }
 0x41e   :  { %v3889_v38 = vmax.f32 %v3887_v6, %v3888_v40 }
 0x420   :  { %v3890_v35 = vrot.slane %v3889_v38, 1 }
 0x422   :  { %v3891_v39 = vmax.f32 %v3889_v38, %v3890_v35 }
 0x424   :  { %v3892_v15 = vsub.f32 %v3881_v49, %v3891_v39 }
 0x426   :  { %v3893_v22 = vmul.f32 1.442695, %v3892_v15 }
 0x428   :  { %6335 = vpow2.f32 %v3893_v22 }
 0x42e   :  { %v6336_v42 = vpop.eup %6335 }
 0x42f   :  { %v3895_v16 = vsel %vm3884_vm0, %v6336_v42, 0.0 }
 0x430   :  { %v3896_v43 = vrot.slane %v3895_v16, 4 }
 0x432   :  { %v3897_v44 = vadd.f32 %v3896_v43, %v3895_v16 }
 0x434   :  { %v3898_v54 = vrot.slane %v3897_v44, 2 }
 0x436   :  { %v3899_v46 = vadd.f32 %v3898_v54, %v3897_v44 }
 0x438   :  { %v3900_v50 = vrot.slane %v3899_v46, 1 }
 0x43a   :  { %v3901_v51 = vadd.f32 %v3900_v50, %v3899_v46 }
 0x43c   :  { %6337 = vrcp.f32 %v3901_v51 }
 0x442   :  { %v6338_v53 = vpop.eup %6337 }
 0x443   :  { %v3903_v56 = vmul.f32 %v6338_v53, %v6336_v42 }
 0x445   :  { %3904 = vst [vmem:[#allocation16] sm:$0x3] %v3903_v56 }
 0x446   :  { %3915 = dma.vmem_to_hbm [thread:$0]  %s3911_s10, 32, %s3913_s24, [#allocation4]  }
 0x447   :  { %6566 = dma.done.wait [#allocation4], 32  }
 0x448   :  { %6567 = vsyncadd [#allocation4], 4294967264 }
 0x449   :  { %3920 = vsyncpa [#allocation3], 1 }
 0x44a   :  { %3921 = vsyncpa [#allocation6], 1 }
 0x44b   :  { %3922 = vsyncpa [#allocation9], 1 }
 0x44c   :  { %3923 = vsyncpa [#allocation12], 1 }
 0x44d   :  { %3924 = vsyncpa [#allocation15], 1 }
 0x44e   :  { %3925 = vsyncpa [#allocation4], 1 }

</bundles_post_ra>
